<compile_context>
chip_gen: v7x
topology: tpu7x:2x2x1
jax: 0.10.0
libtpu: 0.0.40
codegen_flags: <defaults>
</compile_context>

<pallas_src>
import functools

import jax
import jax.numpy as jnp
import numpy as np
from jax.experimental import pallas as pl
from jax.experimental.pallas import tpu as pltpu


def _round_up(x, m):
    return ((x + m - 1) // m) * m


def _vmem_limit_bytes(est):
    # Generous headroom, clamped to the smallest physical VMEM across gens (v7x: 64 MiB).
    return int(min(64 << 20, max(16 << 20, 2 * est + (1 << 20))))


# --------------------------------------------------------------------------- #
# Pallas kernel #1: multi-layer GRU recurrence (sequential over time blocks).  #
# --------------------------------------------------------------------------- #
def _make_gru_kernel(num_layers: int, hidden: int, t_block: int):
    """Refs (in order):
       gi0 (Tb,Bb,3H)  precomputed layer-0 input gates (bias folded in),
       lens (Bb,1)     int32 sequence lengths,
       w_hh0T (H,3H), b_hh0 (1,3H),
       [w_blk (2H,6H), b_blk (1,6H)] for layers 1..L-1 (block-diag fused weights),
       out (Tb,Bb,H),
       h_scratch (L,Bb,H)  [VMEM]
    """
    H = hidden
    L = num_layers

    def kernel(*refs):
        gi0_ref, lens_ref, w_hh0_ref, b_hh0_ref = refs[:4]
        upper = refs[4:4 + 2 * (L - 1)]
        out_ref = refs[4 + 2 * (L - 1)]
        h_ref = refs[5 + 2 * (L - 1)]

        Bb = out_ref.shape[1]

        # New batch shard starts its time loop -> reset the recurrent state.
        @pl.when(pl.program_id(1) == 0)
        def _init():
            h_ref[...] = jnp.zeros_like(h_ref)

        # Hoist grid-invariant loads / bias broadcasts out of the unrolled loop.
        w_hh0 = w_hh0_ref[...]
        b_hh0 = jnp.broadcast_to(b_hh0_ref[...], (Bb, 3 * H))
        lens = lens_ref[...]                          # (Bb, 1) int32
        t0 = pl.program_id(1) * t_block
        upper_wb = []
        for l in range(1, L):
            w_blk = upper[2 * (l - 1)][...]           # (2H, 6H)
            b_blk = jnp.broadcast_to(upper[2 * (l - 1) + 1][...], (Bb, 6 * H))
            upper_wb.append((w_blk, b_blk))

        def gru_cell(gi, gh, h_prev):
            r = jax.nn.sigmoid(gi[:, 0:H] + gh[:, 0:H])
            z = jax.nn.sigmoid(gi[:, H:2 * H] + gh[:, H:2 * H])
            n = jnp.tanh(gi[:, 2 * H:3 * H] + r * gh[:, 2 * H:3 * H])
            return (1.0 - z) * n + z * h_prev

        # Statically unrolled inner loop over the timesteps of this block.
        for i in range(t_block):
            # layer 0: input gates were hoisted into one big matmul outside.
            h_prev = h_ref[0]
            gh = jnp.dot(h_prev.astype(w_hh0.dtype), w_hh0,
                         preferred_element_type=jnp.float32) + b_hh0
            gi = gi0_ref[i].astype(jnp.float32)
            h_new = gru_cell(gi, gh, h_prev)
            h_ref[0] = h_new
            x = h_new
            # layers >= 1: fused [gi | gh] via block-diagonal weight, single MXU push.
            for l in range(1, L):
                w_blk, b_blk = upper_wb[l - 1]
                h_prev = h_ref[l]
                xh = jnp.concatenate([x, h_prev], axis=1).astype(w_blk.dtype)
                g = jnp.dot(xh, w_blk, preferred_element_type=jnp.float32) + b_blk
                h_new = gru_cell(g[:, :3 * H], g[:, 3 * H:], h_prev)
                h_ref[l] = h_new
                x = h_new
            # pack/unpack semantics: outputs at t >= real_len are exactly zero.
            m = ((t0 + i) < lens).astype(jnp.float32)      # (Bb, 1)
            out_ref[i] = (x * m).astype(out_ref.dtype)

    return kernel


def gru_forward_pallas(emb_inps, real_lens, gru_params, *, t_block=None,
                       batch_block=None, mxu_dtype=jnp.float32):
    """emb_inps: (B, T, E) f32; real_lens: (B,) int.
       gru_params: [(w_ih (3H,in), w_hh (3H,H), b_ih (3H,), b_hh (3H,))] * L.
       Returns length-masked GRU outputs (B, T, H) in f32."""
    B, T, E = emb_inps.shape
    H = gru_params[0][1].shape[1]
    L = len(gru_params)
    io_dtype = jnp.dtype(mxu_dtype)
    io_sz = io_dtype.itemsize

    Bp = _round_up(max(B, 8), 8)            # sublane-aligned batch

    # Batch sharding: >= 2 shards whenever the padded batch allows it, so the
    # "parallel" batch axis can use both TensorCores on v7x.
    if batch_block is None:
        if Bp >= 16:
            bb = max(8, (Bp // 2) // 8 * 8)
            while Bp % bb:
                bb -= 8
            batch_block = bb
        else:
            batch_block = Bp
    Bb = batch_block
    assert Bp % Bb == 0 and Bb % 8 == 0

    # Time blocking: default = whole sequence per grid step (VMEM / unroll capped),
    # so per-grid-step pipeline overhead is paid once per batch shard.
    if t_block is None:
        per_t = 2 * Bb * (3 * H * io_sz + H * 4)       # double-buffered gi0 + out
        t_block = max(1, min(T, 64, (8 << 20) // max(1, per_t)))
    Tb = max(1, min(t_block, T))
    Tp = _round_up(T, Tb)

    x = jnp.zeros((Bp, Tp, E), jnp.float32).at[:B, :T, :].set(
        emb_inps.astype(jnp.float32))
    lens2 = jnp.zeros((Bp, 1), jnp.int32).at[:B, 0].set(
        real_lens.astype(jnp.int32))

    w_ih0, w_hh0, b_ih0, b_hh0 = [jnp.asarray(a, jnp.float32)
                                  for a in gru_params[0]]
    # Hoisted layer-0 input gates: one big matmul, stored time-major so the
    # kernel indexes the leading dim.
    # TODO(synk): at large B*T*3H the 'tbg' output layout costs an extra HBM
    # transpose pass; keep time-major only while profiling shows it is hidden.
    gi0 = (jnp.einsum('bte,ge->tbg', x, w_ih0)
           + b_ih0[None, None, :]).astype(io_dtype)        # (Tp, Bp, 3H)

    flat = [gi0, lens2, w_hh0.T.astype(io_dtype), b_hh0.reshape(1, 3 * H)]
    in_specs = [
        pl.BlockSpec((Tb, Bb, 3 * H), lambda b, t: (t, b, 0)),
        pl.BlockSpec((Bb, 1), lambda b, t: (b, 0)),
        pl.BlockSpec((H, 3 * H), lambda b, t: (0, 0)),
        pl.BlockSpec((1, 3 * H), lambda b, t: (0, 0)),
    ]
    # TODO(synk): mark grid-invariant weight specs pipeline_mode=pl.Buffered(1)
    # for v7x VMEM headroom once single-buffered pipeline_mode is supported here.
    for l in range(1, L):
        w_ih, w_hh, b_ih, b_hh = [jnp.asarray(a, jnp.float32)
                                  for a in gru_params[l]]
        w_blk = jnp.zeros((2 * H, 6 * H), io_dtype)
        w_blk = w_blk.at[:H, :3 * H].set(w_ih.T.astype(io_dtype))
        w_blk = w_blk.at[H:, 3 * H:].set(w_hh.T.astype(io_dtype))
        b_blk = jnp.concatenate([b_ih, b_hh]).reshape(1, 6 * H)
        flat += [w_blk, b_blk]
        in_specs += [pl.BlockSpec((2 * H, 6 * H), lambda b, t: (0, 0)),
                     pl.BlockSpec((1, 6 * H), lambda b, t: (0, 0))]

    est = (2 * Tb * Bb * 3 * H * io_sz + 2 * Tb * Bb * H * 4 + 2 * Bb * 4
           + 2 * (H * 3 * H * io_sz + 3 * H * 4)
           + 2 * (L - 1) * (2 * H * 6 * H * io_sz + 6 * H * 4)
           + L * Bb * H * 4)

    out_tm = pl.pallas_call(
        _make_gru_kernel(L, H, Tb),
        out_shape=jax.ShapeDtypeStruct((Tp, Bp, H), jnp.float32),
        grid_spec=pltpu.PrefetchScalarGridSpec(
            num_scalar_prefetch=0,
            grid=(Bp // Bb, Tp // Tb),
            in_specs=in_specs,
            out_specs=pl.BlockSpec((Tb, Bb, H), lambda b, t: (t, b, 0)),
            scratch_shapes=[pltpu.VMEM((L, Bb, H), jnp.float32)],
        ),
        compiler_params=pltpu.CompilerParams(
            # batch shards independent (megacore on v7x); time is recurrent.
            dimension_semantics=("parallel", "arbitrary"),
            vmem_limit_bytes=_vmem_limit_bytes(est),
        ),
    )(*flat)

    # (B, T, H); small tensor, transpose handled by XLA.
    return jnp.transpose(out_tm[:T, :B, :], (1, 0, 2))


# --------------------------------------------------------------------------- #
# Pallas kernel #2: hoisted vocab projection as one fully-parallel matmul.     #
# --------------------------------------------------------------------------- #
def _proj_kernel(x_ref, w_ref, b_ref, o_ref):
    o_ref[...] = (jnp.dot(x_ref[...], w_ref[...],
                          preferred_element_type=jnp.float32)
                  + b_ref[...]).astype(o_ref.dtype)


def vocab_project_pallas(context, wv, bv, *, tile_n=256, tile_m=256,
                         mxu_dtype=jnp.float32):
    """context: (B, T, Din); wv: (V, Din); bv: (V,) -> logits (B, T, V) f32."""
    B, T, Din = context.shape
    V = wv.shape[0]
    M = B * T
    io_dtype = jnp.dtype(mxu_dtype)
    io_sz = io_dtype.itemsize

    Vp = _round_up(V, 128)                       # lane-dense output stores
    tn = min(tile_n, Vp)
    Vp = _round_up(Vp, tn)
    Mp = _round_up(M, 8)                         # sublane-aligned rows
    tm = min(tile_m, Mp)
    Mp = _round_up(Mp, tm)

    x_p = jnp.zeros((Mp, Din), io_dtype).at[:M].set(
        context.reshape(M, Din).astype(io_dtype))
    w_p = jnp.zeros((Din, Vp), io_dtype).at[:, :V].set(
        jnp.asarray(wv).astype(io_dtype).T)
    b_p = jnp.zeros((1, Vp), jnp.float32).at[:, :V].set(
        jnp.asarray(bv, jnp.float32)[None, :])

    est = 2 * (tm * Din * io_sz + Din * tn * io_sz + tn * 4 + tm * tn * 4)

    out = pl.pallas_call(
        _proj_kernel,
        out_shape=jax.ShapeDtypeStruct((Mp, Vp), jnp.float32),
        grid_spec=pltpu.PrefetchScalarGridSpec(
            num_scalar_prefetch=0,
            # Vocab tile on the OUTER axis so the (Din, Vp) weight is streamed
            # from HBM exactly once; the small row tile is re-read instead.
            grid=(Vp // tn, Mp // tm),
            in_specs=[
                pl.BlockSpec((tm, Din), lambda j, i: (i, 0)),
                pl.BlockSpec((Din, tn), lambda j, i: (0, j)),
                pl.BlockSpec((1, tn), lambda j, i: (0, j)),
            ],
            out_specs=pl.BlockSpec((tm, tn), lambda j, i: (i, j)),
        ),
        compiler_params=pltpu.CompilerParams(
            dimension_semantics=("parallel", "parallel"),
            vmem_limit_bytes=_vmem_limit_bytes(est),
        ),
    )(x_p, w_p, b_p)

    return out[:M, :V].reshape(B, T, V)


# --------------------------------------------------------------------------- #
# Full module forward.                                                          #
# --------------------------------------------------------------------------- #
def model_forward(params, img_rep, targets, real_lens, *, topk_classes,
                  t_block=None, mxu_dtype=jnp.float32):
    # --- class-conditioned start token ---
    _, argmax = jax.lax.top_k(img_rep, topk_classes)                  # (B, K)
    class_emb_all = jnp.take(params['class_emb'], argmax, axis=0)     # (B, K, E)
    class_emb = jnp.mean(class_emb_all, axis=1)                       # (B, E)
    img_proj = class_emb @ params['w_img'].T + params['b_img']
    # BatchNorm1d forward (training-path batch statistics; momentum only
    # affects running stats, not the output).
    mu = jnp.mean(img_proj, axis=0, keepdims=True)
    var = jnp.mean((img_proj - mu) ** 2, axis=0, keepdims=True)
    img_proj = ((img_proj - mu) / jnp.sqrt(var + 1e-5)
                * params['bn_gamma'] + params['bn_beta'])

    # --- teacher-forced GRU inputs ---
    teacher = targets[:, :-1]
    emb_inps = jnp.concatenate(
        [img_proj[:, None, :], jnp.take(params['emb'], teacher, axis=0)],
        axis=1)                                                       # (B, T, E)

    # --- GRU recurrence (Pallas), outputs masked beyond real_lens ---
    out = gru_forward_pallas(emb_inps, real_lens, params['gru'],
                             t_block=t_block, mxu_dtype=mxu_dtype)    # (B, T, H)

    # --- enc / dec attention, vectorized over all timesteps (tiny shapes) ---
    B, T, H = out.shape
    t_idx = jnp.arange(T)
    NEG = jnp.float32(-1e30)    # finite mask value: softmax stays NaN-free at t==0

    proj_e = jnp.einsum('bth,he->bte', out, params['w_enc'])
    scr_e = jnp.einsum('bte,bke->btk', proj_e, class_emb_all)
    alpha_e = jax.nn.softmax(scr_e, axis=-1)
    cte = jnp.einsum('btk,bke->bte', alpha_e, class_emb_all)
    cte = jnp.where((t_idx == 0)[None, :, None], 0.0, cte)

    proj_d = jnp.einsum('bth,hg->btg', out, params['w_dec'])
    scr_d = jnp.einsum('btg,bsg->bts', proj_d, out)
    causal = t_idx[None, :, None] > t_idx[None, None, :]              # s < t
    scr_d = jnp.where(causal, scr_d, NEG)
    alpha_d = jax.nn.softmax(scr_d, axis=-1)
    ctd = jnp.einsum('bts,bsh->bth', alpha_d, out)
    ctd = jnp.where((t_idx == 0)[None, :, None], 0.0, ctd)

    context = jnp.concatenate([out, cte, ctd], axis=-1)               # (B, T, 2H+E)

    # --- hoisted vocab projection (Pallas, lane-padded) ---
    return vocab_project_pallas(context, params['wv'], params['bv'],
                                mxu_dtype=mxu_dtype)


# --------------------------------------------------------------------------- #
# Pure-JAX reference: direct transcription of the PyTorch forward loop.        #
# --------------------------------------------------------------------------- #
def model_forward_ref(params, img_rep, targets, real_lens, *, topk_classes):
    _, argmax = jax.lax.top_k(img_rep, topk_classes)
    class_emb_all = jnp.take(params['class_emb'], argmax, axis=0)
    class_emb = jnp.mean(class_emb_all, axis=1)
    img_proj = class_emb @ params['w_img'].T + params['b_img']
    mu = jnp.mean(img_proj, axis=0, keepdims=True)
    var = jnp.mean((img_proj - mu) ** 2, axis=0, keepdims=True)
    img_proj = ((img_proj - mu) / jnp.sqrt(var + 1e-5)
                * params['bn_gamma'] + params['bn_beta'])

    teacher = targets[:, :-1]
    emb_inps = jnp.concatenate(
        [img_proj[:, None, :], jnp.take(params['emb'], teacher, axis=0)], axis=1)
    B, T, E = emb_inps.shape
    H = params['gru'][0][1].shape[1]
    L = len(params['gru'])

    h = jnp.zeros((L, B, H), jnp.float32)
    outs = []
    for t in range(T):
        x = emb_inps[:, t, :]
        for l in range(L):
            w_ih, w_hh, b_ih, b_hh = params['gru'][l]
            gi = x @ w_ih.T + b_ih
            gh = h[l] @ w_hh.T + b_hh
            r = jax.nn.sigmoid(gi[:, :H] + gh[:, :H])
            z = jax.nn.sigmoid(gi[:, H:2 * H] + gh[:, H:2 * H])
            n = jnp.tanh(gi[:, 2 * H:] + r * gh[:, 2 * H:])
            hn = (1.0 - z) * n + z * h[l]
            h = h.at[l].set(hn)
            x = hn
        m = (t < real_lens).astype(jnp.float32)[:, None]
        outs.append(x * m)
    out = jnp.stack(outs, axis=1)

    cte_list, ctd_list = [], []
    for t in range(T):
        if t == 0:
            cte_list.append(jnp.zeros((B, 1, E), jnp.float32))
            ctd_list.append(jnp.zeros((B, 1, H), jnp.float32))
        else:
            ht = out[:, t:t + 1, :]
            bmm1 = jnp.einsum('bih,he->bie', ht, params['w_enc'])
            scr = jnp.einsum('bie,bke->bik', bmm1, class_emb_all)[:, 0, :]
            alpha = jax.nn.softmax(scr, axis=1)[:, :, None]
            cte_list.append(jnp.sum(alpha * class_emb_all, axis=1, keepdims=True))
            prev = out[:, :t, :]
            bmm1d = jnp.einsum('bih,hg->big', ht, params['w_dec'])
            scrd = jnp.einsum('big,bsg->bis', bmm1d, prev)[:, 0, :]
            alphad = jax.nn.softmax(scrd, axis=1)[:, :, None]
            ctd_list.append(jnp.sum(alphad * prev, axis=1, keepdims=True))
    cte = jnp.concatenate(cte_list, axis=1)
    ctd = jnp.concatenate(ctd_list, axis=1)
    context = jnp.concatenate([out, cte, ctd], axis=2)
    return context @ params['wv'].T + params['bv']


if __name__ == "__main__":
    key = jax.random.PRNGKey(0)
    ks = jax.random.split(key, 24)

    B, T = 6, 8          # batch, teacher-forced sequence length (= targets.shape[1])
    E = 32               # word_vec_size
    H = 32               # output_size (GRU hidden)
    L = 2                # num_layers
    V = 50               # vocab_size
    K = 5                # topk_classes
    FEAT = 1000          # img_feature_size (class-logit dim; indexes class_emb)

    params = {
        'class_emb': jax.random.normal(ks[0], (1000, E), jnp.float32) * 0.1,
        'w_img': jax.random.normal(ks[1], (E, E), jnp.float32) * 0.1,
        'b_img': jax.random.normal(ks[2], (E,), jnp.float32) * 0.1,
        'emb': jax.random.normal(ks[3], (V, E), jnp.float32) * 0.1,
        'bn_gamma': 1.0 + 0.1 * jax.random.normal(ks[18], (E,), jnp.float32),
        'bn_beta': 0.1 * jax.random.normal(ks[19], (E,), jnp.float32),
        'w_enc': jax.random.uniform(ks[12], (H, E), jnp.float32),   # torch.rand
        'w_dec': jax.random.uniform(ks[13], (H, H), jnp.float32),   # torch.rand
        'wv': jax.random.normal(ks[14], (V, 2 * H + E), jnp.float32) * 0.1,
        'bv': jax.random.normal(ks[15], (V,), jnp.float32) * 0.1,
    }
    gru = []
    for l in range(L):
        in_dim = E if l == 0 else H
        w_ih = jax.random.normal(ks[4 + 4 * l], (3 * H, in_dim), jnp.float32) * 0.1
        w_hh = jax.random.normal(ks[5 + 4 * l], (3 * H, H), jnp.float32) * 0.1
        b_ih = jax.random.normal(ks[6 + 4 * l], (3 * H,), jnp.float32) * 0.1
        b_hh = jax.random.normal(ks[7 + 4 * l], (3 * H,), jnp.float32) * 0.1
        gru.append((w_ih, w_hh, b_ih, b_hh))
    params['gru'] = gru

    img_rep = jax.random.normal(ks[16], (B, FEAT), jnp.float32)
    targets = jax.random.randint(ks[17], (B, T), 0, V, jnp.int32)
    real_lens = jnp.array([8, 6, 5, 3, 2, 1], jnp.int32)

    # f32 MXU-operand path (default).
    fwd = jax.jit(functools.partial(model_forward, topk_classes=K))
    out = jax.block_until_ready(fwd(params, img_rep, targets, real_lens))
    assert out.shape == (B, T, V)

    # Reference at 'highest' matmul precision; the production path runs the XLA
    # einsums at default precision, so the tolerance is loosened accordingly.
    with jax.default_matmul_precision('highest'):
        ref = model_forward_ref(params, img_rep, targets, real_lens,
                                topk_classes=K)
    ref = np.asarray(jax.block_until_ready(ref))

    np.testing.assert_allclose(np.asarray(out), ref, rtol=3e-2, atol=3e-2)

    # bf16 MXU-operand path (recommended throughput setting on v6e/v7x);
    # f32 accumulation and state, so only a modest extra tolerance is needed.
    fwd_bf16 = jax.jit(functools.partial(model_forward, topk_classes=K,
                                         mxu_dtype=jnp.bfloat16))
    out_bf16 = jax.block_until_ready(fwd_bf16(params, img_rep, targets, real_lens))
    np.testing.assert_allclose(np.asarray(out_bf16), ref, rtol=8e-2, atol=8e-2)

    print("KERNEL_OK")
</pallas_src>

<mosaic_0001>
module attributes {stable_mosaic.version = 11 : i64} {
  func.func @kernel(%arg0: i32, %arg1: i32, %arg2: memref<8x8x96xf32, #tpu.memory_space<vmem>>, %arg3: memref<8x1xi32, #tpu.memory_space<vmem>>, %arg4: memref<32x96xf32, #tpu.memory_space<vmem>>, %arg5: memref<1x96xf32, #tpu.memory_space<vmem>>, %arg6: memref<64x192xf32, #tpu.memory_space<vmem>>, %arg7: memref<1x192xf32, #tpu.memory_space<vmem>>, %arg8: memref<8x8x32xf32, #tpu.memory_space<vmem>>, %arg9: memref<2x8x32xf32, #tpu.memory_space<vmem>>) attributes {dimension_semantics = [#tpu.dimension_semantics<parallel>, #tpu.dimension_semantics<arbitrary>], iteration_bounds = array<i64: 1, 1>, scalar_prefetch = 0 : i64, scratch_operands = 1 : i64, tpu.core_type = #tpu.core_type<tc>, window_params = [{transform_indices = @transform_0, window_bounds = array<i64: 8, 8, 96>}, {transform_indices = @transform_1, window_bounds = array<i64: 8, 1>}, {pipeline_mode = #tpu.pipeline_mode<synchronous>, transform_indices = @transform_2, window_bounds = array<i64: 32, 96>}, {pipeline_mode = #tpu.pipeline_mode<synchronous>, transform_indices = @transform_3, window_bounds = array<i64: 1, 96>}, {pipeline_mode = #tpu.pipeline_mode<synchronous>, transform_indices = @transform_4, window_bounds = array<i64: 64, 192>}, {pipeline_mode = #tpu.pipeline_mode<synchronous>, transform_indices = @transform_5, window_bounds = array<i64: 1, 192>}, {transform_indices = @transform_6, window_bounds = array<i64: 8, 8, 32>}]} {
    %c0_i32 = arith.constant 0 : i32
    %0 = arith.cmpi eq, %arg1, %c0_i32 : i32
    %1 = arith.extui %0 : i1 to i32
    %c0_i32_0 = arith.constant 0 : i32
    %2 = arith.cmpi ne, %1, %c0_i32_0 : i32
    scf.if %2 {
      %cst_211 = arith.constant 0.000000e+00 : f32
      %661 = vector.broadcast %cst_211 : f32 to vector<2x8x32xf32>
      %c0_212 = arith.constant 0 : index
      %c0_213 = arith.constant 0 : index
      %c0_214 = arith.constant 0 : index
      %662 = vector.load %arg9[%c0_212, %c0_213, %c0_214] : memref<2x8x32xf32, #tpu.memory_space<vmem>>, vector<2x8x32xf32>
      tpu.vector_store %arg9[%c0_212, %c0_213, %c0_214], %661 {strides = array<i32>} : memref<2x8x32xf32, #tpu.memory_space<vmem>>, vector<2x8x32xf32>,
    } else {
    }
    %c0 = arith.constant 0 : index
    %c0_1 = arith.constant 0 : index
    %3 = vector.load %arg4[%c0, %c0_1] : memref<32x96xf32, #tpu.memory_space<vmem>>, vector<32x96xf32>
    %c0_2 = arith.constant 0 : index
    %c0_3 = arith.constant 0 : index
    %4 = vector.load %arg5[%c0_2, %c0_3] : memref<1x96xf32, #tpu.memory_space<vmem>>, vector<1x96xf32>
    %5 = vector.shape_cast %4 : vector<1x96xf32> to vector<1x96xf32>
    %6 = vector.broadcast %5 : vector<1x96xf32> to vector<8x96xf32>
    %c0_4 = arith.constant 0 : index
    %c0_5 = arith.constant 0 : index
    %7 = vector.load %arg3[%c0_4, %c0_5] : memref<8x1xi32, #tpu.memory_space<vmem>>, vector<8x1xi32>
    %c8_i32 = arith.constant 8 : i32
    %8 = arith.muli %arg1, %c8_i32 : i32
    %c0_6 = arith.constant 0 : index
    %c0_7 = arith.constant 0 : index
    %9 = vector.load %arg6[%c0_6, %c0_7] : memref<64x192xf32, #tpu.memory_space<vmem>>, vector<64x192xf32>
    %c0_8 = arith.constant 0 : index
    %c0_9 = arith.constant 0 : index
    %10 = vector.load %arg7[%c0_8, %c0_9] : memref<1x192xf32, #tpu.memory_space<vmem>>, vector<1x192xf32>
    %11 = vector.shape_cast %10 : vector<1x192xf32> to vector<1x192xf32>
    %12 = vector.broadcast %11 : vector<1x192xf32> to vector<8x192xf32>
    %c0_10 = arith.constant 0 : index
    %c0_11 = arith.constant 0 : index
    %c0_12 = arith.constant 0 : index
    %13 = vector.load %arg9[%c0_10, %c0_11, %c0_12] : memref<2x8x32xf32, #tpu.memory_space<vmem>>, vector<1x8x32xf32>
    %14 = vector.shape_cast %13 : vector<1x8x32xf32> to vector<8x32xf32>
    %cst = arith.constant dense<0.000000e+00> : vector<8x96xf32>
    %15 = tpu.matmul %14, %3, %cst {dimension_numbers = #tpu.dot_dimension_numbers<[1], [0], [0], [1], [0, 0, 1, 1], [], []>} : vector<8x32xf32>, vector<32x96xf32>, vector<8x96xf32> -> vector<8x96xf32>
    %16 = arith.addf %15, %6 : vector<8x96xf32>
    %c0_13 = arith.constant 0 : index
    %c0_14 = arith.constant 0 : index
    %c0_15 = arith.constant 0 : index
    %17 = vector.load %arg2[%c0_13, %c0_14, %c0_15] : memref<8x8x96xf32, #tpu.memory_space<vmem>>, vector<1x8x96xf32>
    %18 = vector.shape_cast %17 : vector<1x8x96xf32> to vector<8x96xf32>
    %19 = vector.extract_strided_slice %18 {offsets = [0, 0], sizes = [8, 32], strides = [1, 1]} : vector<8x96xf32> to vector<8x32xf32>
    %20 = vector.extract_strided_slice %16 {offsets = [0, 0], sizes = [8, 32], strides = [1, 1]} : vector<8x96xf32> to vector<8x32xf32>
    %21 = arith.addf %19, %20 : vector<8x32xf32>
    %22 = arith.negf %21 : vector<8x32xf32>
    %23 = math.exp %22 : vector<8x32xf32>
    %cst_16 = arith.constant 1.000000e+00 : f32
    %24 = vector.broadcast %cst_16 : f32 to vector<8x32xf32>
    %25 = arith.addf %24, %23 : vector<8x32xf32>
    %26 = arith.divf %24, %25 : vector<8x32xf32>
    %27 = vector.extract_strided_slice %18 {offsets = [0, 32], sizes = [8, 32], strides = [1, 1]} : vector<8x96xf32> to vector<8x32xf32>
    %28 = vector.extract_strided_slice %16 {offsets = [0, 32], sizes = [8, 32], strides = [1, 1]} : vector<8x96xf32> to vector<8x32xf32>
    %29 = arith.addf %27, %28 : vector<8x32xf32>
    %30 = arith.negf %29 : vector<8x32xf32>
    %31 = math.exp %30 : vector<8x32xf32>
    %cst_17 = arith.constant 1.000000e+00 : f32
    %32 = vector.broadcast %cst_17 : f32 to vector<8x32xf32>
    %33 = arith.addf %32, %31 : vector<8x32xf32>
    %34 = arith.divf %32, %33 : vector<8x32xf32>
    %35 = vector.extract_strided_slice %18 {offsets = [0, 64], sizes = [8, 32], strides = [1, 1]} : vector<8x96xf32> to vector<8x32xf32>
    %36 = vector.extract_strided_slice %16 {offsets = [0, 64], sizes = [8, 32], strides = [1, 1]} : vector<8x96xf32> to vector<8x32xf32>
    %37 = arith.mulf %26, %36 : vector<8x32xf32>
    %38 = arith.addf %35, %37 : vector<8x32xf32>
    %39 = math.tanh %38 : vector<8x32xf32>
    %cst_18 = arith.constant 1.000000e+00 : f32
    %40 = vector.broadcast %cst_18 : f32 to vector<8x32xf32>
    %41 = arith.subf %40, %34 : vector<8x32xf32>
    %42 = arith.mulf %41, %39 : vector<8x32xf32>
    %43 = arith.mulf %34, %14 : vector<8x32xf32>
    %44 = arith.addf %42, %43 : vector<8x32xf32>
    %c0_19 = arith.constant 0 : index
    %c0_20 = arith.constant 0 : index
    %c0_21 = arith.constant 0 : index
    %45 = vector.load %arg9[%c0_19, %c0_20, %c0_21] : memref<2x8x32xf32, #tpu.memory_space<vmem>>, vector<1x8x32xf32>
    %46 = vector.shape_cast %45 : vector<1x8x32xf32> to vector<8x32xf32>
    %47 = vector.shape_cast %44 : vector<8x32xf32> to vector<1x8x32xf32>
    tpu.vector_store %arg9[%c0_19, %c0_20, %c0_21], %47 {strides = array<i32>} : memref<2x8x32xf32, #tpu.memory_space<vmem>>, vector<1x8x32xf32>,
    %c1 = arith.constant 1 : index
    %c0_22 = arith.constant 0 : index
    %c0_23 = arith.constant 0 : index
    %48 = vector.load %arg9[%c1, %c0_22, %c0_23] : memref<2x8x32xf32, #tpu.memory_space<vmem>>, vector<1x8x32xf32>
    %49 = vector.shape_cast %48 : vector<1x8x32xf32> to vector<8x32xf32>
    %50 = tpu.concatenate %44, %49 in 1 : vector<8x32xf32>, vector<8x32xf32> -> vector<8x64xf32>
    %cst_24 = arith.constant dense<0.000000e+00> : vector<8x192xf32>
    %51 = tpu.matmul %50, %9, %cst_24 {dimension_numbers = #tpu.dot_dimension_numbers<[1], [0], [0], [1], [0, 0, 1, 1], [], []>} : vector<8x64xf32>, vector<64x192xf32>, vector<8x192xf32> -> vector<8x192xf32>
    %52 = arith.addf %51, %12 : vector<8x192xf32>
    %53 = vector.extract_strided_slice %52 {offsets = [0, 0], sizes = [8, 96], strides = [1, 1]} : vector<8x192xf32> to vector<8x96xf32>
    %54 = vector.extract_strided_slice %52 {offsets = [0, 96], sizes = [8, 96], strides = [1, 1]} : vector<8x192xf32> to vector<8x96xf32>
    %55 = vector.extract_strided_slice %53 {offsets = [0, 0], sizes = [8, 32], strides = [1, 1]} : vector<8x96xf32> to vector<8x32xf32>
    %56 = vector.extract_strided_slice %54 {offsets = [0, 0], sizes = [8, 32], strides = [1, 1]} : vector<8x96xf32> to vector<8x32xf32>
    %57 = arith.addf %55, %56 : vector<8x32xf32>
    %58 = arith.negf %57 : vector<8x32xf32>
    %59 = math.exp %58 : vector<8x32xf32>
    %cst_25 = arith.constant 1.000000e+00 : f32
    %60 = vector.broadcast %cst_25 : f32 to vector<8x32xf32>
    %61 = arith.addf %60, %59 : vector<8x32xf32>
    %62 = arith.divf %60, %61 : vector<8x32xf32>
    %63 = vector.extract_strided_slice %53 {offsets = [0, 32], sizes = [8, 32], strides = [1, 1]} : vector<8x96xf32> to vector<8x32xf32>
    %64 = vector.extract_strided_slice %54 {offsets = [0, 32], sizes = [8, 32], strides = [1, 1]} : vector<8x96xf32> to vector<8x32xf32>
    %65 = arith.addf %63, %64 : vector<8x32xf32>
    %66 = arith.negf %65 : vector<8x32xf32>
    %67 = math.exp %66 : vector<8x32xf32>
    %cst_26 = arith.constant 1.000000e+00 : f32
    %68 = vector.broadcast %cst_26 : f32 to vector<8x32xf32>
    %69 = arith.addf %68, %67 : vector<8x32xf32>
    %70 = arith.divf %68, %69 : vector<8x32xf32>
    %71 = vector.extract_strided_slice %53 {offsets = [0, 64], sizes = [8, 32], strides = [1, 1]} : vector<8x96xf32> to vector<8x32xf32>
    %72 = vector.extract_strided_slice %54 {offsets = [0, 64], sizes = [8, 32], strides = [1, 1]} : vector<8x96xf32> to vector<8x32xf32>
    %73 = arith.mulf %62, %72 : vector<8x32xf32>
    %74 = arith.addf %71, %73 : vector<8x32xf32>
    %75 = math.tanh %74 : vector<8x32xf32>
    %cst_27 = arith.constant 1.000000e+00 : f32
    %76 = vector.broadcast %cst_27 : f32 to vector<8x32xf32>
    %77 = arith.subf %76, %70 : vector<8x32xf32>
    %78 = arith.mulf %77, %75 : vector<8x32xf32>
    %79 = arith.mulf %70, %49 : vector<8x32xf32>
    %80 = arith.addf %78, %79 : vector<8x32xf32>
    %c1_28 = arith.constant 1 : index
    %c0_29 = arith.constant 0 : index
    %c0_30 = arith.constant 0 : index
    %81 = vector.load %arg9[%c1_28, %c0_29, %c0_30] : memref<2x8x32xf32, #tpu.memory_space<vmem>>, vector<1x8x32xf32>
    %82 = vector.shape_cast %81 : vector<1x8x32xf32> to vector<8x32xf32>
    %83 = vector.shape_cast %80 : vector<8x32xf32> to vector<1x8x32xf32>
    tpu.vector_store %arg9[%c1_28, %c0_29, %c0_30], %83 {strides = array<i32>} : memref<2x8x32xf32, #tpu.memory_space<vmem>>, vector<1x8x32xf32>,
    %c0_i32_31 = arith.constant 0 : i32
    %84 = arith.addi %8, %c0_i32_31 : i32
    %85 = vector.broadcast %84 : i32 to vector<8x1xi32>
    %86 = arith.cmpi slt, %85, %7 : vector<8x1xi32>
    %87 = arith.extui %86 : vector<8x1xi1> to vector<8x1xi32>
    %88 = arith.sitofp %87 : vector<8x1xi32> to vector<8x1xf32>
    %89 = vector.broadcast %88 : vector<8x1xf32> to vector<8x32xf32>
    %90 = arith.mulf %80, %89 : vector<8x32xf32>
    %c0_32 = arith.constant 0 : index
    %c0_33 = arith.constant 0 : index
    %c0_34 = arith.constant 0 : index
    %91 = vector.load %arg8[%c0_32, %c0_33, %c0_34] : memref<8x8x32xf32, #tpu.memory_space<vmem>>, vector<1x8x32xf32>
    %92 = vector.shape_cast %91 : vector<1x8x32xf32> to vector<8x32xf32>
    %93 = vector.shape_cast %90 : vector<8x32xf32> to vector<1x8x32xf32>
    tpu.vector_store %arg8[%c0_32, %c0_33, %c0_34], %93 {strides = array<i32>} : memref<8x8x32xf32, #tpu.memory_space<vmem>>, vector<1x8x32xf32>,
    %c0_35 = arith.constant 0 : index
    %c0_36 = arith.constant 0 : index
    %c0_37 = arith.constant 0 : index
    %94 = vector.load %arg9[%c0_35, %c0_36, %c0_37] : memref<2x8x32xf32, #tpu.memory_space<vmem>>, vector<1x8x32xf32>
    %95 = vector.shape_cast %94 : vector<1x8x32xf32> to vector<8x32xf32>
    %cst_38 = arith.constant dense<0.000000e+00> : vector<8x96xf32>
    %96 = tpu.matmul %95, %3, %cst_38 {dimension_numbers = #tpu.dot_dimension_numbers<[1], [0], [0], [1], [0, 0, 1, 1], [], []>} : vector<8x32xf32>, vector<32x96xf32>, vector<8x96xf32> -> vector<8x96xf32>
    %97 = arith.addf %96, %6 : vector<8x96xf32>
    %c1_39 = arith.constant 1 : index
    %c0_40 = arith.constant 0 : index
    %c0_41 = arith.constant 0 : index
    %98 = vector.load %arg2[%c1_39, %c0_40, %c0_41] : memref<8x8x96xf32, #tpu.memory_space<vmem>>, vector<1x8x96xf32>
    %99 = vector.shape_cast %98 : vector<1x8x96xf32> to vector<8x96xf32>
    %100 = vector.extract_strided_slice %99 {offsets = [0, 0], sizes = [8, 32], strides = [1, 1]} : vector<8x96xf32> to vector<8x32xf32>
    %101 = vector.extract_strided_slice %97 {offsets = [0, 0], sizes = [8, 32], strides = [1, 1]} : vector<8x96xf32> to vector<8x32xf32>
    %102 = arith.addf %100, %101 : vector<8x32xf32>
    %103 = arith.negf %102 : vector<8x32xf32>
    %104 = math.exp %103 : vector<8x32xf32>
    %cst_42 = arith.constant 1.000000e+00 : f32
    %105 = vector.broadcast %cst_42 : f32 to vector<8x32xf32>
    %106 = arith.addf %105, %104 : vector<8x32xf32>
    %107 = arith.divf %105, %106 : vector<8x32xf32>
    %108 = vector.extract_strided_slice %99 {offsets = [0, 32], sizes = [8, 32], strides = [1, 1]} : vector<8x96xf32> to vector<8x32xf32>
    %109 = vector.extract_strided_slice %97 {offsets = [0, 32], sizes = [8, 32], strides = [1, 1]} : vector<8x96xf32> to vector<8x32xf32>
    %110 = arith.addf %108, %109 : vector<8x32xf32>
    %111 = arith.negf %110 : vector<8x32xf32>
    %112 = math.exp %111 : vector<8x32xf32>
    %cst_43 = arith.constant 1.000000e+00 : f32
    %113 = vector.broadcast %cst_43 : f32 to vector<8x32xf32>
    %114 = arith.addf %113, %112 : vector<8x32xf32>
    %115 = arith.divf %113, %114 : vector<8x32xf32>
    %116 = vector.extract_strided_slice %99 {offsets = [0, 64], sizes = [8, 32], strides = [1, 1]} : vector<8x96xf32> to vector<8x32xf32>
    %117 = vector.extract_strided_slice %97 {offsets = [0, 64], sizes = [8, 32], strides = [1, 1]} : vector<8x96xf32> to vector<8x32xf32>
    %118 = arith.mulf %107, %117 : vector<8x32xf32>
    %119 = arith.addf %116, %118 : vector<8x32xf32>
    %120 = math.tanh %119 : vector<8x32xf32>
    %cst_44 = arith.constant 1.000000e+00 : f32
    %121 = vector.broadcast %cst_44 : f32 to vector<8x32xf32>
    %122 = arith.subf %121, %115 : vector<8x32xf32>
    %123 = arith.mulf %122, %120 : vector<8x32xf32>
    %124 = arith.mulf %115, %95 : vector<8x32xf32>
    %125 = arith.addf %123, %124 : vector<8x32xf32>
    %c0_45 = arith.constant 0 : index
    %c0_46 = arith.constant 0 : index
    %c0_47 = arith.constant 0 : index
    %126 = vector.load %arg9[%c0_45, %c0_46, %c0_47] : memref<2x8x32xf32, #tpu.memory_space<vmem>>, vector<1x8x32xf32>
    %127 = vector.shape_cast %126 : vector<1x8x32xf32> to vector<8x32xf32>
    %128 = vector.shape_cast %125 : vector<8x32xf32> to vector<1x8x32xf32>
    tpu.vector_store %arg9[%c0_45, %c0_46, %c0_47], %128 {strides = array<i32>} : memref<2x8x32xf32, #tpu.memory_space<vmem>>, vector<1x8x32xf32>,
    %c1_48 = arith.constant 1 : index
    %c0_49 = arith.constant 0 : index
    %c0_50 = arith.constant 0 : index
    %129 = vector.load %arg9[%c1_48, %c0_49, %c0_50] : memref<2x8x32xf32, #tpu.memory_space<vmem>>, vector<1x8x32xf32>
    %130 = vector.shape_cast %129 : vector<1x8x32xf32> to vector<8x32xf32>
    %131 = tpu.concatenate %125, %130 in 1 : vector<8x32xf32>, vector<8x32xf32> -> vector<8x64xf32>
    %cst_51 = arith.constant dense<0.000000e+00> : vector<8x192xf32>
    %132 = tpu.matmul %131, %9, %cst_51 {dimension_numbers = #tpu.dot_dimension_numbers<[1], [0], [0], [1], [0, 0, 1, 1], [], []>} : vector<8x64xf32>, vector<64x192xf32>, vector<8x192xf32> -> vector<8x192xf32>
    %133 = arith.addf %132, %12 : vector<8x192xf32>
    %134 = vector.extract_strided_slice %133 {offsets = [0, 0], sizes = [8, 96], strides = [1, 1]} : vector<8x192xf32> to vector<8x96xf32>
    %135 = vector.extract_strided_slice %133 {offsets = [0, 96], sizes = [8, 96], strides = [1, 1]} : vector<8x192xf32> to vector<8x96xf32>
    %136 = vector.extract_strided_slice %134 {offsets = [0, 0], sizes = [8, 32], strides = [1, 1]} : vector<8x96xf32> to vector<8x32xf32>
    %137 = vector.extract_strided_slice %135 {offsets = [0, 0], sizes = [8, 32], strides = [1, 1]} : vector<8x96xf32> to vector<8x32xf32>
    %138 = arith.addf %136, %137 : vector<8x32xf32>
    %139 = arith.negf %138 : vector<8x32xf32>
    %140 = math.exp %139 : vector<8x32xf32>
    %cst_52 = arith.constant 1.000000e+00 : f32
    %141 = vector.broadcast %cst_52 : f32 to vector<8x32xf32>
    %142 = arith.addf %141, %140 : vector<8x32xf32>
    %143 = arith.divf %141, %142 : vector<8x32xf32>
    %144 = vector.extract_strided_slice %134 {offsets = [0, 32], sizes = [8, 32], strides = [1, 1]} : vector<8x96xf32> to vector<8x32xf32>
    %145 = vector.extract_strided_slice %135 {offsets = [0, 32], sizes = [8, 32], strides = [1, 1]} : vector<8x96xf32> to vector<8x32xf32>
    %146 = arith.addf %144, %145 : vector<8x32xf32>
    %147 = arith.negf %146 : vector<8x32xf32>
    %148 = math.exp %147 : vector<8x32xf32>
    %cst_53 = arith.constant 1.000000e+00 : f32
    %149 = vector.broadcast %cst_53 : f32 to vector<8x32xf32>
    %150 = arith.addf %149, %148 : vector<8x32xf32>
    %151 = arith.divf %149, %150 : vector<8x32xf32>
    %152 = vector.extract_strided_slice %134 {offsets = [0, 64], sizes = [8, 32], strides = [1, 1]} : vector<8x96xf32> to vector<8x32xf32>
    %153 = vector.extract_strided_slice %135 {offsets = [0, 64], sizes = [8, 32], strides = [1, 1]} : vector<8x96xf32> to vector<8x32xf32>
    %154 = arith.mulf %143, %153 : vector<8x32xf32>
    %155 = arith.addf %152, %154 : vector<8x32xf32>
    %156 = math.tanh %155 : vector<8x32xf32>
    %cst_54 = arith.constant 1.000000e+00 : f32
    %157 = vector.broadcast %cst_54 : f32 to vector<8x32xf32>
    %158 = arith.subf %157, %151 : vector<8x32xf32>
    %159 = arith.mulf %158, %156 : vector<8x32xf32>
    %160 = arith.mulf %151, %130 : vector<8x32xf32>
    %161 = arith.addf %159, %160 : vector<8x32xf32>
    %c1_55 = arith.constant 1 : index
    %c0_56 = arith.constant 0 : index
    %c0_57 = arith.constant 0 : index
    %162 = vector.load %arg9[%c1_55, %c0_56, %c0_57] : memref<2x8x32xf32, #tpu.memory_space<vmem>>, vector<1x8x32xf32>
    %163 = vector.shape_cast %162 : vector<1x8x32xf32> to vector<8x32xf32>
    %164 = vector.shape_cast %161 : vector<8x32xf32> to vector<1x8x32xf32>
    tpu.vector_store %arg9[%c1_55, %c0_56, %c0_57], %164 {strides = array<i32>} : memref<2x8x32xf32, #tpu.memory_space<vmem>>, vector<1x8x32xf32>,
    %c1_i32 = arith.constant 1 : i32
    %165 = arith.addi %8, %c1_i32 : i32
    %166 = vector.broadcast %165 : i32 to vector<8x1xi32>
    %167 = arith.cmpi slt, %166, %7 : vector<8x1xi32>
    %168 = arith.extui %167 : vector<8x1xi1> to vector<8x1xi32>
    %169 = arith.sitofp %168 : vector<8x1xi32> to vector<8x1xf32>
    %170 = vector.broadcast %169 : vector<8x1xf32> to vector<8x32xf32>
    %171 = arith.mulf %161, %170 : vector<8x32xf32>
    %c1_58 = arith.constant 1 : index
    %c0_59 = arith.constant 0 : index
    %c0_60 = arith.constant 0 : index
    %172 = vector.load %arg8[%c1_58, %c0_59, %c0_60] : memref<8x8x32xf32, #tpu.memory_space<vmem>>, vector<1x8x32xf32>
    %173 = vector.shape_cast %172 : vector<1x8x32xf32> to vector<8x32xf32>
    %174 = vector.shape_cast %171 : vector<8x32xf32> to vector<1x8x32xf32>
    tpu.vector_store %arg8[%c1_58, %c0_59, %c0_60], %174 {strides = array<i32>} : memref<8x8x32xf32, #tpu.memory_space<vmem>>, vector<1x8x32xf32>,
    %c0_61 = arith.constant 0 : index
    %c0_62 = arith.constant 0 : index
    %c0_63 = arith.constant 0 : index
    %175 = vector.load %arg9[%c0_61, %c0_62, %c0_63] : memref<2x8x32xf32, #tpu.memory_space<vmem>>, vector<1x8x32xf32>
    %176 = vector.shape_cast %175 : vector<1x8x32xf32> to vector<8x32xf32>
    %cst_64 = arith.constant dense<0.000000e+00> : vector<8x96xf32>
    %177 = tpu.matmul %176, %3, %cst_64 {dimension_numbers = #tpu.dot_dimension_numbers<[1], [0], [0], [1], [0, 0, 1, 1], [], []>} : vector<8x32xf32>, vector<32x96xf32>, vector<8x96xf32> -> vector<8x96xf32>
    %178 = arith.addf %177, %6 : vector<8x96xf32>
    %c2 = arith.constant 2 : index
    %c0_65 = arith.constant 0 : index
    %c0_66 = arith.constant 0 : index
    %179 = vector.load %arg2[%c2, %c0_65, %c0_66] : memref<8x8x96xf32, #tpu.memory_space<vmem>>, vector<1x8x96xf32>
    %180 = vector.shape_cast %179 : vector<1x8x96xf32> to vector<8x96xf32>
    %181 = vector.extract_strided_slice %180 {offsets = [0, 0], sizes = [8, 32], strides = [1, 1]} : vector<8x96xf32> to vector<8x32xf32>
    %182 = vector.extract_strided_slice %178 {offsets = [0, 0], sizes = [8, 32], strides = [1, 1]} : vector<8x96xf32> to vector<8x32xf32>
    %183 = arith.addf %181, %182 : vector<8x32xf32>
    %184 = arith.negf %183 : vector<8x32xf32>
    %185 = math.exp %184 : vector<8x32xf32>
    %cst_67 = arith.constant 1.000000e+00 : f32
    %186 = vector.broadcast %cst_67 : f32 to vector<8x32xf32>
    %187 = arith.addf %186, %185 : vector<8x32xf32>
    %188 = arith.divf %186, %187 : vector<8x32xf32>
    %189 = vector.extract_strided_slice %180 {offsets = [0, 32], sizes = [8, 32], strides = [1, 1]} : vector<8x96xf32> to vector<8x32xf32>
    %190 = vector.extract_strided_slice %178 {offsets = [0, 32], sizes = [8, 32], strides = [1, 1]} : vector<8x96xf32> to vector<8x32xf32>
    %191 = arith.addf %189, %190 : vector<8x32xf32>
    %192 = arith.negf %191 : vector<8x32xf32>
    %193 = math.exp %192 : vector<8x32xf32>
    %cst_68 = arith.constant 1.000000e+00 : f32
    %194 = vector.broadcast %cst_68 : f32 to vector<8x32xf32>
    %195 = arith.addf %194, %193 : vector<8x32xf32>
    %196 = arith.divf %194, %195 : vector<8x32xf32>
    %197 = vector.extract_strided_slice %180 {offsets = [0, 64], sizes = [8, 32], strides = [1, 1]} : vector<8x96xf32> to vector<8x32xf32>
    %198 = vector.extract_strided_slice %178 {offsets = [0, 64], sizes = [8, 32], strides = [1, 1]} : vector<8x96xf32> to vector<8x32xf32>
    %199 = arith.mulf %188, %198 : vector<8x32xf32>
    %200 = arith.addf %197, %199 : vector<8x32xf32>
    %201 = math.tanh %200 : vector<8x32xf32>
    %cst_69 = arith.constant 1.000000e+00 : f32
    %202 = vector.broadcast %cst_69 : f32 to vector<8x32xf32>
    %203 = arith.subf %202, %196 : vector<8x32xf32>
    %204 = arith.mulf %203, %201 : vector<8x32xf32>
    %205 = arith.mulf %196, %176 : vector<8x32xf32>
    %206 = arith.addf %204, %205 : vector<8x32xf32>
    %c0_70 = arith.constant 0 : index
    %c0_71 = arith.constant 0 : index
    %c0_72 = arith.constant 0 : index
    %207 = vector.load %arg9[%c0_70, %c0_71, %c0_72] : memref<2x8x32xf32, #tpu.memory_space<vmem>>, vector<1x8x32xf32>
    %208 = vector.shape_cast %207 : vector<1x8x32xf32> to vector<8x32xf32>
    %209 = vector.shape_cast %206 : vector<8x32xf32> to vector<1x8x32xf32>
    tpu.vector_store %arg9[%c0_70, %c0_71, %c0_72], %209 {strides = array<i32>} : memref<2x8x32xf32, #tpu.memory_space<vmem>>, vector<1x8x32xf32>,
    %c1_73 = arith.constant 1 : index
    %c0_74 = arith.constant 0 : index
    %c0_75 = arith.constant 0 : index
    %210 = vector.load %arg9[%c1_73, %c0_74, %c0_75] : memref<2x8x32xf32, #tpu.memory_space<vmem>>, vector<1x8x32xf32>
    %211 = vector.shape_cast %210 : vector<1x8x32xf32> to vector<8x32xf32>
    %212 = tpu.concatenate %206, %211 in 1 : vector<8x32xf32>, vector<8x32xf32> -> vector<8x64xf32>
    %cst_76 = arith.constant dense<0.000000e+00> : vector<8x192xf32>
    %213 = tpu.matmul %212, %9, %cst_76 {dimension_numbers = #tpu.dot_dimension_numbers<[1], [0], [0], [1], [0, 0, 1, 1], [], []>} : vector<8x64xf32>, vector<64x192xf32>, vector<8x192xf32> -> vector<8x192xf32>
    %214 = arith.addf %213, %12 : vector<8x192xf32>
    %215 = vector.extract_strided_slice %214 {offsets = [0, 0], sizes = [8, 96], strides = [1, 1]} : vector<8x192xf32> to vector<8x96xf32>
    %216 = vector.extract_strided_slice %214 {offsets = [0, 96], sizes = [8, 96], strides = [1, 1]} : vector<8x192xf32> to vector<8x96xf32>
    %217 = vector.extract_strided_slice %215 {offsets = [0, 0], sizes = [8, 32], strides = [1, 1]} : vector<8x96xf32> to vector<8x32xf32>
    %218 = vector.extract_strided_slice %216 {offsets = [0, 0], sizes = [8, 32], strides = [1, 1]} : vector<8x96xf32> to vector<8x32xf32>
    %219 = arith.addf %217, %218 : vector<8x32xf32>
    %220 = arith.negf %219 : vector<8x32xf32>
    %221 = math.exp %220 : vector<8x32xf32>
    %cst_77 = arith.constant 1.000000e+00 : f32
    %222 = vector.broadcast %cst_77 : f32 to vector<8x32xf32>
    %223 = arith.addf %222, %221 : vector<8x32xf32>
    %224 = arith.divf %222, %223 : vector<8x32xf32>
    %225 = vector.extract_strided_slice %215 {offsets = [0, 32], sizes = [8, 32], strides = [1, 1]} : vector<8x96xf32> to vector<8x32xf32>
    %226 = vector.extract_strided_slice %216 {offsets = [0, 32], sizes = [8, 32], strides = [1, 1]} : vector<8x96xf32> to vector<8x32xf32>
    %227 = arith.addf %225, %226 : vector<8x32xf32>
    %228 = arith.negf %227 : vector<8x32xf32>
    %229 = math.exp %228 : vector<8x32xf32>
    %cst_78 = arith.constant 1.000000e+00 : f32
    %230 = vector.broadcast %cst_78 : f32 to vector<8x32xf32>
    %231 = arith.addf %230, %229 : vector<8x32xf32>
    %232 = arith.divf %230, %231 : vector<8x32xf32>
    %233 = vector.extract_strided_slice %215 {offsets = [0, 64], sizes = [8, 32], strides = [1, 1]} : vector<8x96xf32> to vector<8x32xf32>
    %234 = vector.extract_strided_slice %216 {offsets = [0, 64], sizes = [8, 32], strides = [1, 1]} : vector<8x96xf32> to vector<8x32xf32>
    %235 = arith.mulf %224, %234 : vector<8x32xf32>
    %236 = arith.addf %233, %235 : vector<8x32xf32>
    %237 = math.tanh %236 : vector<8x32xf32>
    %cst_79 = arith.constant 1.000000e+00 : f32
    %238 = vector.broadcast %cst_79 : f32 to vector<8x32xf32>
    %239 = arith.subf %238, %232 : vector<8x32xf32>
    %240 = arith.mulf %239, %237 : vector<8x32xf32>
    %241 = arith.mulf %232, %211 : vector<8x32xf32>
    %242 = arith.addf %240, %241 : vector<8x32xf32>
    %c1_80 = arith.constant 1 : index
    %c0_81 = arith.constant 0 : index
    %c0_82 = arith.constant 0 : index
    %243 = vector.load %arg9[%c1_80, %c0_81, %c0_82] : memref<2x8x32xf32, #tpu.memory_space<vmem>>, vector<1x8x32xf32>
    %244 = vector.shape_cast %243 : vector<1x8x32xf32> to vector<8x32xf32>
    %245 = vector.shape_cast %242 : vector<8x32xf32> to vector<1x8x32xf32>
    tpu.vector_store %arg9[%c1_80, %c0_81, %c0_82], %245 {strides = array<i32>} : memref<2x8x32xf32, #tpu.memory_space<vmem>>, vector<1x8x32xf32>,
    %c2_i32 = arith.constant 2 : i32
    %246 = arith.addi %8, %c2_i32 : i32
    %247 = vector.broadcast %246 : i32 to vector<8x1xi32>
    %248 = arith.cmpi slt, %247, %7 : vector<8x1xi32>
    %249 = arith.extui %248 : vector<8x1xi1> to vector<8x1xi32>
    %250 = arith.sitofp %249 : vector<8x1xi32> to vector<8x1xf32>
    %251 = vector.broadcast %250 : vector<8x1xf32> to vector<8x32xf32>
    %252 = arith.mulf %242, %251 : vector<8x32xf32>
    %c2_83 = arith.constant 2 : index
    %c0_84 = arith.constant 0 : index
    %c0_85 = arith.constant 0 : index
    %253 = vector.load %arg8[%c2_83, %c0_84, %c0_85] : memref<8x8x32xf32, #tpu.memory_space<vmem>>, vector<1x8x32xf32>
    %254 = vector.shape_cast %253 : vector<1x8x32xf32> to vector<8x32xf32>
    %255 = vector.shape_cast %252 : vector<8x32xf32> to vector<1x8x32xf32>
    tpu.vector_store %arg8[%c2_83, %c0_84, %c0_85], %255 {strides = array<i32>} : memref<8x8x32xf32, #tpu.memory_space<vmem>>, vector<1x8x32xf32>,
    %c0_86 = arith.constant 0 : index
    %c0_87 = arith.constant 0 : index
    %c0_88 = arith.constant 0 : index
    %256 = vector.load %arg9[%c0_86, %c0_87, %c0_88] : memref<2x8x32xf32, #tpu.memory_space<vmem>>, vector<1x8x32xf32>
    %257 = vector.shape_cast %256 : vector<1x8x32xf32> to vector<8x32xf32>
    %cst_89 = arith.constant dense<0.000000e+00> : vector<8x96xf32>
    %258 = tpu.matmul %257, %3, %cst_89 {dimension_numbers = #tpu.dot_dimension_numbers<[1], [0], [0], [1], [0, 0, 1, 1], [], []>} : vector<8x32xf32>, vector<32x96xf32>, vector<8x96xf32> -> vector<8x96xf32>
    %259 = arith.addf %258, %6 : vector<8x96xf32>
    %c3 = arith.constant 3 : index
    %c0_90 = arith.constant 0 : index
    %c0_91 = arith.constant 0 : index
    %260 = vector.load %arg2[%c3, %c0_90, %c0_91] : memref<8x8x96xf32, #tpu.memory_space<vmem>>, vector<1x8x96xf32>
    %261 = vector.shape_cast %260 : vector<1x8x96xf32> to vector<8x96xf32>
    %262 = vector.extract_strided_slice %261 {offsets = [0, 0], sizes = [8, 32], strides = [1, 1]} : vector<8x96xf32> to vector<8x32xf32>
    %263 = vector.extract_strided_slice %259 {offsets = [0, 0], sizes = [8, 32], strides = [1, 1]} : vector<8x96xf32> to vector<8x32xf32>
    %264 = arith.addf %262, %263 : vector<8x32xf32>
    %265 = arith.negf %264 : vector<8x32xf32>
    %266 = math.exp %265 : vector<8x32xf32>
    %cst_92 = arith.constant 1.000000e+00 : f32
    %267 = vector.broadcast %cst_92 : f32 to vector<8x32xf32>
    %268 = arith.addf %267, %266 : vector<8x32xf32>
    %269 = arith.divf %267, %268 : vector<8x32xf32>
    %270 = vector.extract_strided_slice %261 {offsets = [0, 32], sizes = [8, 32], strides = [1, 1]} : vector<8x96xf32> to vector<8x32xf32>
    %271 = vector.extract_strided_slice %259 {offsets = [0, 32], sizes = [8, 32], strides = [1, 1]} : vector<8x96xf32> to vector<8x32xf32>
    %272 = arith.addf %270, %271 : vector<8x32xf32>
    %273 = arith.negf %272 : vector<8x32xf32>
    %274 = math.exp %273 : vector<8x32xf32>
    %cst_93 = arith.constant 1.000000e+00 : f32
    %275 = vector.broadcast %cst_93 : f32 to vector<8x32xf32>
    %276 = arith.addf %275, %274 : vector<8x32xf32>
    %277 = arith.divf %275, %276 : vector<8x32xf32>
    %278 = vector.extract_strided_slice %261 {offsets = [0, 64], sizes = [8, 32], strides = [1, 1]} : vector<8x96xf32> to vector<8x32xf32>
    %279 = vector.extract_strided_slice %259 {offsets = [0, 64], sizes = [8, 32], strides = [1, 1]} : vector<8x96xf32> to vector<8x32xf32>
    %280 = arith.mulf %269, %279 : vector<8x32xf32>
    %281 = arith.addf %278, %280 : vector<8x32xf32>
    %282 = math.tanh %281 : vector<8x32xf32>
    %cst_94 = arith.constant 1.000000e+00 : f32
    %283 = vector.broadcast %cst_94 : f32 to vector<8x32xf32>
    %284 = arith.subf %283, %277 : vector<8x32xf32>
    %285 = arith.mulf %284, %282 : vector<8x32xf32>
    %286 = arith.mulf %277, %257 : vector<8x32xf32>
    %287 = arith.addf %285, %286 : vector<8x32xf32>
    %c0_95 = arith.constant 0 : index
    %c0_96 = arith.constant 0 : index
    %c0_97 = arith.constant 0 : index
    %288 = vector.load %arg9[%c0_95, %c0_96, %c0_97] : memref<2x8x32xf32, #tpu.memory_space<vmem>>, vector<1x8x32xf32>
    %289 = vector.shape_cast %288 : vector<1x8x32xf32> to vector<8x32xf32>
    %290 = vector.shape_cast %287 : vector<8x32xf32> to vector<1x8x32xf32>
    tpu.vector_store %arg9[%c0_95, %c0_96, %c0_97], %290 {strides = array<i32>} : memref<2x8x32xf32, #tpu.memory_space<vmem>>, vector<1x8x32xf32>,
    %c1_98 = arith.constant 1 : index
    %c0_99 = arith.constant 0 : index
    %c0_100 = arith.constant 0 : index
    %291 = vector.load %arg9[%c1_98, %c0_99, %c0_100] : memref<2x8x32xf32, #tpu.memory_space<vmem>>, vector<1x8x32xf32>
    %292 = vector.shape_cast %291 : vector<1x8x32xf32> to vector<8x32xf32>
    %293 = tpu.concatenate %287, %292 in 1 : vector<8x32xf32>, vector<8x32xf32> -> vector<8x64xf32>
    %cst_101 = arith.constant dense<0.000000e+00> : vector<8x192xf32>
    %294 = tpu.matmul %293, %9, %cst_101 {dimension_numbers = #tpu.dot_dimension_numbers<[1], [0], [0], [1], [0, 0, 1, 1], [], []>} : vector<8x64xf32>, vector<64x192xf32>, vector<8x192xf32> -> vector<8x192xf32>
    %295 = arith.addf %294, %12 : vector<8x192xf32>
    %296 = vector.extract_strided_slice %295 {offsets = [0, 0], sizes = [8, 96], strides = [1, 1]} : vector<8x192xf32> to vector<8x96xf32>
    %297 = vector.extract_strided_slice %295 {offsets = [0, 96], sizes = [8, 96], strides = [1, 1]} : vector<8x192xf32> to vector<8x96xf32>
    %298 = vector.extract_strided_slice %296 {offsets = [0, 0], sizes = [8, 32], strides = [1, 1]} : vector<8x96xf32> to vector<8x32xf32>
    %299 = vector.extract_strided_slice %297 {offsets = [0, 0], sizes = [8, 32], strides = [1, 1]} : vector<8x96xf32> to vector<8x32xf32>
    %300 = arith.addf %298, %299 : vector<8x32xf32>
    %301 = arith.negf %300 : vector<8x32xf32>
    %302 = math.exp %301 : vector<8x32xf32>
    %cst_102 = arith.constant 1.000000e+00 : f32
    %303 = vector.broadcast %cst_102 : f32 to vector<8x32xf32>
    %304 = arith.addf %303, %302 : vector<8x32xf32>
    %305 = arith.divf %303, %304 : vector<8x32xf32>
    %306 = vector.extract_strided_slice %296 {offsets = [0, 32], sizes = [8, 32], strides = [1, 1]} : vector<8x96xf32> to vector<8x32xf32>
    %307 = vector.extract_strided_slice %297 {offsets = [0, 32], sizes = [8, 32], strides = [1, 1]} : vector<8x96xf32> to vector<8x32xf32>
    %308 = arith.addf %306, %307 : vector<8x32xf32>
    %309 = arith.negf %308 : vector<8x32xf32>
    %310 = math.exp %309 : vector<8x32xf32>
    %cst_103 = arith.constant 1.000000e+00 : f32
    %311 = vector.broadcast %cst_103 : f32 to vector<8x32xf32>
    %312 = arith.addf %311, %310 : vector<8x32xf32>
    %313 = arith.divf %311, %312 : vector<8x32xf32>
    %314 = vector.extract_strided_slice %296 {offsets = [0, 64], sizes = [8, 32], strides = [1, 1]} : vector<8x96xf32> to vector<8x32xf32>
    %315 = vector.extract_strided_slice %297 {offsets = [0, 64], sizes = [8, 32], strides = [1, 1]} : vector<8x96xf32> to vector<8x32xf32>
    %316 = arith.mulf %305, %315 : vector<8x32xf32>
    %317 = arith.addf %314, %316 : vector<8x32xf32>
    %318 = math.tanh %317 : vector<8x32xf32>
    %cst_104 = arith.constant 1.000000e+00 : f32
    %319 = vector.broadcast %cst_104 : f32 to vector<8x32xf32>
    %320 = arith.subf %319, %313 : vector<8x32xf32>
    %321 = arith.mulf %320, %318 : vector<8x32xf32>
    %322 = arith.mulf %313, %292 : vector<8x32xf32>
    %323 = arith.addf %321, %322 : vector<8x32xf32>
    %c1_105 = arith.constant 1 : index
    %c0_106 = arith.constant 0 : index
    %c0_107 = arith.constant 0 : index
    %324 = vector.load %arg9[%c1_105, %c0_106, %c0_107] : memref<2x8x32xf32, #tpu.memory_space<vmem>>, vector<1x8x32xf32>
    %325 = vector.shape_cast %324 : vector<1x8x32xf32> to vector<8x32xf32>
    %326 = vector.shape_cast %323 : vector<8x32xf32> to vector<1x8x32xf32>
    tpu.vector_store %arg9[%c1_105, %c0_106, %c0_107], %326 {strides = array<i32>} : memref<2x8x32xf32, #tpu.memory_space<vmem>>, vector<1x8x32xf32>,
    %c3_i32 = arith.constant 3 : i32
    %327 = arith.addi %8, %c3_i32 : i32
    %328 = vector.broadcast %327 : i32 to vector<8x1xi32>
    %329 = arith.cmpi slt, %328, %7 : vector<8x1xi32>
    %330 = arith.extui %329 : vector<8x1xi1> to vector<8x1xi32>
    %331 = arith.sitofp %330 : vector<8x1xi32> to vector<8x1xf32>
    %332 = vector.broadcast %331 : vector<8x1xf32> to vector<8x32xf32>
    %333 = arith.mulf %323, %332 : vector<8x32xf32>
    %c3_108 = arith.constant 3 : index
    %c0_109 = arith.constant 0 : index
    %c0_110 = arith.constant 0 : index
    %334 = vector.load %arg8[%c3_108, %c0_109, %c0_110] : memref<8x8x32xf32, #tpu.memory_space<vmem>>, vector<1x8x32xf32>
    %335 = vector.shape_cast %334 : vector<1x8x32xf32> to vector<8x32xf32>
    %336 = vector.shape_cast %333 : vector<8x32xf32> to vector<1x8x32xf32>
    tpu.vector_store %arg8[%c3_108, %c0_109, %c0_110], %336 {strides = array<i32>} : memref<8x8x32xf32, #tpu.memory_space<vmem>>, vector<1x8x32xf32>,
    %c0_111 = arith.constant 0 : index
    %c0_112 = arith.constant 0 : index
    %c0_113 = arith.constant 0 : index
    %337 = vector.load %arg9[%c0_111, %c0_112, %c0_113] : memref<2x8x32xf32, #tpu.memory_space<vmem>>, vector<1x8x32xf32>
    %338 = vector.shape_cast %337 : vector<1x8x32xf32> to vector<8x32xf32>
    %cst_114 = arith.constant dense<0.000000e+00> : vector<8x96xf32>
    %339 = tpu.matmul %338, %3, %cst_114 {dimension_numbers = #tpu.dot_dimension_numbers<[1], [0], [0], [1], [0, 0, 1, 1], [], []>} : vector<8x32xf32>, vector<32x96xf32>, vector<8x96xf32> -> vector<8x96xf32>
    %340 = arith.addf %339, %6 : vector<8x96xf32>
    %c4 = arith.constant 4 : index
    %c0_115 = arith.constant 0 : index
    %c0_116 = arith.constant 0 : index
    %341 = vector.load %arg2[%c4, %c0_115, %c0_116] : memref<8x8x96xf32, #tpu.memory_space<vmem>>, vector<1x8x96xf32>
    %342 = vector.shape_cast %341 : vector<1x8x96xf32> to vector<8x96xf32>
    %343 = vector.extract_strided_slice %342 {offsets = [0, 0], sizes = [8, 32], strides = [1, 1]} : vector<8x96xf32> to vector<8x32xf32>
    %344 = vector.extract_strided_slice %340 {offsets = [0, 0], sizes = [8, 32], strides = [1, 1]} : vector<8x96xf32> to vector<8x32xf32>
    %345 = arith.addf %343, %344 : vector<8x32xf32>
    %346 = arith.negf %345 : vector<8x32xf32>
    %347 = math.exp %346 : vector<8x32xf32>
    %cst_117 = arith.constant 1.000000e+00 : f32
    %348 = vector.broadcast %cst_117 : f32 to vector<8x32xf32>
    %349 = arith.addf %348, %347 : vector<8x32xf32>
    %350 = arith.divf %348, %349 : vector<8x32xf32>
    %351 = vector.extract_strided_slice %342 {offsets = [0, 32], sizes = [8, 32], strides = [1, 1]} : vector<8x96xf32> to vector<8x32xf32>
    %352 = vector.extract_strided_slice %340 {offsets = [0, 32], sizes = [8, 32], strides = [1, 1]} : vector<8x96xf32> to vector<8x32xf32>
    %353 = arith.addf %351, %352 : vector<8x32xf32>
    %354 = arith.negf %353 : vector<8x32xf32>
    %355 = math.exp %354 : vector<8x32xf32>
    %cst_118 = arith.constant 1.000000e+00 : f32
    %356 = vector.broadcast %cst_118 : f32 to vector<8x32xf32>
    %357 = arith.addf %356, %355 : vector<8x32xf32>
    %358 = arith.divf %356, %357 : vector<8x32xf32>
    %359 = vector.extract_strided_slice %342 {offsets = [0, 64], sizes = [8, 32], strides = [1, 1]} : vector<8x96xf32> to vector<8x32xf32>
    %360 = vector.extract_strided_slice %340 {offsets = [0, 64], sizes = [8, 32], strides = [1, 1]} : vector<8x96xf32> to vector<8x32xf32>
    %361 = arith.mulf %350, %360 : vector<8x32xf32>
    %362 = arith.addf %359, %361 : vector<8x32xf32>
    %363 = math.tanh %362 : vector<8x32xf32>
    %cst_119 = arith.constant 1.000000e+00 : f32
    %364 = vector.broadcast %cst_119 : f32 to vector<8x32xf32>
    %365 = arith.subf %364, %358 : vector<8x32xf32>
    %366 = arith.mulf %365, %363 : vector<8x32xf32>
    %367 = arith.mulf %358, %338 : vector<8x32xf32>
    %368 = arith.addf %366, %367 : vector<8x32xf32>
    %c0_120 = arith.constant 0 : index
    %c0_121 = arith.constant 0 : index
    %c0_122 = arith.constant 0 : index
    %369 = vector.load %arg9[%c0_120, %c0_121, %c0_122] : memref<2x8x32xf32, #tpu.memory_space<vmem>>, vector<1x8x32xf32>
    %370 = vector.shape_cast %369 : vector<1x8x32xf32> to vector<8x32xf32>
    %371 = vector.shape_cast %368 : vector<8x32xf32> to vector<1x8x32xf32>
    tpu.vector_store %arg9[%c0_120, %c0_121, %c0_122], %371 {strides = array<i32>} : memref<2x8x32xf32, #tpu.memory_space<vmem>>, vector<1x8x32xf32>,
    %c1_123 = arith.constant 1 : index
    %c0_124 = arith.constant 0 : index
    %c0_125 = arith.constant 0 : index
    %372 = vector.load %arg9[%c1_123, %c0_124, %c0_125] : memref<2x8x32xf32, #tpu.memory_space<vmem>>, vector<1x8x32xf32>
    %373 = vector.shape_cast %372 : vector<1x8x32xf32> to vector<8x32xf32>
    %374 = tpu.concatenate %368, %373 in 1 : vector<8x32xf32>, vector<8x32xf32> -> vector<8x64xf32>
    %cst_126 = arith.constant dense<0.000000e+00> : vector<8x192xf32>
    %375 = tpu.matmul %374, %9, %cst_126 {dimension_numbers = #tpu.dot_dimension_numbers<[1], [0], [0], [1], [0, 0, 1, 1], [], []>} : vector<8x64xf32>, vector<64x192xf32>, vector<8x192xf32> -> vector<8x192xf32>
    %376 = arith.addf %375, %12 : vector<8x192xf32>
    %377 = vector.extract_strided_slice %376 {offsets = [0, 0], sizes = [8, 96], strides = [1, 1]} : vector<8x192xf32> to vector<8x96xf32>
    %378 = vector.extract_strided_slice %376 {offsets = [0, 96], sizes = [8, 96], strides = [1, 1]} : vector<8x192xf32> to vector<8x96xf32>
    %379 = vector.extract_strided_slice %377 {offsets = [0, 0], sizes = [8, 32], strides = [1, 1]} : vector<8x96xf32> to vector<8x32xf32>
    %380 = vector.extract_strided_slice %378 {offsets = [0, 0], sizes = [8, 32], strides = [1, 1]} : vector<8x96xf32> to vector<8x32xf32>
    %381 = arith.addf %379, %380 : vector<8x32xf32>
    %382 = arith.negf %381 : vector<8x32xf32>
    %383 = math.exp %382 : vector<8x32xf32>
    %cst_127 = arith.constant 1.000000e+00 : f32
    %384 = vector.broadcast %cst_127 : f32 to vector<8x32xf32>
    %385 = arith.addf %384, %383 : vector<8x32xf32>
    %386 = arith.divf %384, %385 : vector<8x32xf32>
    %387 = vector.extract_strided_slice %377 {offsets = [0, 32], sizes = [8, 32], strides = [1, 1]} : vector<8x96xf32> to vector<8x32xf32>
    %388 = vector.extract_strided_slice %378 {offsets = [0, 32], sizes = [8, 32], strides = [1, 1]} : vector<8x96xf32> to vector<8x32xf32>
    %389 = arith.addf %387, %388 : vector<8x32xf32>
    %390 = arith.negf %389 : vector<8x32xf32>
    %391 = math.exp %390 : vector<8x32xf32>
    %cst_128 = arith.constant 1.000000e+00 : f32
    %392 = vector.broadcast %cst_128 : f32 to vector<8x32xf32>
    %393 = arith.addf %392, %391 : vector<8x32xf32>
    %394 = arith.divf %392, %393 : vector<8x32xf32>
    %395 = vector.extract_strided_slice %377 {offsets = [0, 64], sizes = [8, 32], strides = [1, 1]} : vector<8x96xf32> to vector<8x32xf32>
    %396 = vector.extract_strided_slice %378 {offsets = [0, 64], sizes = [8, 32], strides = [1, 1]} : vector<8x96xf32> to vector<8x32xf32>
    %397 = arith.mulf %386, %396 : vector<8x32xf32>
    %398 = arith.addf %395, %397 : vector<8x32xf32>
    %399 = math.tanh %398 : vector<8x32xf32>
    %cst_129 = arith.constant 1.000000e+00 : f32
    %400 = vector.broadcast %cst_129 : f32 to vector<8x32xf32>
    %401 = arith.subf %400, %394 : vector<8x32xf32>
    %402 = arith.mulf %401, %399 : vector<8x32xf32>
    %403 = arith.mulf %394, %373 : vector<8x32xf32>
    %404 = arith.addf %402, %403 : vector<8x32xf32>
    %c1_130 = arith.constant 1 : index
    %c0_131 = arith.constant 0 : index
    %c0_132 = arith.constant 0 : index
    %405 = vector.load %arg9[%c1_130, %c0_131, %c0_132] : memref<2x8x32xf32, #tpu.memory_space<vmem>>, vector<1x8x32xf32>
    %406 = vector.shape_cast %405 : vector<1x8x32xf32> to vector<8x32xf32>
    %407 = vector.shape_cast %404 : vector<8x32xf32> to vector<1x8x32xf32>
    tpu.vector_store %arg9[%c1_130, %c0_131, %c0_132], %407 {strides = array<i32>} : memref<2x8x32xf32, #tpu.memory_space<vmem>>, vector<1x8x32xf32>,
    %c4_i32 = arith.constant 4 : i32
    %408 = arith.addi %8, %c4_i32 : i32
    %409 = vector.broadcast %408 : i32 to vector<8x1xi32>
    %410 = arith.cmpi slt, %409, %7 : vector<8x1xi32>
    %411 = arith.extui %410 : vector<8x1xi1> to vector<8x1xi32>
    %412 = arith.sitofp %411 : vector<8x1xi32> to vector<8x1xf32>
    %413 = vector.broadcast %412 : vector<8x1xf32> to vector<8x32xf32>
    %414 = arith.mulf %404, %413 : vector<8x32xf32>
    %c4_133 = arith.constant 4 : index
    %c0_134 = arith.constant 0 : index
    %c0_135 = arith.constant 0 : index
    %415 = vector.load %arg8[%c4_133, %c0_134, %c0_135] : memref<8x8x32xf32, #tpu.memory_space<vmem>>, vector<1x8x32xf32>
    %416 = vector.shape_cast %415 : vector<1x8x32xf32> to vector<8x32xf32>
    %417 = vector.shape_cast %414 : vector<8x32xf32> to vector<1x8x32xf32>
    tpu.vector_store %arg8[%c4_133, %c0_134, %c0_135], %417 {strides = array<i32>} : memref<8x8x32xf32, #tpu.memory_space<vmem>>, vector<1x8x32xf32>,
    %c0_136 = arith.constant 0 : index
    %c0_137 = arith.constant 0 : index
    %c0_138 = arith.constant 0 : index
    %418 = vector.load %arg9[%c0_136, %c0_137, %c0_138] : memref<2x8x32xf32, #tpu.memory_space<vmem>>, vector<1x8x32xf32>
    %419 = vector.shape_cast %418 : vector<1x8x32xf32> to vector<8x32xf32>
    %cst_139 = arith.constant dense<0.000000e+00> : vector<8x96xf32>
    %420 = tpu.matmul %419, %3, %cst_139 {dimension_numbers = #tpu.dot_dimension_numbers<[1], [0], [0], [1], [0, 0, 1, 1], [], []>} : vector<8x32xf32>, vector<32x96xf32>, vector<8x96xf32> -> vector<8x96xf32>
    %421 = arith.addf %420, %6 : vector<8x96xf32>
    %c5 = arith.constant 5 : index
    %c0_140 = arith.constant 0 : index
    %c0_141 = arith.constant 0 : index
    %422 = vector.load %arg2[%c5, %c0_140, %c0_141] : memref<8x8x96xf32, #tpu.memory_space<vmem>>, vector<1x8x96xf32>
    %423 = vector.shape_cast %422 : vector<1x8x96xf32> to vector<8x96xf32>
    %424 = vector.extract_strided_slice %423 {offsets = [0, 0], sizes = [8, 32], strides = [1, 1]} : vector<8x96xf32> to vector<8x32xf32>
    %425 = vector.extract_strided_slice %421 {offsets = [0, 0], sizes = [8, 32], strides = [1, 1]} : vector<8x96xf32> to vector<8x32xf32>
    %426 = arith.addf %424, %425 : vector<8x32xf32>
    %427 = arith.negf %426 : vector<8x32xf32>
    %428 = math.exp %427 : vector<8x32xf32>
    %cst_142 = arith.constant 1.000000e+00 : f32
    %429 = vector.broadcast %cst_142 : f32 to vector<8x32xf32>
    %430 = arith.addf %429, %428 : vector<8x32xf32>
    %431 = arith.divf %429, %430 : vector<8x32xf32>
    %432 = vector.extract_strided_slice %423 {offsets = [0, 32], sizes = [8, 32], strides = [1, 1]} : vector<8x96xf32> to vector<8x32xf32>
    %433 = vector.extract_strided_slice %421 {offsets = [0, 32], sizes = [8, 32], strides = [1, 1]} : vector<8x96xf32> to vector<8x32xf32>
    %434 = arith.addf %432, %433 : vector<8x32xf32>
    %435 = arith.negf %434 : vector<8x32xf32>
    %436 = math.exp %435 : vector<8x32xf32>
    %cst_143 = arith.constant 1.000000e+00 : f32
    %437 = vector.broadcast %cst_143 : f32 to vector<8x32xf32>
    %438 = arith.addf %437, %436 : vector<8x32xf32>
    %439 = arith.divf %437, %438 : vector<8x32xf32>
    %440 = vector.extract_strided_slice %423 {offsets = [0, 64], sizes = [8, 32], strides = [1, 1]} : vector<8x96xf32> to vector<8x32xf32>
    %441 = vector.extract_strided_slice %421 {offsets = [0, 64], sizes = [8, 32], strides = [1, 1]} : vector<8x96xf32> to vector<8x32xf32>
    %442 = arith.mulf %431, %441 : vector<8x32xf32>
    %443 = arith.addf %440, %442 : vector<8x32xf32>
    %444 = math.tanh %443 : vector<8x32xf32>
    %cst_144 = arith.constant 1.000000e+00 : f32
    %445 = vector.broadcast %cst_144 : f32 to vector<8x32xf32>
    %446 = arith.subf %445, %439 : vector<8x32xf32>
    %447 = arith.mulf %446, %444 : vector<8x32xf32>
    %448 = arith.mulf %439, %419 : vector<8x32xf32>
    %449 = arith.addf %447, %448 : vector<8x32xf32>
    %c0_145 = arith.constant 0 : index
    %c0_146 = arith.constant 0 : index
    %c0_147 = arith.constant 0 : index
    %450 = vector.load %arg9[%c0_145, %c0_146, %c0_147] : memref<2x8x32xf32, #tpu.memory_space<vmem>>, vector<1x8x32xf32>
    %451 = vector.shape_cast %450 : vector<1x8x32xf32> to vector<8x32xf32>
    %452 = vector.shape_cast %449 : vector<8x32xf32> to vector<1x8x32xf32>
    tpu.vector_store %arg9[%c0_145, %c0_146, %c0_147], %452 {strides = array<i32>} : memref<2x8x32xf32, #tpu.memory_space<vmem>>, vector<1x8x32xf32>,
    %c1_148 = arith.constant 1 : index
    %c0_149 = arith.constant 0 : index
    %c0_150 = arith.constant 0 : index
    %453 = vector.load %arg9[%c1_148, %c0_149, %c0_150] : memref<2x8x32xf32, #tpu.memory_space<vmem>>, vector<1x8x32xf32>
    %454 = vector.shape_cast %453 : vector<1x8x32xf32> to vector<8x32xf32>
    %455 = tpu.concatenate %449, %454 in 1 : vector<8x32xf32>, vector<8x32xf32> -> vector<8x64xf32>
    %cst_151 = arith.constant dense<0.000000e+00> : vector<8x192xf32>
    %456 = tpu.matmul %455, %9, %cst_151 {dimension_numbers = #tpu.dot_dimension_numbers<[1], [0], [0], [1], [0, 0, 1, 1], [], []>} : vector<8x64xf32>, vector<64x192xf32>, vector<8x192xf32> -> vector<8x192xf32>
    %457 = arith.addf %456, %12 : vector<8x192xf32>
    %458 = vector.extract_strided_slice %457 {offsets = [0, 0], sizes = [8, 96], strides = [1, 1]} : vector<8x192xf32> to vector<8x96xf32>
    %459 = vector.extract_strided_slice %457 {offsets = [0, 96], sizes = [8, 96], strides = [1, 1]} : vector<8x192xf32> to vector<8x96xf32>
    %460 = vector.extract_strided_slice %458 {offsets = [0, 0], sizes = [8, 32], strides = [1, 1]} : vector<8x96xf32> to vector<8x32xf32>
    %461 = vector.extract_strided_slice %459 {offsets = [0, 0], sizes = [8, 32], strides = [1, 1]} : vector<8x96xf32> to vector<8x32xf32>
    %462 = arith.addf %460, %461 : vector<8x32xf32>
    %463 = arith.negf %462 : vector<8x32xf32>
    %464 = math.exp %463 : vector<8x32xf32>
    %cst_152 = arith.constant 1.000000e+00 : f32
    %465 = vector.broadcast %cst_152 : f32 to vector<8x32xf32>
    %466 = arith.addf %465, %464 : vector<8x32xf32>
    %467 = arith.divf %465, %466 : vector<8x32xf32>
    %468 = vector.extract_strided_slice %458 {offsets = [0, 32], sizes = [8, 32], strides = [1, 1]} : vector<8x96xf32> to vector<8x32xf32>
    %469 = vector.extract_strided_slice %459 {offsets = [0, 32], sizes = [8, 32], strides = [1, 1]} : vector<8x96xf32> to vector<8x32xf32>
    %470 = arith.addf %468, %469 : vector<8x32xf32>
    %471 = arith.negf %470 : vector<8x32xf32>
    %472 = math.exp %471 : vector<8x32xf32>
    %cst_153 = arith.constant 1.000000e+00 : f32
    %473 = vector.broadcast %cst_153 : f32 to vector<8x32xf32>
    %474 = arith.addf %473, %472 : vector<8x32xf32>
    %475 = arith.divf %473, %474 : vector<8x32xf32>
    %476 = vector.extract_strided_slice %458 {offsets = [0, 64], sizes = [8, 32], strides = [1, 1]} : vector<8x96xf32> to vector<8x32xf32>
    %477 = vector.extract_strided_slice %459 {offsets = [0, 64], sizes = [8, 32], strides = [1, 1]} : vector<8x96xf32> to vector<8x32xf32>
    %478 = arith.mulf %467, %477 : vector<8x32xf32>
    %479 = arith.addf %476, %478 : vector<8x32xf32>
    %480 = math.tanh %479 : vector<8x32xf32>
    %cst_154 = arith.constant 1.000000e+00 : f32
    %481 = vector.broadcast %cst_154 : f32 to vector<8x32xf32>
    %482 = arith.subf %481, %475 : vector<8x32xf32>
    %483 = arith.mulf %482, %480 : vector<8x32xf32>
    %484 = arith.mulf %475, %454 : vector<8x32xf32>
    %485 = arith.addf %483, %484 : vector<8x32xf32>
    %c1_155 = arith.constant 1 : index
    %c0_156 = arith.constant 0 : index
    %c0_157 = arith.constant 0 : index
    %486 = vector.load %arg9[%c1_155, %c0_156, %c0_157] : memref<2x8x32xf32, #tpu.memory_space<vmem>>, vector<1x8x32xf32>
    %487 = vector.shape_cast %486 : vector<1x8x32xf32> to vector<8x32xf32>
    %488 = vector.shape_cast %485 : vector<8x32xf32> to vector<1x8x32xf32>
    tpu.vector_store %arg9[%c1_155, %c0_156, %c0_157], %488 {strides = array<i32>} : memref<2x8x32xf32, #tpu.memory_space<vmem>>, vector<1x8x32xf32>,
    %c5_i32 = arith.constant 5 : i32
    %489 = arith.addi %8, %c5_i32 : i32
    %490 = vector.broadcast %489 : i32 to vector<8x1xi32>
    %491 = arith.cmpi slt, %490, %7 : vector<8x1xi32>
    %492 = arith.extui %491 : vector<8x1xi1> to vector<8x1xi32>
    %493 = arith.sitofp %492 : vector<8x1xi32> to vector<8x1xf32>
    %494 = vector.broadcast %493 : vector<8x1xf32> to vector<8x32xf32>
    %495 = arith.mulf %485, %494 : vector<8x32xf32>
    %c5_158 = arith.constant 5 : index
    %c0_159 = arith.constant 0 : index
    %c0_160 = arith.constant 0 : index
    %496 = vector.load %arg8[%c5_158, %c0_159, %c0_160] : memref<8x8x32xf32, #tpu.memory_space<vmem>>, vector<1x8x32xf32>
    %497 = vector.shape_cast %496 : vector<1x8x32xf32> to vector<8x32xf32>
    %498 = vector.shape_cast %495 : vector<8x32xf32> to vector<1x8x32xf32>
    tpu.vector_store %arg8[%c5_158, %c0_159, %c0_160], %498 {strides = array<i32>} : memref<8x8x32xf32, #tpu.memory_space<vmem>>, vector<1x8x32xf32>,
    %c0_161 = arith.constant 0 : index
    %c0_162 = arith.constant 0 : index
    %c0_163 = arith.constant 0 : index
    %499 = vector.load %arg9[%c0_161, %c0_162, %c0_163] : memref<2x8x32xf32, #tpu.memory_space<vmem>>, vector<1x8x32xf32>
    %500 = vector.shape_cast %499 : vector<1x8x32xf32> to vector<8x32xf32>
    %cst_164 = arith.constant dense<0.000000e+00> : vector<8x96xf32>
    %501 = tpu.matmul %500, %3, %cst_164 {dimension_numbers = #tpu.dot_dimension_numbers<[1], [0], [0], [1], [0, 0, 1, 1], [], []>} : vector<8x32xf32>, vector<32x96xf32>, vector<8x96xf32> -> vector<8x96xf32>
    %502 = arith.addf %501, %6 : vector<8x96xf32>
    %c6 = arith.constant 6 : index
    %c0_165 = arith.constant 0 : index
    %c0_166 = arith.constant 0 : index
    %503 = vector.load %arg2[%c6, %c0_165, %c0_166] : memref<8x8x96xf32, #tpu.memory_space<vmem>>, vector<1x8x96xf32>
    %504 = vector.shape_cast %503 : vector<1x8x96xf32> to vector<8x96xf32>
    %505 = vector.extract_strided_slice %504 {offsets = [0, 0], sizes = [8, 32], strides = [1, 1]} : vector<8x96xf32> to vector<8x32xf32>
    %506 = vector.extract_strided_slice %502 {offsets = [0, 0], sizes = [8, 32], strides = [1, 1]} : vector<8x96xf32> to vector<8x32xf32>
    %507 = arith.addf %505, %506 : vector<8x32xf32>
    %508 = arith.negf %507 : vector<8x32xf32>
    %509 = math.exp %508 : vector<8x32xf32>
    %cst_167 = arith.constant 1.000000e+00 : f32
    %510 = vector.broadcast %cst_167 : f32 to vector<8x32xf32>
    %511 = arith.addf %510, %509 : vector<8x32xf32>
    %512 = arith.divf %510, %511 : vector<8x32xf32>
    %513 = vector.extract_strided_slice %504 {offsets = [0, 32], sizes = [8, 32], strides = [1, 1]} : vector<8x96xf32> to vector<8x32xf32>
    %514 = vector.extract_strided_slice %502 {offsets = [0, 32], sizes = [8, 32], strides = [1, 1]} : vector<8x96xf32> to vector<8x32xf32>
    %515 = arith.addf %513, %514 : vector<8x32xf32>
    %516 = arith.negf %515 : vector<8x32xf32>
    %517 = math.exp %516 : vector<8x32xf32>
    %cst_168 = arith.constant 1.000000e+00 : f32
    %518 = vector.broadcast %cst_168 : f32 to vector<8x32xf32>
    %519 = arith.addf %518, %517 : vector<8x32xf32>
    %520 = arith.divf %518, %519 : vector<8x32xf32>
    %521 = vector.extract_strided_slice %504 {offsets = [0, 64], sizes = [8, 32], strides = [1, 1]} : vector<8x96xf32> to vector<8x32xf32>
    %522 = vector.extract_strided_slice %502 {offsets = [0, 64], sizes = [8, 32], strides = [1, 1]} : vector<8x96xf32> to vector<8x32xf32>
    %523 = arith.mulf %512, %522 : vector<8x32xf32>
    %524 = arith.addf %521, %523 : vector<8x32xf32>
    %525 = math.tanh %524 : vector<8x32xf32>
    %cst_169 = arith.constant 1.000000e+00 : f32
    %526 = vector.broadcast %cst_169 : f32 to vector<8x32xf32>
    %527 = arith.subf %526, %520 : vector<8x32xf32>
    %528 = arith.mulf %527, %525 : vector<8x32xf32>
    %529 = arith.mulf %520, %500 : vector<8x32xf32>
    %530 = arith.addf %528, %529 : vector<8x32xf32>
    %c0_170 = arith.constant 0 : index
    %c0_171 = arith.constant 0 : index
    %c0_172 = arith.constant 0 : index
    %531 = vector.load %arg9[%c0_170, %c0_171, %c0_172] : memref<2x8x32xf32, #tpu.memory_space<vmem>>, vector<1x8x32xf32>
    %532 = vector.shape_cast %531 : vector<1x8x32xf32> to vector<8x32xf32>
    %533 = vector.shape_cast %530 : vector<8x32xf32> to vector<1x8x32xf32>
    tpu.vector_store %arg9[%c0_170, %c0_171, %c0_172], %533 {strides = array<i32>} : memref<2x8x32xf32, #tpu.memory_space<vmem>>, vector<1x8x32xf32>,
    %c1_173 = arith.constant 1 : index
    %c0_174 = arith.constant 0 : index
    %c0_175 = arith.constant 0 : index
    %534 = vector.load %arg9[%c1_173, %c0_174, %c0_175] : memref<2x8x32xf32, #tpu.memory_space<vmem>>, vector<1x8x32xf32>
    %535 = vector.shape_cast %534 : vector<1x8x32xf32> to vector<8x32xf32>
    %536 = tpu.concatenate %530, %535 in 1 : vector<8x32xf32>, vector<8x32xf32> -> vector<8x64xf32>
    %cst_176 = arith.constant dense<0.000000e+00> : vector<8x192xf32>
    %537 = tpu.matmul %536, %9, %cst_176 {dimension_numbers = #tpu.dot_dimension_numbers<[1], [0], [0], [1], [0, 0, 1, 1], [], []>} : vector<8x64xf32>, vector<64x192xf32>, vector<8x192xf32> -> vector<8x192xf32>
    %538 = arith.addf %537, %12 : vector<8x192xf32>
    %539 = vector.extract_strided_slice %538 {offsets = [0, 0], sizes = [8, 96], strides = [1, 1]} : vector<8x192xf32> to vector<8x96xf32>
    %540 = vector.extract_strided_slice %538 {offsets = [0, 96], sizes = [8, 96], strides = [1, 1]} : vector<8x192xf32> to vector<8x96xf32>
    %541 = vector.extract_strided_slice %539 {offsets = [0, 0], sizes = [8, 32], strides = [1, 1]} : vector<8x96xf32> to vector<8x32xf32>
    %542 = vector.extract_strided_slice %540 {offsets = [0, 0], sizes = [8, 32], strides = [1, 1]} : vector<8x96xf32> to vector<8x32xf32>
    %543 = arith.addf %541, %542 : vector<8x32xf32>
    %544 = arith.negf %543 : vector<8x32xf32>
    %545 = math.exp %544 : vector<8x32xf32>
    %cst_177 = arith.constant 1.000000e+00 : f32
    %546 = vector.broadcast %cst_177 : f32 to vector<8x32xf32>
    %547 = arith.addf %546, %545 : vector<8x32xf32>
    %548 = arith.divf %546, %547 : vector<8x32xf32>
    %549 = vector.extract_strided_slice %539 {offsets = [0, 32], sizes = [8, 32], strides = [1, 1]} : vector<8x96xf32> to vector<8x32xf32>
    %550 = vector.extract_strided_slice %540 {offsets = [0, 32], sizes = [8, 32], strides = [1, 1]} : vector<8x96xf32> to vector<8x32xf32>
    %551 = arith.addf %549, %550 : vector<8x32xf32>
    %552 = arith.negf %551 : vector<8x32xf32>
    %553 = math.exp %552 : vector<8x32xf32>
    %cst_178 = arith.constant 1.000000e+00 : f32
    %554 = vector.broadcast %cst_178 : f32 to vector<8x32xf32>
    %555 = arith.addf %554, %553 : vector<8x32xf32>
    %556 = arith.divf %554, %555 : vector<8x32xf32>
    %557 = vector.extract_strided_slice %539 {offsets = [0, 64], sizes = [8, 32], strides = [1, 1]} : vector<8x96xf32> to vector<8x32xf32>
    %558 = vector.extract_strided_slice %540 {offsets = [0, 64], sizes = [8, 32], strides = [1, 1]} : vector<8x96xf32> to vector<8x32xf32>
    %559 = arith.mulf %548, %558 : vector<8x32xf32>
    %560 = arith.addf %557, %559 : vector<8x32xf32>
    %561 = math.tanh %560 : vector<8x32xf32>
    %cst_179 = arith.constant 1.000000e+00 : f32
    %562 = vector.broadcast %cst_179 : f32 to vector<8x32xf32>
    %563 = arith.subf %562, %556 : vector<8x32xf32>
    %564 = arith.mulf %563, %561 : vector<8x32xf32>
    %565 = arith.mulf %556, %535 : vector<8x32xf32>
    %566 = arith.addf %564, %565 : vector<8x32xf32>
    %c1_180 = arith.constant 1 : index
    %c0_181 = arith.constant 0 : index
    %c0_182 = arith.constant 0 : index
    %567 = vector.load %arg9[%c1_180, %c0_181, %c0_182] : memref<2x8x32xf32, #tpu.memory_space<vmem>>, vector<1x8x32xf32>
    %568 = vector.shape_cast %567 : vector<1x8x32xf32> to vector<8x32xf32>
    %569 = vector.shape_cast %566 : vector<8x32xf32> to vector<1x8x32xf32>
    tpu.vector_store %arg9[%c1_180, %c0_181, %c0_182], %569 {strides = array<i32>} : memref<2x8x32xf32, #tpu.memory_space<vmem>>, vector<1x8x32xf32>,
    %c6_i32 = arith.constant 6 : i32
    %570 = arith.addi %8, %c6_i32 : i32
    %571 = vector.broadcast %570 : i32 to vector<8x1xi32>
    %572 = arith.cmpi slt, %571, %7 : vector<8x1xi32>
    %573 = arith.extui %572 : vector<8x1xi1> to vector<8x1xi32>
    %574 = arith.sitofp %573 : vector<8x1xi32> to vector<8x1xf32>
    %575 = vector.broadcast %574 : vector<8x1xf32> to vector<8x32xf32>
    %576 = arith.mulf %566, %575 : vector<8x32xf32>
    %c6_183 = arith.constant 6 : index
    %c0_184 = arith.constant 0 : index
    %c0_185 = arith.constant 0 : index
    %577 = vector.load %arg8[%c6_183, %c0_184, %c0_185] : memref<8x8x32xf32, #tpu.memory_space<vmem>>, vector<1x8x32xf32>
    %578 = vector.shape_cast %577 : vector<1x8x32xf32> to vector<8x32xf32>
    %579 = vector.shape_cast %576 : vector<8x32xf32> to vector<1x8x32xf32>
    tpu.vector_store %arg8[%c6_183, %c0_184, %c0_185], %579 {strides = array<i32>} : memref<8x8x32xf32, #tpu.memory_space<vmem>>, vector<1x8x32xf32>,
    %c0_186 = arith.constant 0 : index
    %c0_187 = arith.constant 0 : index
    %c0_188 = arith.constant 0 : index
    %580 = vector.load %arg9[%c0_186, %c0_187, %c0_188] : memref<2x8x32xf32, #tpu.memory_space<vmem>>, vector<1x8x32xf32>
    %581 = vector.shape_cast %580 : vector<1x8x32xf32> to vector<8x32xf32>
    %cst_189 = arith.constant dense<0.000000e+00> : vector<8x96xf32>
    %582 = tpu.matmul %581, %3, %cst_189 {dimension_numbers = #tpu.dot_dimension_numbers<[1], [0], [0], [1], [0, 0, 1, 1], [], []>} : vector<8x32xf32>, vector<32x96xf32>, vector<8x96xf32> -> vector<8x96xf32>
    %583 = arith.addf %582, %6 : vector<8x96xf32>
    %c7 = arith.constant 7 : index
    %c0_190 = arith.constant 0 : index
    %c0_191 = arith.constant 0 : index
    %584 = vector.load %arg2[%c7, %c0_190, %c0_191] : memref<8x8x96xf32, #tpu.memory_space<vmem>>, vector<1x8x96xf32>
    %585 = vector.shape_cast %584 : vector<1x8x96xf32> to vector<8x96xf32>
    %586 = vector.extract_strided_slice %585 {offsets = [0, 0], sizes = [8, 32], strides = [1, 1]} : vector<8x96xf32> to vector<8x32xf32>
    %587 = vector.extract_strided_slice %583 {offsets = [0, 0], sizes = [8, 32], strides = [1, 1]} : vector<8x96xf32> to vector<8x32xf32>
    %588 = arith.addf %586, %587 : vector<8x32xf32>
    %589 = arith.negf %588 : vector<8x32xf32>
    %590 = math.exp %589 : vector<8x32xf32>
    %cst_192 = arith.constant 1.000000e+00 : f32
    %591 = vector.broadcast %cst_192 : f32 to vector<8x32xf32>
    %592 = arith.addf %591, %590 : vector<8x32xf32>
    %593 = arith.divf %591, %592 : vector<8x32xf32>
    %594 = vector.extract_strided_slice %585 {offsets = [0, 32], sizes = [8, 32], strides = [1, 1]} : vector<8x96xf32> to vector<8x32xf32>
    %595 = vector.extract_strided_slice %583 {offsets = [0, 32], sizes = [8, 32], strides = [1, 1]} : vector<8x96xf32> to vector<8x32xf32>
    %596 = arith.addf %594, %595 : vector<8x32xf32>
    %597 = arith.negf %596 : vector<8x32xf32>
    %598 = math.exp %597 : vector<8x32xf32>
    %cst_193 = arith.constant 1.000000e+00 : f32
    %599 = vector.broadcast %cst_193 : f32 to vector<8x32xf32>
    %600 = arith.addf %599, %598 : vector<8x32xf32>
    %601 = arith.divf %599, %600 : vector<8x32xf32>
    %602 = vector.extract_strided_slice %585 {offsets = [0, 64], sizes = [8, 32], strides = [1, 1]} : vector<8x96xf32> to vector<8x32xf32>
    %603 = vector.extract_strided_slice %583 {offsets = [0, 64], sizes = [8, 32], strides = [1, 1]} : vector<8x96xf32> to vector<8x32xf32>
    %604 = arith.mulf %593, %603 : vector<8x32xf32>
    %605 = arith.addf %602, %604 : vector<8x32xf32>
    %606 = math.tanh %605 : vector<8x32xf32>
    %cst_194 = arith.constant 1.000000e+00 : f32
    %607 = vector.broadcast %cst_194 : f32 to vector<8x32xf32>
    %608 = arith.subf %607, %601 : vector<8x32xf32>
    %609 = arith.mulf %608, %606 : vector<8x32xf32>
    %610 = arith.mulf %601, %581 : vector<8x32xf32>
    %611 = arith.addf %609, %610 : vector<8x32xf32>
    %c0_195 = arith.constant 0 : index
    %c0_196 = arith.constant 0 : index
    %c0_197 = arith.constant 0 : index
    %612 = vector.load %arg9[%c0_195, %c0_196, %c0_197] : memref<2x8x32xf32, #tpu.memory_space<vmem>>, vector<1x8x32xf32>
    %613 = vector.shape_cast %612 : vector<1x8x32xf32> to vector<8x32xf32>
    %614 = vector.shape_cast %611 : vector<8x32xf32> to vector<1x8x32xf32>
    tpu.vector_store %arg9[%c0_195, %c0_196, %c0_197], %614 {strides = array<i32>} : memref<2x8x32xf32, #tpu.memory_space<vmem>>, vector<1x8x32xf32>,
    %c1_198 = arith.constant 1 : index
    %c0_199 = arith.constant 0 : index
    %c0_200 = arith.constant 0 : index
    %615 = vector.load %arg9[%c1_198, %c0_199, %c0_200] : memref<2x8x32xf32, #tpu.memory_space<vmem>>, vector<1x8x32xf32>
    %616 = vector.shape_cast %615 : vector<1x8x32xf32> to vector<8x32xf32>
    %617 = tpu.concatenate %611, %616 in 1 : vector<8x32xf32>, vector<8x32xf32> -> vector<8x64xf32>
    %cst_201 = arith.constant dense<0.000000e+00> : vector<8x192xf32>
    %618 = tpu.matmul %617, %9, %cst_201 {dimension_numbers = #tpu.dot_dimension_numbers<[1], [0], [0], [1], [0, 0, 1, 1], [], []>} : vector<8x64xf32>, vector<64x192xf32>, vector<8x192xf32> -> vector<8x192xf32>
    %619 = arith.addf %618, %12 : vector<8x192xf32>
    %620 = vector.extract_strided_slice %619 {offsets = [0, 0], sizes = [8, 96], strides = [1, 1]} : vector<8x192xf32> to vector<8x96xf32>
    %621 = vector.extract_strided_slice %619 {offsets = [0, 96], sizes = [8, 96], strides = [1, 1]} : vector<8x192xf32> to vector<8x96xf32>
    %622 = vector.extract_strided_slice %620 {offsets = [0, 0], sizes = [8, 32], strides = [1, 1]} : vector<8x96xf32> to vector<8x32xf32>
    %623 = vector.extract_strided_slice %621 {offsets = [0, 0], sizes = [8, 32], strides = [1, 1]} : vector<8x96xf32> to vector<8x32xf32>
    %624 = arith.addf %622, %623 : vector<8x32xf32>
    %625 = arith.negf %624 : vector<8x32xf32>
    %626 = math.exp %625 : vector<8x32xf32>
    %cst_202 = arith.constant 1.000000e+00 : f32
    %627 = vector.broadcast %cst_202 : f32 to vector<8x32xf32>
    %628 = arith.addf %627, %626 : vector<8x32xf32>
    %629 = arith.divf %627, %628 : vector<8x32xf32>
    %630 = vector.extract_strided_slice %620 {offsets = [0, 32], sizes = [8, 32], strides = [1, 1]} : vector<8x96xf32> to vector<8x32xf32>
    %631 = vector.extract_strided_slice %621 {offsets = [0, 32], sizes = [8, 32], strides = [1, 1]} : vector<8x96xf32> to vector<8x32xf32>
    %632 = arith.addf %630, %631 : vector<8x32xf32>
    %633 = arith.negf %632 : vector<8x32xf32>
    %634 = math.exp %633 : vector<8x32xf32>
    %cst_203 = arith.constant 1.000000e+00 : f32
    %635 = vector.broadcast %cst_203 : f32 to vector<8x32xf32>
    %636 = arith.addf %635, %634 : vector<8x32xf32>
    %637 = arith.divf %635, %636 : vector<8x32xf32>
    %638 = vector.extract_strided_slice %620 {offsets = [0, 64], sizes = [8, 32], strides = [1, 1]} : vector<8x96xf32> to vector<8x32xf32>
    %639 = vector.extract_strided_slice %621 {offsets = [0, 64], sizes = [8, 32], strides = [1, 1]} : vector<8x96xf32> to vector<8x32xf32>
    %640 = arith.mulf %629, %639 : vector<8x32xf32>
    %641 = arith.addf %638, %640 : vector<8x32xf32>
    %642 = math.tanh %641 : vector<8x32xf32>
    %cst_204 = arith.constant 1.000000e+00 : f32
    %643 = vector.broadcast %cst_204 : f32 to vector<8x32xf32>
    %644 = arith.subf %643, %637 : vector<8x32xf32>
    %645 = arith.mulf %644, %642 : vector<8x32xf32>
    %646 = arith.mulf %637, %616 : vector<8x32xf32>
    %647 = arith.addf %645, %646 : vector<8x32xf32>
    %c1_205 = arith.constant 1 : index
    %c0_206 = arith.constant 0 : index
    %c0_207 = arith.constant 0 : index
    %648 = vector.load %arg9[%c1_205, %c0_206, %c0_207] : memref<2x8x32xf32, #tpu.memory_space<vmem>>, vector<1x8x32xf32>
    %649 = vector.shape_cast %648 : vector<1x8x32xf32> to vector<8x32xf32>
    %650 = vector.shape_cast %647 : vector<8x32xf32> to vector<1x8x32xf32>
    tpu.vector_store %arg9[%c1_205, %c0_206, %c0_207], %650 {strides = array<i32>} : memref<2x8x32xf32, #tpu.memory_space<vmem>>, vector<1x8x32xf32>,
    %c7_i32 = arith.constant 7 : i32
    %651 = arith.addi %8, %c7_i32 : i32
    %652 = vector.broadcast %651 : i32 to vector<8x1xi32>
    %653 = arith.cmpi slt, %652, %7 : vector<8x1xi32>
    %654 = arith.extui %653 : vector<8x1xi1> to vector<8x1xi32>
    %655 = arith.sitofp %654 : vector<8x1xi32> to vector<8x1xf32>
    %656 = vector.broadcast %655 : vector<8x1xf32> to vector<8x32xf32>
    %657 = arith.mulf %647, %656 : vector<8x32xf32>
    %c7_208 = arith.constant 7 : index
    %c0_209 = arith.constant 0 : index
    %c0_210 = arith.constant 0 : index
    %658 = vector.load %arg8[%c7_208, %c0_209, %c0_210] : memref<8x8x32xf32, #tpu.memory_space<vmem>>, vector<1x8x32xf32>
    %659 = vector.shape_cast %658 : vector<1x8x32xf32> to vector<8x32xf32>
    %660 = vector.shape_cast %657 : vector<8x32xf32> to vector<1x8x32xf32>
    tpu.vector_store %arg8[%c7_208, %c0_209, %c0_210], %660 {strides = array<i32>} : memref<8x8x32xf32, #tpu.memory_space<vmem>>, vector<1x8x32xf32>,
    return
  }
  func.func @transform_0(%arg0: i32, %arg1: i32) -> (i32, i32, i32) {
    %c0_i32 = arith.constant 0 : i32
    %c0_i32_0 = arith.constant 0 : i32
    return %arg1, %arg0, %c0_i32 : i32, i32, i32
  }
  func.func @transform_1(%arg0: i32, %arg1: i32) -> (i32, i32) {
    %c0_i32 = arith.constant 0 : i32
    %c0_i32_0 = arith.constant 0 : i32
    return %arg0, %c0_i32 : i32, i32
  }
  func.func @transform_2(%arg0: i32, %arg1: i32) -> (i32, i32) {
    %c0_i32 = arith.constant 0 : i32
    %c0_i32_0 = arith.constant 0 : i32
    %c0_i32_1 = arith.constant 0 : i32
    return %c0_i32, %c0_i32_0 : i32, i32
  }
  func.func @transform_3(%arg0: i32, %arg1: i32) -> (i32, i32) {
    %c0_i32 = arith.constant 0 : i32
    %c0_i32_0 = arith.constant 0 : i32
    %c0_i32_1 = arith.constant 0 : i32
    return %c0_i32, %c0_i32_0 : i32, i32
  }
  func.func @transform_4(%arg0: i32, %arg1: i32) -> (i32, i32) {
    %c0_i32 = arith.constant 0 : i32
    %c0_i32_0 = arith.constant 0 : i32
    %c0_i32_1 = arith.constant 0 : i32
    return %c0_i32, %c0_i32_0 : i32, i32
  }
  func.func @transform_5(%arg0: i32, %arg1: i32) -> (i32, i32) {
    %c0_i32 = arith.constant 0 : i32
    %c0_i32_0 = arith.constant 0 : i32
    %c0_i32_1 = arith.constant 0 : i32
    return %c0_i32, %c0_i32_0 : i32, i32
  }
  func.func @transform_6(%arg0: i32, %arg1: i32) -> (i32, i32, i32) {
    %c0_i32 = arith.constant 0 : i32
    %c0_i32_0 = arith.constant 0 : i32
    return %arg1, %arg0, %c0_i32 : i32, i32, i32
  }
}

module attributes {stable_mosaic.version = 11 : i64} {
  func.func @_proj_kernel(%arg0: i32, %arg1: i32, %arg2: memref<48x96xf32, #tpu.memory_space<vmem>>, %arg3: memref<96x128xf32, #tpu.memory_space<vmem>>, %arg4: memref<1x128xf32, #tpu.memory_space<vmem>>, %arg5: memref<48x128xf32, #tpu.memory_space<vmem>>) attributes {dimension_semantics = [#tpu.dimension_semantics<parallel>, #tpu.dimension_semantics<parallel>], iteration_bounds = array<i64: 1, 1>, scalar_prefetch = 0 : i64, scratch_operands = 0 : i64, tpu.core_type = #tpu.core_type<tc>, window_params = [{transform_indices = @transform_0, window_bounds = array<i64: 48, 96>}, {transform_indices = @transform_1, window_bounds = array<i64: 96, 128>}, {transform_indices = @transform_2, window_bounds = array<i64: 1, 128>}, {transform_indices = @transform_3, window_bounds = array<i64: 48, 128>}]} {
    %c0 = arith.constant 0 : index
    %c0_0 = arith.constant 0 : index
    %0 = vector.load %arg2[%c0, %c0_0] : memref<48x96xf32, #tpu.memory_space<vmem>>, vector<48x96xf32>
    %c0_1 = arith.constant 0 : index
    %c0_2 = arith.constant 0 : index
    %1 = vector.load %arg3[%c0_1, %c0_2] : memref<96x128xf32, #tpu.memory_space<vmem>>, vector<96x128xf32>
    %cst = arith.constant dense<0.000000e+00> : vector<48x128xf32>
    %2 = tpu.matmul %0, %1, %cst {dimension_numbers = #tpu.dot_dimension_numbers<[1], [0], [0], [1], [0, 0, 1, 1], [], []>} : vector<48x96xf32>, vector<96x128xf32>, vector<48x128xf32> -> vector<48x128xf32>
    %c0_3 = arith.constant 0 : index
    %c0_4 = arith.constant 0 : index
    %3 = vector.load %arg4[%c0_3, %c0_4] : memref<1x128xf32, #tpu.memory_space<vmem>>, vector<1x128xf32>
    %4 = vector.broadcast %3 : vector<1x128xf32> to vector<48x128xf32>
    %5 = arith.addf %2, %4 : vector<48x128xf32>
    %c0_5 = arith.constant 0 : index
    %c0_6 = arith.constant 0 : index
    %6 = vector.load %arg5[%c0_5, %c0_6] : memref<48x128xf32, #tpu.memory_space<vmem>>, vector<48x128xf32>
    tpu.vector_store %arg5[%c0_5, %c0_6], %5 {strides = array<i32>} : memref<48x128xf32, #tpu.memory_space<vmem>>, vector<48x128xf32>,
    return
  }
  func.func @transform_0(%arg0: i32, %arg1: i32) -> (i32, i32) {
    %c0_i32 = arith.constant 0 : i32
    %c0_i32_0 = arith.constant 0 : i32
    return %arg1, %c0_i32 : i32, i32
  }
  func.func @transform_1(%arg0: i32, %arg1: i32) -> (i32, i32) {
    %c0_i32 = arith.constant 0 : i32
    %c0_i32_0 = arith.constant 0 : i32
    return %c0_i32, %arg0 : i32, i32
  }
  func.func @transform_2(%arg0: i32, %arg1: i32) -> (i32, i32) {
    %c0_i32 = arith.constant 0 : i32
    %c0_i32_0 = arith.constant 0 : i32
    return %c0_i32, %arg0 : i32, i32
  }
  func.func @transform_3(%arg0: i32, %arg1: i32) -> (i32, i32) {
    %c0_i32 = arith.constant 0 : i32
    return %arg1, %arg0 : i32, i32
  }
}

</mosaic_0001>

<bundles_post_ra>
// kernel: custom-call
= control target key start
LH: loop header
LB: loop body
LE: loop exit
PB: predicated region body
PF: predicated region fallthrough
CT: control target
= control target key end

     0   :  { %5 = vsyncpa [#allocation8], 0  ;;  %v1326_v0 = vmov 2147483648   ;;  %v1327_v1 = vmov 2147483647   ;;  %s1502_s0 = inlined_call_operand.vmem [shape: f32[6,1000], index: 0, kind: input, shape index: {}]   ;;  %s1503_s1 = inlined_call_operand.hbm [shape: f32[6,5], index: 1, kind: output, shape index: {0}]   ;;  %s1504_s2 = inlined_call_operand.vmem [shape: s32[6,5], index: 2, kind: output, shape index: {1}]  }
   0x1   :  { %7 = vst [vmem:[#allocation10] sm:$0xff] %v1326_v0  ;;  %8 = vst [vmem:[#allocation12] sm:$0xff] %v1327_v1 }
   0x2   :  { %v25_v2 = vld [vmem:[%s1502_s0] sm:$0xff]  ;;  %v27_v3 = vld [vmem:[%s1502_s0 + $0x8] sm:$0xff]  ;;  %v46_v4 = vlaneseq  ;;  %v29_v5 = vld [vmem:[%s1502_s0 + $0x10] sm:$0xff]  ;;  %v1328_v7 = vmov 2147483648   ;;  %v1329_v8 = vmov 2147483647  }
   0x3   :  { %v31_v6 = vld [vmem:[%s1502_s0 + $0x18] sm:$0xff]  ;;  %159 = vst [vmem:[#allocation11] sm:$0xff] %v1328_v7  ;;  %160 = vst [vmem:[#allocation13] sm:$0xff] %v1329_v8  ;;  %v33_v9 = vld [vmem:[%s1502_s0 + $0x20] sm:$0xff]  ;;  %v57_v12 = vsub.s32 2147483647, %v25_v2 }
   0x4   :  { %v35_v10 = vld [vmem:[%s1502_s0 + $0x28] sm:$0xff]  ;;  %v1370_v11 = vshrl.u32 %v46_v4, 7  ;;  %v37_v13 = vld [vmem:[%s1502_s0 + $0x30] sm:$0xff]  ;;  %v39_v14 = vld [vmem:[%s1502_s0 + $0x38] sm:$0xff]  ;;  %v47_v15 = vand.u32 127, %v46_v4  ;;  %vm56_vm0 = vcmp.lt.s32.totalorder %v25_v2, 0 }
   0x5   :  { %v66_v16 = vsub.s32 2147483647, %v27_v3  ;;  %vm65_vm1 = vcmp.lt.s32.totalorder %v27_v3, 0  ;;  %v75_v18 = vsub.s32 2147483647, %v29_v5  ;;  %vm74_vm2 = vcmp.lt.s32.totalorder %v29_v5, 0 }
   0x6   :  { %v50_v17 = vshrl.u32 %v1370_v11, 3  ;;  %v84_v19 = vsub.s32 2147483647, %v31_v6  ;;  %vm83_vm3 = vcmp.lt.s32.totalorder %v31_v6, 0  ;;  %v93_v20 = vsub.s32 2147483647, %v33_v9 }
   0x7   :  { %v102_v21 = vsub.s32 2147483647, %v35_v10  ;;  %vm92_vm4 = vcmp.lt.s32.totalorder %v33_v9, 0  ;;  %vm101_vm5 = vcmp.lt.s32.totalorder %v35_v10, 0  ;;  %vm110_vm6 = vcmp.lt.s32.totalorder %v37_v13, 0  ;;  %s1381_s0 = smov 0  }
   0x8   :  { %v52_v22 = vmul.u32 128, %v50_v17  ;;  %v58_v23 = vsel %vm56_vm0, %v57_v12, %v25_v2  ;;  %v111_v24 = vsub.s32 2147483647, %v37_v13  ;;  %vm119_vm7 = vcmp.lt.s32.totalorder %v39_v14, 0 }
   0x9   :  { %v120_v25 = vsub.s32 2147483647, %v39_v14  ;;  %v67_v27 = vsel %vm65_vm1, %v66_v16, %v27_v3  ;;  %v76_v28 = vsel %vm74_vm2, %v75_v18, %v29_v5  ;;  %v85_v29 = vsel %vm83_vm3, %v84_v19, %v31_v6 }
   0xa   :  { %v53_v26 = vadd.s32 %v52_v22, %v47_v15  ;;  %v94_v30 = vsel %vm92_vm4, %v93_v20, %v33_v9  ;;  %v103_v31 = vsel %vm101_vm5, %v102_v21, %v35_v10  ;;  %v112_v32 = vsel %vm110_vm6, %v111_v24, %v37_v13 }
   0xb   :  { %v121_v33 = vsel %vm119_vm7, %v120_v25, %v39_v14 }
   0xc   :  { %vm60_vm8 = vcmp.lt.s32.totalorder %v53_v26, 1000  ;;  %v68_v34 = vadd.s32 128, %v53_v26  ;;  %v77_v35 = vadd.s32 256, %v53_v26  ;;  %v86_v36 = vadd.s32 384, %v53_v26  ;;  %136 = vst [vmem:[#allocation15] sm:$0xff] %v53_v26 }
   0xd   :  { %v61_v37 = vsel %vm60_vm8, %v58_v23, 2147483648  ;;  %v95_v38 = vadd.s32 512, %v53_v26  ;;  %v104_v39 = vadd.s32 640, %v53_v26  ;;  %v113_v40 = vadd.s32 768, %v53_v26 }
   0xe   :  { %62 = vst [vmem:[#allocation14] sm:$0xff] %v61_v37  ;;  %vm69_vm9 = vcmp.lt.s32.totalorder %v68_v34, 1000  ;;  %vm78_vm10 = vcmp.lt.s32.totalorder %v77_v35, 1000  ;;  %vm87_vm11 = vcmp.lt.s32.totalorder %v86_v36, 1000  ;;  %v122_v41 = vadd.s32 896, %v53_v26  ;;  %139 = vst [vmem:[#allocation15 + $0x8] sm:$0xff] %v68_v34 }
   0xf   :  { %142 = vst [vmem:[#allocation15 + $0x10] sm:$0xff] %v77_v35  ;;  %145 = vst [vmem:[#allocation15 + $0x18] sm:$0xff] %v86_v36  ;;  %v70_v42 = vsel %vm69_vm9, %v67_v27, 2147483648  ;;  %v79_v43 = vsel %vm78_vm10, %v76_v28, 2147483648  ;;  %v88_v44 = vsel %vm87_vm11, %v85_v29, 2147483648  ;;  %vm96_vm12 = vcmp.lt.s32.totalorder %v95_v38, 1000 }
  0x10   :  { %148 = vst [vmem:[#allocation15 + $0x20] sm:$0xff] %v95_v38  ;;  %151 = vst [vmem:[#allocation15 + $0x28] sm:$0xff] %v104_v39  ;;  %v97_v45 = vsel %vm96_vm12, %v94_v30, 2147483648  ;;  %vm105_vm13 = vcmp.lt.s32.totalorder %v104_v39, 1000  ;;  %vm114_vm14 = vcmp.lt.s32.totalorder %v113_v40, 1000  ;;  %vm123_vm15 = vcmp.lt.s32.totalorder %v122_v41, 1000 }
  0x11   :  { %154 = vst [vmem:[#allocation15 + $0x30] sm:$0xff] %v113_v40  ;;  %71 = vst [vmem:[#allocation14 + $0x8] sm:$0xff] %v70_v42  ;;  %v106_v46 = vsel %vm105_vm13, %v103_v31, 2147483648  ;;  %v115_v47 = vsel %vm114_vm14, %v112_v32, 2147483648  ;;  %v124_v48 = vsel %vm123_vm15, %v121_v33, 2147483648 }
  0x12   :  { %80 = vst [vmem:[#allocation14 + $0x10] sm:$0xff] %v79_v43  ;;  %89 = vst [vmem:[#allocation14 + $0x18] sm:$0xff] %v88_v44 }
  0x13   :  { %157 = vst [vmem:[#allocation15 + $0x38] sm:$0xff] %v122_v41  ;;  %98 = vst [vmem:[#allocation14 + $0x20] sm:$0xff] %v97_v45 }
  0x14   :  { %107 = vst [vmem:[#allocation14 + $0x28] sm:$0xff] %v106_v46  ;;  %116 = vst [vmem:[#allocation14 + $0x30] sm:$0xff] %v115_v47 }
  0x15   :  { %125 = vst [vmem:[#allocation14 + $0x38] sm:$0xff] %v124_v48 }
  0x16 LB: > { %v168_v49 = vld [vmem:[#allocation14] sm:$0xff]  ;;  %v174_v52 = vld [vmem:[#allocation15 + $0x8] sm:$0xff]  ;;  %v187_v54 = vld [vmem:[#allocation15 + $0x10] sm:$0xff]  ;;  %s539_s25 = scalar_lea.vmem [#allocation11], %s1324_s0  ;;  %s541_s26 = scalar_lea.vmem [#allocation13], %s1324_s0  ;;  %s1324_s0 = sphi %s1381_s0, %s167_s0  }
  0x17   : > { %v169_v50 = vld [vmem:[#allocation15] sm:$0xff]  ;;  %v200_v58 = vld [vmem:[#allocation15 + $0x18] sm:$0xff]  ;;  %v226_v2 = vld [vmem:[#allocation15 + $0x28] sm:$0xff]  ;;  %s167_s0 = sadd.s32 1, %s1324_s0  }
  0x18   : > { %v172_v51 = vld [vmem:[#allocation14 + $0x8] sm:$0xff]  ;;  %vm178_vm2 = vcmp.lt.s32.totalorder %v174_v52, %v169_v50  ;;  %v213_v62 = vld [vmem:[#allocation15 + $0x20] sm:$0xff]  ;;  %v239_v7 = vld [vmem:[#allocation15 + $0x30] sm:$0xff]  ;;  %p164_p6 = scmp.ge.s32.totalorder %s167_s0, 5  }
  0x19   : > { %vm176_vm0 = vcmp.gt.s32.totalorder %v172_v51, %v168_v49  ;;  %vm177_vm1 = vcmp.eq.s32.totalorder %v172_v51, %v168_v49  ;;  %v185_v53 = vld [vmem:[#allocation14 + $0x10] sm:$0xff]  ;;  %v198_v57 = vld [vmem:[#allocation14 + $0x18] sm:$0xff]  ;;  %s1335_s0 = smov (%p164_p6), [#allocation7]  }
  0x1a   : > { %vm179_vm3 = vmand %vm177_vm1, %vm178_vm2  ;;  %v211_v61 = vld [vmem:[#allocation14 + $0x20] sm:$0xff]  ;;  %v252_v12 = vld [vmem:[#allocation15 + $0x38] sm:$0xff] }
  0x1b   : > { %vm180_vm4 = vmor %vm176_vm0, %vm179_vm3  ;;  %v224_v1 = vld [vmem:[#allocation14 + $0x28] sm:$0xff]  ;;  %v237_v6 = vld [vmem:[#allocation14 + $0x30] sm:$0xff] }
  0x1c   : > { %v181_v55 = vsel %vm180_vm4, %v172_v51, %v168_v49  ;;  %v182_v56 = vsel %vm180_vm4, %v174_v52, %v169_v50  ;;  %v250_v10 = vld [vmem:[#allocation14 + $0x38] sm:$0xff] }
  0x1d   : > { %vm189_vm5 = vcmp.gt.s32.totalorder %v185_v53, %v181_v55  ;;  %vm190_vm6 = vcmp.eq.s32.totalorder %v185_v53, %v181_v55  ;;  %vm191_vm7 = vcmp.lt.s32.totalorder %v187_v54, %v182_v56 }
  0x1e   : > { %vm192_vm8 = vmand %vm190_vm6, %vm191_vm7 }
  0x1f   : > { %vm193_vm9 = vmor %vm189_vm5, %vm192_vm8 }
  0x20   : > { %v194_v59 = vsel %vm193_vm9, %v185_v53, %v181_v55  ;;  %v195_v60 = vsel %vm193_vm9, %v187_v54, %v182_v56 }
  0x21   : > { %vm202_vm10 = vcmp.gt.s32.totalorder %v198_v57, %v194_v59  ;;  %vm203_vm11 = vcmp.eq.s32.totalorder %v198_v57, %v194_v59  ;;  %vm204_vm12 = vcmp.lt.s32.totalorder %v200_v58, %v195_v60 }
  0x22   : > { %vm205_vm13 = vmand %vm203_vm11, %vm204_vm12 }
  0x23   : > { %vm206_vm14 = vmor %vm202_vm10, %vm205_vm13 }
  0x24   : > { %v207_v63 = vsel %vm206_vm14, %v198_v57, %v194_v59  ;;  %v208_v0 = vsel %vm206_vm14, %v200_v58, %v195_v60 }
  0x25   : > { %vm215_vm15 = vcmp.gt.s32.totalorder %v211_v61, %v207_v63  ;;  %vm216_vm0 = vcmp.eq.s32.totalorder %v211_v61, %v207_v63  ;;  %vm217_vm1 = vcmp.lt.s32.totalorder %v213_v62, %v208_v0 }
  0x26   : > { %vm218_vm2 = vmand %vm216_vm0, %vm217_vm1 }
  0x27   : > { %vm219_vm3 = vmor %vm215_vm15, %vm218_vm2 }
  0x28   : > { %v220_v3 = vsel %vm219_vm3, %v211_v61, %v207_v63  ;;  %v221_v5 = vsel %vm219_vm3, %v213_v62, %v208_v0 }
  0x29   : > { %vm228_vm4 = vcmp.gt.s32.totalorder %v224_v1, %v220_v3  ;;  %vm229_vm5 = vcmp.eq.s32.totalorder %v224_v1, %v220_v3  ;;  %vm230_vm6 = vcmp.lt.s32.totalorder %v226_v2, %v221_v5 }
  0x2a   : > { %vm231_vm7 = vmand %vm229_vm5, %vm230_vm6 }
  0x2b   : > { %vm232_vm8 = vmor %vm228_vm4, %vm231_vm7 }
  0x2c   : > { %v233_v8 = vsel %vm232_vm8, %v224_v1, %v220_v3  ;;  %v234_v9 = vsel %vm232_vm8, %v226_v2, %v221_v5 }
  0x2d   : > { %vm241_vm9 = vcmp.gt.s32.totalorder %v237_v6, %v233_v8  ;;  %vm242_vm10 = vcmp.eq.s32.totalorder %v237_v6, %v233_v8  ;;  %vm243_vm11 = vcmp.lt.s32.totalorder %v239_v7, %v234_v9 }
  0x2e   : > { %vm244_vm12 = vmand %vm242_vm10, %vm243_vm11 }
  0x2f   : > { %vm245_vm13 = vmor %vm241_vm9, %vm244_vm12 }
  0x30   : > { %v246_v13 = vsel %vm245_vm13, %v237_v6, %v233_v8  ;;  %v247_v14 = vsel %vm245_vm13, %v239_v7, %v234_v9 }
  0x31   : > { %vm254_vm14 = vcmp.gt.s32.totalorder %v250_v10, %v246_v13  ;;  %vm255_vm15 = vcmp.eq.s32.totalorder %v250_v10, %v246_v13  ;;  %vm256_vm0 = vcmp.lt.s32.totalorder %v252_v12, %v247_v14 }
  0x32   : > { %vm257_vm1 = vmand %vm255_vm15, %vm256_vm0 }
  0x33   : > { %vm258_vm2 = vmor %vm254_vm14, %vm257_vm1 }
  0x34   : > { %v260_v15 = vsel %vm258_vm2, %v252_v12, %v247_v14  ;;  %v259_v16 = vsel %vm258_vm2, %v250_v10, %v246_v13 }
  0x35   : > { %294 = vxpose.xlu1.b32.start [1/16] %v260_v15, 128  ;;  %262 = vxpose.xlu0.b32.start [1/16] %v259_v16, 128 }
  0x39   : > { %295 = vxpose.xlu1.b32.cont [2/16] %v260_v15, 128  ;;  %263 = vxpose.xlu0.b32.cont [2/16] %v259_v16, 128 }
  0x3d   : > { %296 = vxpose.xlu1.b32.cont [3/16] %v260_v15, 128  ;;  %264 = vxpose.xlu0.b32.cont [3/16] %v259_v16, 128 }
  0x41   : > { %297 = vxpose.xlu1.b32.cont [4/16] %v260_v15, 128  ;;  %265 = vxpose.xlu0.b32.cont [4/16] %v259_v16, 128 }
  0x45   : > { %298 = vxpose.xlu1.b32.cont [5/16] %v260_v15, 128  ;;  %266 = vxpose.xlu0.b32.cont [5/16] %v259_v16, 128 }
  0x49   : > { %299 = vxpose.xlu1.b32.cont [6/16] %v260_v15, 128  ;;  %267 = vxpose.xlu0.b32.cont [6/16] %v259_v16, 128 }
  0x4d   : > { %300 = vxpose.xlu1.b32.cont [7/16] %v260_v15, 128  ;;  %268 = vxpose.xlu0.b32.cont [7/16] %v259_v16, 128 }
  0x51   : > { %301 = vxpose.xlu1.b32.cont [8/16] %v260_v15, 128  ;;  %269 = vxpose.xlu0.b32.cont [8/16] %v259_v16, 128 }
  0x55   : > { %302 = vxpose.xlu1.b32.cont [9/16] %v260_v15, 128  ;;  %270 = vxpose.xlu0.b32.cont [9/16] %v259_v16, 128 }
  0x59   : > { %303 = vxpose.xlu1.b32.cont [10/16] %v260_v15, 128  ;;  %271 = vxpose.xlu0.b32.cont [10/16] %v259_v16, 128 }
  0x5d   : > { %304 = vxpose.xlu1.b32.cont [11/16] %v260_v15, 128  ;;  %272 = vxpose.xlu0.b32.cont [11/16] %v259_v16, 128 }
  0x61   : > { %305 = vxpose.xlu1.b32.cont [12/16] %v260_v15, 128  ;;  %273 = vxpose.xlu0.b32.cont [12/16] %v259_v16, 128 }
  0x65   : > { %306 = vxpose.xlu1.b32.cont [13/16] %v260_v15, 128  ;;  %274 = vxpose.xlu0.b32.cont [13/16] %v259_v16, 128 }
  0x69   : > { %307 = vxpose.xlu1.b32.cont [14/16] %v260_v15, 128  ;;  %275 = vxpose.xlu0.b32.cont [14/16] %v259_v16, 128 }
  0x6d   : > { %308 = vxpose.xlu1.b32.cont [15/16] %v260_v15, 128  ;;  %276 = vxpose.xlu0.b32.cont [15/16] %v259_v16, 128 }
  0x71   : > { %309 = vxpose.xlu1.b32.end [16/16] %v260_v15, 128  ;;  %277 = vxpose.xlu0.b32.end [16/16] %v259_v16, 128 }
  0xb5   : > { %v310_v17 = vpop.trf.xlu1  ;;  %v278_v18 = vpop.trf.xlu0 }
  0xb9   : > { %v311_v19 = vpop.trf.xlu1  ;;  %v279_v20 = vpop.trf.xlu0 }
  0xba   : > { %vm330_vm3 = vcmp.lt.s32.totalorder %v311_v19, %v310_v17  ;;  %vm328_vm4 = vcmp.gt.s32.totalorder %v279_v20, %v278_v18  ;;  %vm329_vm5 = vcmp.eq.s32.totalorder %v279_v20, %v278_v18 }
  0xbb   : > { %vm331_vm6 = vmand %vm329_vm5, %vm330_vm3 }
  0xbc   : > { %vm332_vm7 = vmor %vm328_vm4, %vm331_vm6 }
  0xbd   : > { %v333_v21 = vsel %vm332_vm7, %v279_v20, %v278_v18  ;;  %v312_v22 = vpop.trf.xlu1  ;;  %v334_v23 = vsel %vm332_vm7, %v311_v19, %v310_v17  ;;  %v280_v24 = vpop.trf.xlu0 }
  0xbe   : > { %vm339_vm8 = vcmp.lt.s32.totalorder %v312_v22, %v334_v23  ;;  %vm337_vm9 = vcmp.gt.s32.totalorder %v280_v24, %v333_v21  ;;  %vm338_vm10 = vcmp.eq.s32.totalorder %v280_v24, %v333_v21 }
  0xbf   : > { %vm340_vm11 = vmand %vm338_vm10, %vm339_vm8 }
  0xc0   : > { %vm341_vm12 = vmor %vm337_vm9, %vm340_vm11 }
  0xc1   : > { %v342_v25 = vsel %vm341_vm12, %v280_v24, %v333_v21  ;;  %v313_v26 = vpop.trf.xlu1  ;;  %v343_v27 = vsel %vm341_vm12, %v312_v22, %v334_v23  ;;  %v281_v28 = vpop.trf.xlu0 }
  0xc2   : > { %vm348_vm13 = vcmp.lt.s32.totalorder %v313_v26, %v343_v27  ;;  %vm346_vm14 = vcmp.gt.s32.totalorder %v281_v28, %v342_v25  ;;  %vm347_vm15 = vcmp.eq.s32.totalorder %v281_v28, %v342_v25 }
  0xc3   : > { %vm349_vm0 = vmand %vm347_vm15, %vm348_vm13 }
  0xc4   : > { %vm350_vm1 = vmor %vm346_vm14, %vm349_vm0 }
  0xc5   : > { %v351_v29 = vsel %vm350_vm1, %v281_v28, %v342_v25  ;;  %v314_v30 = vpop.trf.xlu1  ;;  %v352_v31 = vsel %vm350_vm1, %v313_v26, %v343_v27  ;;  %v282_v32 = vpop.trf.xlu0 }
  0xc6   : > { %vm357_vm2 = vcmp.lt.s32.totalorder %v314_v30, %v352_v31  ;;  %vm355_vm3 = vcmp.gt.s32.totalorder %v282_v32, %v351_v29  ;;  %vm356_vm4 = vcmp.eq.s32.totalorder %v282_v32, %v351_v29 }
  0xc7   : > { %vm358_vm5 = vmand %vm356_vm4, %vm357_vm2 }
  0xc8   : > { %vm359_vm6 = vmor %vm355_vm3, %vm358_vm5 }
  0xc9   : > { %v360_v33 = vsel %vm359_vm6, %v282_v32, %v351_v29  ;;  %v315_v34 = vpop.trf.xlu1  ;;  %v361_v35 = vsel %vm359_vm6, %v314_v30, %v352_v31  ;;  %v283_v36 = vpop.trf.xlu0 }
  0xca   : > { %vm366_vm7 = vcmp.lt.s32.totalorder %v315_v34, %v361_v35  ;;  %vm364_vm8 = vcmp.gt.s32.totalorder %v283_v36, %v360_v33  ;;  %vm365_vm9 = vcmp.eq.s32.totalorder %v283_v36, %v360_v33 }
  0xcb   : > { %vm367_vm10 = vmand %vm365_vm9, %vm366_vm7 }
  0xcc   : > { %vm368_vm11 = vmor %vm364_vm8, %vm367_vm10 }
  0xcd   : > { %v369_v37 = vsel %vm368_vm11, %v283_v36, %v360_v33  ;;  %v316_v38 = vpop.trf.xlu1  ;;  %v370_v39 = vsel %vm368_vm11, %v315_v34, %v361_v35  ;;  %v284_v40 = vpop.trf.xlu0 }
  0xce   : > { %vm375_vm12 = vcmp.lt.s32.totalorder %v316_v38, %v370_v39  ;;  %vm373_vm13 = vcmp.gt.s32.totalorder %v284_v40, %v369_v37  ;;  %vm374_vm14 = vcmp.eq.s32.totalorder %v284_v40, %v369_v37 }
  0xcf   : > { %vm376_vm15 = vmand %vm374_vm14, %vm375_vm12 }
  0xd0   : > { %vm377_vm0 = vmor %vm373_vm13, %vm376_vm15 }
  0xd1   : > { %v378_v41 = vsel %vm377_vm0, %v284_v40, %v369_v37  ;;  %v317_v42 = vpop.trf.xlu1  ;;  %v379_v43 = vsel %vm377_vm0, %v316_v38, %v370_v39  ;;  %v285_v44 = vpop.trf.xlu0 }
  0xd2   : > { %vm384_vm1 = vcmp.lt.s32.totalorder %v317_v42, %v379_v43  ;;  %vm382_vm2 = vcmp.gt.s32.totalorder %v285_v44, %v378_v41  ;;  %vm383_vm3 = vcmp.eq.s32.totalorder %v285_v44, %v378_v41 }
  0xd3   : > { %vm385_vm4 = vmand %vm383_vm3, %vm384_vm1 }
  0xd4   : > { %vm386_vm5 = vmor %vm382_vm2, %vm385_vm4 }
  0xd5   : > { %v387_v45 = vsel %vm386_vm5, %v285_v44, %v378_v41  ;;  %v318_v46 = vpop.trf.xlu1  ;;  %v388_v47 = vsel %vm386_vm5, %v317_v42, %v379_v43  ;;  %v286_v48 = vpop.trf.xlu0 }
  0xd6   : > { %vm393_vm6 = vcmp.lt.s32.totalorder %v318_v46, %v388_v47  ;;  %vm391_vm7 = vcmp.gt.s32.totalorder %v286_v48, %v387_v45  ;;  %vm392_vm8 = vcmp.eq.s32.totalorder %v286_v48, %v387_v45 }
  0xd7   : > { %vm394_vm9 = vmand %vm392_vm8, %vm393_vm6 }
  0xd8   : > { %vm395_vm10 = vmor %vm391_vm7, %vm394_vm9 }
  0xd9   : > { %v396_v49 = vsel %vm395_vm10, %v286_v48, %v387_v45  ;;  %v319_v50 = vpop.trf.xlu1  ;;  %v397_v51 = vsel %vm395_vm10, %v318_v46, %v388_v47  ;;  %v287_v52 = vpop.trf.xlu0 }
  0xda   : > { %vm402_vm11 = vcmp.lt.s32.totalorder %v319_v50, %v397_v51  ;;  %vm400_vm12 = vcmp.gt.s32.totalorder %v287_v52, %v396_v49  ;;  %vm401_vm13 = vcmp.eq.s32.totalorder %v287_v52, %v396_v49 }
  0xdb   : > { %vm403_vm14 = vmand %vm401_vm13, %vm402_vm11 }
  0xdc   : > { %vm404_vm15 = vmor %vm400_vm12, %vm403_vm14 }
  0xdd   : > { %v405_v53 = vsel %vm404_vm15, %v287_v52, %v396_v49  ;;  %v320_v54 = vpop.trf.xlu1  ;;  %v406_v55 = vsel %vm404_vm15, %v319_v50, %v397_v51  ;;  %v288_v56 = vpop.trf.xlu0  ;;  %v1330_v52 = vmov 2147483648  }
  0xde   : > { %vm411_vm0 = vcmp.lt.s32.totalorder %v320_v54, %v406_v55  ;;  %vm409_vm1 = vcmp.gt.s32.totalorder %v288_v56, %v405_v53  ;;  %vm410_vm2 = vcmp.eq.s32.totalorder %v288_v56, %v405_v53 }
  0xdf   : > { %vm412_vm3 = vmand %vm410_vm2, %vm411_vm0 }
  0xe0   : > { %vm413_vm4 = vmor %vm409_vm1, %vm412_vm3 }
  0xe1   : > { %v414_v57 = vsel %vm413_vm4, %v288_v56, %v405_v53  ;;  %v321_v58 = vpop.trf.xlu1  ;;  %v415_v59 = vsel %vm413_vm4, %v320_v54, %v406_v55  ;;  %v289_v60 = vpop.trf.xlu0  ;;  %v1331_v53 = vmov 2147483647  }
  0xe2   : > { %vm420_vm5 = vcmp.lt.s32.totalorder %v321_v58, %v415_v59  ;;  %vm418_vm6 = vcmp.gt.s32.totalorder %v289_v60, %v414_v57  ;;  %vm419_vm7 = vcmp.eq.s32.totalorder %v289_v60, %v414_v57 }
  0xe3   : > { %vm421_vm8 = vmand %vm419_vm7, %vm420_vm5 }
  0xe4   : > { %vm422_vm9 = vmor %vm418_vm6, %vm421_vm8 }
  0xe5   : > { %v423_v61 = vsel %vm422_vm9, %v289_v60, %v414_v57  ;;  %v322_v62 = vpop.trf.xlu1  ;;  %v424_v63 = vsel %vm422_vm9, %v321_v58, %v415_v59  ;;  %v290_v0 = vpop.trf.xlu0 }
  0xe6   : > { %vm429_vm10 = vcmp.lt.s32.totalorder %v322_v62, %v424_v63  ;;  %vm427_vm11 = vcmp.gt.s32.totalorder %v290_v0, %v423_v61  ;;  %vm428_vm12 = vcmp.eq.s32.totalorder %v290_v0, %v423_v61 }
  0xe7   : > { %vm430_vm13 = vmand %vm428_vm12, %vm429_vm10 }
  0xe8   : > { %vm431_vm14 = vmor %vm427_vm11, %vm430_vm13 }
  0xe9   : > { %v432_v1 = vsel %vm431_vm14, %v290_v0, %v423_v61  ;;  %v323_v2 = vpop.trf.xlu1  ;;  %v433_v3 = vsel %vm431_vm14, %v322_v62, %v424_v63  ;;  %v291_v5 = vpop.trf.xlu0 }
  0xea   : > { %vm438_vm15 = vcmp.lt.s32.totalorder %v323_v2, %v433_v3  ;;  %vm436_vm0 = vcmp.gt.s32.totalorder %v291_v5, %v432_v1  ;;  %vm437_vm1 = vcmp.eq.s32.totalorder %v291_v5, %v432_v1 }
  0xeb   : > { %vm439_vm2 = vmand %vm437_vm1, %vm438_vm15 }
  0xec   : > { %vm440_vm3 = vmor %vm436_vm0, %vm439_vm2 }
  0xed   : > { %v441_v6 = vsel %vm440_vm3, %v291_v5, %v432_v1  ;;  %v324_v7 = vpop.trf.xlu1  ;;  %v442_v8 = vsel %vm440_vm3, %v323_v2, %v433_v3  ;;  %v292_v9 = vpop.trf.xlu0  ;;  %v733_v2 = vld [vmem:[#allocation10] sm:$0xff] (%p164_p6)  ;;  %v734_v3 = vld [vmem:[#allocation12] sm:$0xff] (%p164_p6)  ;;  %v1332_v5 = vmov (%p164_p6), 839939668  }
  0xee   : > { %vm447_vm4 = vcmp.lt.s32.totalorder %v324_v7, %v442_v8  ;;  %vm445_vm5 = vcmp.gt.s32.totalorder %v292_v9, %v441_v6  ;;  %vm446_vm6 = vcmp.eq.s32.totalorder %v292_v9, %v441_v6 }
  0xef   : > { %vm448_vm7 = vmand %vm446_vm6, %vm447_vm4 }
  0xf0   : > { %vm449_vm8 = vmor %vm445_vm5, %vm448_vm7 }
  0xf1   : > { %v450_v10 = vsel %vm449_vm8, %v292_v9, %v441_v6  ;;  %v325_v12 = vpop.trf.xlu1  ;;  %v451_v13 = vsel %vm449_vm8, %v324_v7, %v442_v8  ;;  %v293_v14 = vpop.trf.xlu0  ;;  %v758_v6 = vunpack.c.l.s4 (%p164_p6), %v1332_v5  ;;  %v1333_v7 = vmov (%p164_p6), 1417023538  }
  0xf2   : > { %vm456_vm9 = vcmp.lt.s32.totalorder %v325_v12, %v451_v13  ;;  %vm454_vm10 = vcmp.gt.s32.totalorder %v293_v14, %v450_v10  ;;  %vm455_vm11 = vcmp.eq.s32.totalorder %v293_v14, %v450_v10  ;;  %v786_v8 = vunpack.c.l.s4 (%p164_p6), %v1333_v7 }
  0xf3   : > { %vm457_vm12 = vmand %vm455_vm11, %vm456_vm9  ;;  %v759_v9 = vunpack.c.0.s8 (%p164_p6), %v758_v6 }
  0xf4   : > { %vm458_vm13 = vmor %vm454_vm10, %vm457_vm12 }
  0xf5   : > { %v459_v15 = vsel %vm458_vm13, %v293_v14, %v450_v10  ;;  %v460_v16 = vsel %vm458_vm13, %v325_v12, %v451_v13  ;;  %v779_v14 = vand.u32 (%p164_p6), 4, %v1370_v11 }
  0xf6   : > { %v462_v17 = vrot.slane %v459_v15, 1  ;;  %v463_v18 = vrot.slane %v460_v16, 1 }
  0xf8   : > { %vm465_vm14 = vcmp.gt.s32.totalorder %v462_v17, %v459_v15  ;;  %vm466_vm15 = vcmp.eq.s32.totalorder %v462_v17, %v459_v15  ;;  %vm467_vm0 = vcmp.lt.s32.totalorder %v463_v18, %v460_v16 }
  0xf9   : > { %vm468_vm1 = vmand %vm466_vm15, %vm467_vm0 }
  0xfa   : > { %vm469_vm2 = vmor %vm465_vm14, %vm468_vm1 }
  0xfb   : > { %v470_v19 = vsel %vm469_vm2, %v462_v17, %v459_v15  ;;  %v471_v20 = vsel %vm469_vm2, %v463_v18, %v460_v16  ;;  %v787_v16 = vunpack.c.0.s8 (%p164_p6), %v786_v8 }
  0xfc   : > { %v473_v21 = vrot.slane %v470_v19, 1  ;;  %v474_v22 = vrot.slane %v471_v20, 1 }
  0xfe   : > { %vm476_vm3 = vcmp.gt.s32.totalorder %v473_v21, %v470_v19  ;;  %vm477_vm4 = vcmp.eq.s32.totalorder %v473_v21, %v470_v19  ;;  %vm478_vm5 = vcmp.lt.s32.totalorder %v474_v22, %v471_v20 }
  0xff   : > { %vm479_vm6 = vmand %vm477_vm4, %vm478_vm5 }
 0x100   : > { %vm480_vm7 = vmor %vm476_vm3, %vm479_vm6 }
 0x101   : > { %v481_v23 = vsel %vm480_vm7, %v473_v21, %v470_v19  ;;  %v482_v24 = vsel %vm480_vm7, %v474_v22, %v471_v20  ;;  %v1334_v22 = vmov (%p164_p6), 1732584193  }
 0x102   : > { %v484_v25 = vrot.slane %v481_v23, 1  ;;  %v485_v26 = vrot.slane %v482_v24, 1 }
 0x104   : > { %vm489_vm8 = vcmp.lt.s32.totalorder %v485_v26, %v482_v24  ;;  %vm487_vm9 = vcmp.gt.s32.totalorder %v484_v25, %v481_v23  ;;  %vm488_vm10 = vcmp.eq.s32.totalorder %v484_v25, %v481_v23 }
 0x105   : > { %vm490_vm11 = vmand %vm488_vm10, %vm489_vm8 }
 0x106   : > { %vm491_vm12 = vmor %vm487_vm9, %vm490_vm11 }
 0x107   : > { %v492_v27 = vsel %vm491_vm12, %v484_v25, %v481_v23  ;;  %v493_v28 = vsel %vm491_vm12, %v485_v26, %v482_v24  ;;  %v814_v23 = vunpack.c.l.s4 (%p164_p6), %v1334_v22  ;;  %v1428_v24 = vsub.s32 (%p164_p6), %v787_v16, %v1370_v11 }
 0x108   : > { %v495_v29 = vrot.slane %v492_v27, 1  ;;  %v496_v30 = vrot.slane %v493_v28, 1  ;;  %v807_v25 = vand.u32 (%p164_p6), 2, %v1370_v11 }
 0x10a   : > { %vm498_vm13 = vcmp.gt.s32.totalorder %v495_v29, %v492_v27  ;;  %vm499_vm14 = vcmp.eq.s32.totalorder %v495_v29, %v492_v27  ;;  %vm500_vm15 = vcmp.lt.s32.totalorder %v496_v30, %v493_v28 }
 0x10b   : > { %vm501_vm0 = vmand %vm499_vm14, %vm500_vm15 }
 0x10c   : > { %vm502_vm1 = vmor %vm498_vm13, %vm501_vm0 }
 0x10d   : > { %v503_v31 = vsel %vm502_vm1, %v495_v29, %v492_v27  ;;  %v504_v32 = vsel %vm502_vm1, %v496_v30, %v493_v28  ;;  %v815_v28 = vunpack.c.0.s8 (%p164_p6), %v814_v23 }
 0x10e   : > { %v506_v33 = vrot.slane %v503_v31, 1  ;;  %v507_v34 = vrot.slane %v504_v32, 1 }
 0x110   : > { %vm509_vm2 = vcmp.gt.s32.totalorder %v506_v33, %v503_v31  ;;  %vm510_vm3 = vcmp.eq.s32.totalorder %v506_v33, %v503_v31  ;;  %vm511_vm4 = vcmp.lt.s32.totalorder %v507_v34, %v504_v32 }
 0x111   : > { %vm512_vm5 = vmand %vm510_vm3, %vm511_vm4 }
 0x112   : > { %vm513_vm6 = vmor %vm509_vm2, %vm512_vm5 }
 0x113   : > { %v514_v35 = vsel %vm513_vm6, %v506_v33, %v503_v31  ;;  %v515_v36 = vsel %vm513_vm6, %v507_v34, %v504_v32  ;;  %v1442_v33 = vsub.s32 (%p164_p6), %v815_v28, %v1370_v11 }
 0x114   : > { %v517_v37 = vrot.slane %v514_v35, 1  ;;  %v518_v38 = vrot.slane %v515_v36, 1 }
 0x116   : > { %vm520_vm7 = vcmp.gt.s32.totalorder %v517_v37, %v514_v35  ;;  %vm521_vm8 = vcmp.eq.s32.totalorder %v517_v37, %v514_v35  ;;  %vm522_vm9 = vcmp.lt.s32.totalorder %v518_v38, %v515_v36 }
 0x117   : > { %vm523_vm10 = vmand %vm521_vm8, %vm522_vm9 }
 0x118   : > { %vm524_vm11 = vmor %vm520_vm7, %vm523_vm10 }
 0x119   : > { %v525_v39 = vsel %vm524_vm11, %v517_v37, %v514_v35  ;;  %v526_v40 = vsel %vm524_vm11, %v518_v38, %v515_v36  ;;  %v835_v37 = vand.u32 (%p164_p6), 1, %v1370_v11 }
 0x11a   : > { %v528_v41 = vrot.slane %v525_v39, 1  ;;  %v529_v42 = vrot.slane %v526_v40, 1 }
 0x11c   : > { %vm531_vm12 = vcmp.gt.s32.totalorder %v528_v41, %v525_v39  ;;  %vm532_vm13 = vcmp.eq.s32.totalorder %v528_v41, %v525_v39  ;;  %vm533_vm14 = vcmp.lt.s32.totalorder %v529_v42, %v526_v40 }
 0x11d   : > { %vm534_vm15 = vmand %vm532_vm13, %vm533_vm14 }
 0x11e   : > { %vm535_vm0 = vmor %vm531_vm12, %vm534_vm15  ;;  %vm1422_vm12 = vcmp.ne.s32.totalorder (%p164_p6), %v779_v14, 0 }
 0x11f   : > { %v537_v43 = vsel %vm535_vm0, %v529_v42, %v526_v40  ;;  %v536_v44 = vsel %vm535_vm0, %v528_v41, %v525_v39 }
 0x120   : > { %544 = vxpose.xlu0.b32.start.end [1/1] (short) (narrow) %v537_v43, 8  ;;  %540 = vst [vmem:[%s539_s25] sm:$0x1] %v536_v44  ;;  %542 = vst [vmem:[%s541_s26] sm:$0x1] %v537_v43 }
 0x127   :  { %v721_v0 = vld [vmem:[#allocation11 + $0x7] ss:$-1 sm:$0xff] (%p164_p6)  ;;  %v727_v1 = vld [vmem:[#allocation13 + $0x7] ss:$-1 sm:$0xff] (%p164_p6) }
 0x128   :  { %vm739_vm7 = vcmp.gt.s32.totalorder (%p164_p6), %v733_v2, %v721_v0  ;;  %vm740_vm8 = vcmp.eq.s32.totalorder (%p164_p6), %v733_v2, %v721_v0  ;;  %vm741_vm9 = vcmp.lt.s32.totalorder (%p164_p6), %v734_v3, %v727_v1 }
 0x129   :  { %vm742_vm10 = vmand (%p164_p6), %vm740_vm8, %vm741_vm9  ;;  %vm1435_vm8 = vcmp.ne.s32.totalorder (%p164_p6), %v807_v25, 0 }
 0x12a   :  { %vm743_vm11 = vmor (%p164_p6), %vm739_vm7, %vm742_vm10 }
 0x12b   :  { %v744_v10 = vsel (%p164_p6), %vm743_vm11, %v733_v2, %v721_v0  ;;  %v746_v12 = vsel (%p164_p6), %vm743_vm11, %v721_v0, %v733_v2  ;;  %v748_v13 = vsel (%p164_p6), %vm743_vm11, %v734_v3, %v727_v1  ;;  %v750_v15 = vsel (%p164_p6), %vm743_vm11, %v727_v1, %v734_v3 }
 0x1a0   : > { %v560_v45 = vpop.trf.xlu0 }
 0x1a1   : > { %v599_v46 = vrot.slane %v560_v45, 1  ;;  %1263 = vpush %v560_v45 }
 0x1a3   : > { %1265 = vpush %v599_v46  ;;  %v623_v47 = vrot.slane %v599_v46, 1 }
 0x1a5   : > { %1267 = vpush %v623_v47  ;;  %v647_v48 = vrot.slane %v623_v47, 1 }
 0x1a7   : > { %1269 = vpush %v647_v48  ;;  %v671_v49 = vrot.slane %v647_v48, 1 }
 0x1a9   : > { %1271 = vpush %v671_v49  ;;  %v695_v50 = vrot.slane %v671_v49, 1 }
 0x1ab   : > { %1273 = vpush %v695_v50 }
 0x1d2   : > { %s1264_s27 = spop %1263 }
 0x1d3   : > { %s577_s28 = sshrl.u32 %s1264_s27, 7  ;;  %s579_s29 = ssub.s32 0, %s1264_s27 }
 0x1d4   : > { %s1241_s30 = sshll.u32 %s577_s28, 3  ;;  %p578_p0 = scmp.lt.s32.totalorder %s1264_s27, 0 }
 0x1d5   : > { %s1239_s3 = smin.u32 %s1264_s27, %s579_s29  ;;  %s1266_s6 = spop %1265 }
 0x1d6   : > { %s581_s4 = sand.u32 127, %s1239_s3   ;;  %s601_s7 = sshrl.u32 %s1266_s6, 7 }
 0x1d7   : > { %s582_s5 = ssub.s32 0, %s581_s4  ;;  %s603_s11 = ssub.s32 0, %s1266_s6 }
 0x1d8   : > { %s1512_s5 = smov (!%p578_p0, %s582_s5), %s581_s4  ;;  %s1243_s13 = smin.u32 %s1266_s6, %s603_s11 }
 0x1d9   : > { %s584_s8 = sshrl.u32 %s1512_s5, 7  ;;  %s586_s9 = sand.u32 127, %s1512_s5  }
 0x1da   : > { %s1240_s10 = sshll.u32 %s584_s8, 10  ;;  %p602_p1 = scmp.lt.s32.totalorder %s1266_s6, 0 }
 0x1db   : > { %s587_s12 = sadd.s32 %s1240_s10, %s586_s9  ;;  %s605_s14 = sand.u32 127, %s1243_s13  }
 0x1dc   : > { %v589_v51 = vstv %s587_s12  ;;  %s606_s15 = ssub.s32 0, %s605_s14  ;;  %s1245_s16 = sshll.u32 %s601_s7, 3 }
 0x1dd   : > { %vm591_vm1 = vcmp.eq.s32.totalorder %v46_v4, %v589_v51  ;;  %s593_s17 = scalar_lea.vmem [#allocation14], %s1241_s30  ;;  %s596_s18 = scalar_lea.vmem [#allocation15], %s1241_s30 }
 0x1de   : > { %594 = vst.msk [vmem:[%s593_s17] sm:$0xff] %vm591_vm1, %v1330_v52  ;;  %597 = vst.msk [vmem:[%s596_s18] sm:$0xff] %vm591_vm1, %v1331_v53  ;;  %s1514_s15 = smov (!%p602_p1, %s606_s15), %s605_s14  ;;  %s1268_s19 = spop %1267 }
 0x1df   : > { %s608_s20 = sshrl.u32 %s1514_s15, 7  ;;  %s610_s21 = sand.u32 127, %s1514_s15  }
 0x1e0   : > { %s1244_s22 = sshll.u32 %s608_s20, 10  ;;  %s625_s24 = sshrl.u32 %s1268_s19, 7 }
 0x1e1   : > { %s611_s23 = sadd.s32 %s1244_s22, %s610_s21  ;;  %s627_s25 = ssub.s32 0, %s1268_s19 }
 0x1e2   : > { %v613_v54 = vstv %s611_s23  ;;  %p626_p2 = scmp.lt.s32.totalorder %s1268_s19, 0  ;;  %s1247_s26 = smin.u32 %s1268_s19, %s627_s25 }
 0x1e3   : > { %v614_v55 = vadd.s32 128, %v613_v54  ;;  %s629_s27 = sand.u32 127, %s1247_s26   ;;  %s1249_s28 = sshll.u32 %s625_s24, 3 }
 0x1e4   : > { %s630_s29 = ssub.s32 0, %s629_s27  ;;  %s1270_s30 = spop %1269 }
 0x1e5   : > { %vm615_vm2 = vcmp.eq.s32.totalorder %v46_v4, %v614_v55  ;;  %s617_s3 = scalar_lea.vmem [#allocation14], %s1245_s16  ;;  %s620_s4 = scalar_lea.vmem [#allocation15], %s1245_s16 }
 0x1e6   : > { %618 = vst.msk [vmem:[%s617_s3] sm:$0xff] %vm615_vm2, %v1330_v52  ;;  %621 = vst.msk [vmem:[%s620_s4] sm:$0xff] %vm615_vm2, %v1331_v53  ;;  %s1516_s29 = smov (!%p626_p2, %s630_s29), %s629_s27  ;;  %s649_s5 = sshrl.u32 %s1270_s30, 7 }
 0x1e7   : > { %s632_s6 = sshrl.u32 %s1516_s29, 7  ;;  %s634_s7 = sand.u32 127, %s1516_s29  }
 0x1e8   : > { %s1248_s8 = sshll.u32 %s632_s6, 10  ;;  %s651_s9 = ssub.s32 0, %s1270_s30 }
 0x1e9   : > { %s635_s10 = sadd.s32 %s1248_s8, %s634_s7  ;;  %s1251_s11 = smin.u32 %s1270_s30, %s651_s9 }
 0x1ea   : > { %v637_v56 = vstv %s635_s10  ;;  %p650_p3 = scmp.lt.s32.totalorder %s1270_s30, 0  ;;  %s653_s12 = sand.u32 127, %s1251_s11  }
 0x1eb   : > { %v638_v57 = vadd.s32 256, %v637_v56  ;;  %s654_s13 = ssub.s32 0, %s653_s12  ;;  %s1253_s14 = sshll.u32 %s649_s5, 3 }
 0x1ec   : > { %s1518_s13 = smov (!%p650_p3, %s654_s13), %s653_s12  ;;  %s1272_s15 = spop %1271 }
 0x1ed   : > { %vm639_vm3 = vcmp.eq.s32.totalorder %v46_v4, %v638_v57  ;;  %s641_s16 = scalar_lea.vmem [#allocation14], %s1249_s28  ;;  %s644_s17 = scalar_lea.vmem [#allocation15], %s1249_s28 }
 0x1ee   : > { %642 = vst.msk [vmem:[%s641_s16] sm:$0xff] %vm639_vm3, %v1330_v52  ;;  %645 = vst.msk [vmem:[%s644_s17] sm:$0xff] %vm639_vm3, %v1331_v53  ;;  %s656_s18 = sshrl.u32 %s1518_s13, 7  ;;  %s658_s19 = sand.u32 127, %s1518_s13  }
 0x1ef   : > { %s1252_s20 = sshll.u32 %s656_s18, 10  ;;  %s675_s22 = ssub.s32 0, %s1272_s15 }
 0x1f0   : > { %s659_s21 = sadd.s32 %s1252_s20, %s658_s19  ;;  %s673_s23 = sshrl.u32 %s1272_s15, 7 }
 0x1f1   : > { %v661_v58 = vstv %s659_s21  ;;  %s1255_s24 = smin.u32 %s1272_s15, %s675_s22  ;;  %p674_p4 = scmp.lt.s32.totalorder %s1272_s15, 0 }
 0x1f2   : > { %v662_v59 = vadd.s32 384, %v661_v58  ;;  %s677_s25 = sand.u32 127, %s1255_s24   ;;  %s1398_s27 = spop %1273 }
 0x1f3   : > { %s678_s26 = ssub.s32 0, %s677_s25  ;;  %s665_s28 = scalar_lea.vmem [#allocation14], %s1253_s14 }
 0x1f4   : > { %vm663_vm4 = vcmp.eq.s32.totalorder %v46_v4, %v662_v59  ;;  %s668_s29 = scalar_lea.vmem [#allocation15], %s1253_s14  ;;  %s1520_s26 = smov (!%p674_p4, %s678_s26), %s677_s25 }
 0x1f5   : > { %666 = vst.msk [vmem:[%s665_s28] sm:$0xff] %vm663_vm4, %v1330_v52  ;;  %669 = vst.msk [vmem:[%s668_s29] sm:$0xff] %vm663_vm4, %v1331_v53  ;;  %s1257_s30 = sshll.u32 %s673_s23, 3  ;;  %s680_s3 = sshrl.u32 %s1520_s26, 7 }
 0x1f6   : > { %s682_s4 = sand.u32 127, %s1520_s26   ;;  %s1256_s5 = sshll.u32 %s680_s3, 10 }
 0x1f7   : > { %s699_s6 = ssub.s32 0, %s1398_s27  ;;  %s683_s7 = sadd.s32 %s1256_s5, %s682_s4 }
 0x1f8   : > { %s1259_s8 = smin.u32 %s1398_s27, %s699_s6  ;;  %v685_v60 = vstv %s683_s7  ;;  %p698_p5 = scmp.lt.s32.totalorder %s1398_s27, 0 }
 0x1f9   : > { %s701_s9 = sand.u32 127, %s1259_s8   ;;  %v686_v61 = vadd.s32 512, %v685_v60  ;;  %s697_s11 = sshrl.u32 %s1398_s27, 7 }
 0x1fa   : > { %s702_s10 = ssub.s32 0, %s701_s9  ;;  %s689_s12 = scalar_lea.vmem [#allocation14], %s1257_s30 }
 0x1fb   : > { %s1522_s10 = smov (!%p698_p5, %s702_s10), %s701_s9  ;;  %vm687_vm5 = vcmp.eq.s32.totalorder %v46_v4, %v686_v61  ;;  %s692_s13 = scalar_lea.vmem [#allocation15], %s1257_s30 }
 0x1fc   : > { %690 = vst.msk [vmem:[%s689_s12] sm:$0xff] %vm687_vm5, %v1330_v52  ;;  %693 = vst.msk [vmem:[%s692_s13] sm:$0xff] %vm687_vm5, %v1331_v53  ;;  %s704_s14 = sshrl.u32 %s1522_s10, 7  ;;  %s706_s15 = sand.u32 127, %s1522_s10  }
 0x1fd   : > { %s1260_s16 = sshll.u32 %s704_s14, 10  ;;  %s1261_s18 = sshll.u32 %s697_s11, 3 }
 0x1fe   : > { %s707_s17 = sadd.s32 %s1260_s16, %s706_s15  ;;  %s713_s19 = scalar_lea.vmem [#allocation14], %s1261_s18 }
 0x1ff   : > { %v709_v62 = vstv %s707_s17  ;;  %s716_s20 = scalar_lea.vmem [#allocation15], %s1261_s18  ;;  %s1162_s21 = sshll.u32 (%p164_p6), %s1335_s0, 4  ;;  %s1163_s21 = int_to_ptr.vmem [resolvable:$true] %s1162_s21 }
 0x200   : > { %v710_v63 = vadd.s32 640, %v709_v62  ;;  %s1294_s22 = scalar_lea.vmem (%p164_p6), %s1163_s21, 128  ;;  %p1299_p8 = scmp.lt.s32.totalorder (%p164_p6), %s1163_s21, %s1163_s21 }
 0x201   :  { %166 = sbr.rel (!%p164_p6) target bundleno = 22 (0x16), region = 134  ;;  %p1295_p7 = scmp.ne.s32.totalorder (%p164_p6), %s1163_s21, %s1294_s22 }
 0x202   : > { %vm711_vm6 = vcmp.eq.s32.totalorder %v46_v4, %v710_v63  ;;  %v1417_v4 = vsub.s32 (%p164_p6), %v759_v9, %v1370_v11  ;;  %p1300_p9 = scmp.lt.s32.totalorder (%p164_p6), %s1294_s22, %s1294_s22 }
 0x203   : > { %714 = vst.msk [vmem:[%s713_s19] sm:$0xff] %vm711_vm6, %v1330_v52  ;;  %717 = vst.msk [vmem:[%s716_s20] sm:$0xff] %vm711_vm6, %v1331_v53 }
 0x204   :  { %v763_v17 = vrot.slane (%p164_p6), %v744_v10, %v1417_v4  ;;  %v770_v18 = vrot.slane (%p164_p6), %v748_v13, %v1417_v4  ;;  %v944_v19 = vrot.slane (%p164_p6), %v746_v12, %v1417_v4  ;;  %v951_v21 = vrot.slane (%p164_p6), %v750_v15, %v1417_v4  ;;  %p1301_p10 = por (%p164_p6), %p1300_p9, %p1299_p8 }
 0x206   :  { %vm772_vm13 = vcmp.gt.s32.totalorder (%p164_p6), %v744_v10, %v763_v17  ;;  %vm773_vm14 = vcmp.eq.s32.totalorder (%p164_p6), %v744_v10, %v763_v17  ;;  %vm774_vm15 = vcmp.lt.s32.totalorder (%p164_p6), %v748_v13, %v770_v18  ;;  %vm954_vm1 = vcmp.eq.s32.totalorder (%p164_p6), %v746_v12, %v944_v19  ;;  %p1302_p11 = pnand (%p164_p6), %p1301_p10, %p1295_p7 }
 0x207   :  { %vm775_vm0 = vmand (%p164_p6), %vm773_vm14, %vm774_vm15  ;;  %vm955_vm2 = vcmp.lt.s32.totalorder (%p164_p6), %v750_v15, %v951_v21  ;;  %vm953_vm4 = vcmp.gt.s32.totalorder (%p164_p6), %v746_v12, %v944_v19 }
 0x208   :  { %vm776_vm3 = vmor %vm772_vm13, %vm775_vm0 }
 0x209   :  { %vm781_vm5 = vmxor %vm776_vm3, %vm1422_vm12 }
 0x20a   :  { %v782_v26 = vsel %vm781_vm5, %v744_v10, %v763_v17  ;;  %v783_v27 = vsel %vm781_vm5, %v748_v13, %v770_v18  ;;  %vm956_vm6 = vmand %vm954_vm1, %vm955_vm2 }
 0x20b   :  { %v791_v29 = vrot.slane %v782_v26, %v1428_v24  ;;  %v798_v30 = vrot.slane %v783_v27, %v1428_v24  ;;  %vm957_vm7 = vmor %vm953_vm4, %vm956_vm6 }
 0x20c   :  { %vm962_vm9 = vmxor %vm957_vm7, %vm1422_vm12 }
 0x20d   :  { %vm800_vm10 = vcmp.gt.s32.totalorder %v782_v26, %v791_v29  ;;  %vm801_vm11 = vcmp.eq.s32.totalorder %v782_v26, %v791_v29  ;;  %vm802_vm13 = vcmp.lt.s32.totalorder %v783_v27, %v798_v30  ;;  %v963_v32 = vsel %vm962_vm9, %v746_v12, %v944_v19 }
 0x20e   :  { %vm803_vm14 = vmand %vm801_vm11, %vm802_vm13  ;;  %v964_v34 = vsel %vm962_vm9, %v750_v15, %v951_v21  ;;  %v972_v35 = vrot.slane %v963_v32, %v1428_v24 }
 0x20f   :  { %vm804_vm15 = vmor %vm800_vm10, %vm803_vm14  ;;  %v979_v36 = vrot.slane %v964_v34, %v1428_v24  ;;  %vm1451_vm10 = vcmp.ne.s32.totalorder %v835_v37, 0 }
 0x210   :  { %vm809_vm0 = vmxor %vm804_vm15, %vm1435_vm8  ;;  %vm981_vm1 = vcmp.gt.s32.totalorder %v963_v32, %v972_v35  ;;  %vm982_vm2 = vcmp.eq.s32.totalorder %v963_v32, %v972_v35 }
 0x211   :  { %v810_v38 = vsel %vm809_vm0, %v782_v26, %v791_v29  ;;  %v811_v39 = vsel %vm809_vm0, %v783_v27, %v798_v30  ;;  %vm983_vm3 = vcmp.lt.s32.totalorder %v964_v34, %v979_v36 }
 0x212   :  { %v819_v40 = vrot.slane %v810_v38, %v1442_v33  ;;  %v826_v41 = vrot.slane %v811_v39, %v1442_v33  ;;  %vm984_vm4 = vmand %vm982_vm2, %vm983_vm3 }
 0x213   :  { %vm985_vm5 = vmor %vm981_vm1, %vm984_vm4 }
 0x214   :  { %vm828_vm6 = vcmp.gt.s32.totalorder %v810_v38, %v819_v40  ;;  %vm829_vm7 = vcmp.eq.s32.totalorder %v810_v38, %v819_v40  ;;  %vm830_vm9 = vcmp.lt.s32.totalorder %v811_v39, %v826_v41  ;;  %vm990_vm11 = vmxor %vm985_vm5, %vm1435_vm8 }
 0x215   :  { %vm831_vm13 = vmand %vm829_vm7, %vm830_vm9  ;;  %v991_v11 = vsel %vm990_vm11, %v963_v32, %v972_v35  ;;  %v992_v43 = vsel %vm990_vm11, %v964_v34, %v979_v36 }
 0x216   :  { %vm832_vm14 = vmor %vm828_vm6, %vm831_vm13  ;;  %v1000_v44 = vrot.slane %v991_v11, %v1442_v33  ;;  %v1007_v45 = vrot.slane %v992_v43, %v1442_v33 }
 0x217   :  { %vm837_vm15 = vmxor %vm832_vm14, %vm1451_vm10 }
 0x218   :  { %v838_v46 = vsel %vm837_vm15, %v810_v38, %v819_v40  ;;  %v839_v47 = vsel %vm837_vm15, %v811_v39, %v826_v41  ;;  %vm1009_vm0 = vcmp.gt.s32.totalorder %v991_v11, %v1000_v44  ;;  %vm1010_vm1 = vcmp.eq.s32.totalorder %v991_v11, %v1000_v44 }
 0x219   :  { %v853_v48 = vrot.slane %v838_v46, %v1417_v4  ;;  %v860_v49 = vrot.slane %v839_v47, %v1417_v4  ;;  %vm1011_vm2 = vcmp.lt.s32.totalorder %v992_v43, %v1007_v45 }
 0x21a   :  { %vm1012_vm3 = vmand %vm1010_vm1, %vm1011_vm2 }
 0x21b   :  { %vm862_vm4 = vcmp.gt.s32.totalorder %v838_v46, %v853_v48  ;;  %vm863_vm5 = vcmp.eq.s32.totalorder %v838_v46, %v853_v48  ;;  %vm864_vm6 = vcmp.lt.s32.totalorder %v839_v47, %v860_v49  ;;  %vm1013_vm7 = vmor %vm1009_vm0, %vm1012_vm3 }
 0x21c   :  { %vm865_vm9 = vmand %vm863_vm5, %vm864_vm6 }
 0x21d   :  { %vm866_vm11 = vmor %vm862_vm4, %vm865_vm9 }
 0x21e   :  { %vm871_vm13 = vmxor %vm866_vm11, %vm1422_vm12 }
 0x21f   :  { %v872_v50 = vsel %vm871_vm13, %v838_v46, %v853_v48  ;;  %v873_v51 = vsel %vm871_vm13, %v839_v47, %v860_v49  ;;  %vm1018_vm14 = vmxor %vm1013_vm7, %vm1451_vm10 }
 0x220   :  { %v881_v52 = vrot.slane %v872_v50, %v1428_v24  ;;  %v888_v53 = vrot.slane %v873_v51, %v1428_v24  ;;  %v1019_v54 = vsel %vm1018_vm14, %v991_v11, %v1000_v44  ;;  %v1020_v55 = vsel %vm1018_vm14, %v992_v43, %v1007_v45 }
 0x221   :  { %v1034_v56 = vrot.slane %v1019_v54, %v1417_v4  ;;  %v1041_v57 = vrot.slane %v1020_v55, %v1417_v4 }
 0x222   :  { %vm890_vm15 = vcmp.gt.s32.totalorder %v872_v50, %v881_v52  ;;  %vm891_vm0 = vcmp.eq.s32.totalorder %v872_v50, %v881_v52  ;;  %vm892_vm1 = vcmp.lt.s32.totalorder %v873_v51, %v888_v53 }
 0x223   :  { %vm893_vm2 = vmand %vm891_vm0, %vm892_vm1  ;;  %vm1044_vm3 = vcmp.eq.s32.totalorder %v1019_v54, %v1034_v56  ;;  %vm1045_vm4 = vcmp.lt.s32.totalorder %v1020_v55, %v1041_v57  ;;  %vm1043_vm6 = vcmp.gt.s32.totalorder %v1019_v54, %v1034_v56 }
 0x224   :  { %vm894_vm5 = vmor %vm890_vm15, %vm893_vm2 }
 0x225   :  { %vm899_vm7 = vmxor %vm894_vm5, %vm1435_vm8 }
 0x226   :  { %v900_v58 = vsel %vm899_vm7, %v872_v50, %v881_v52  ;;  %v901_v59 = vsel %vm899_vm7, %v873_v51, %v888_v53  ;;  %vm1046_vm9 = vmand %vm1044_vm3, %vm1045_vm4 }
 0x227   :  { %v909_v60 = vrot.slane %v900_v58, %v1442_v33  ;;  %v916_v61 = vrot.slane %v901_v59, %v1442_v33  ;;  %vm1047_vm11 = vmor %vm1043_vm6, %vm1046_vm9 }
 0x228   :  { %vm1052_vm13 = vmxor %vm1047_vm11, %vm1422_vm12 }
 0x229   :  { %vm918_vm14 = vcmp.gt.s32.totalorder %v900_v58, %v909_v60  ;;  %vm919_vm0 = vcmp.eq.s32.totalorder %v900_v58, %v909_v60  ;;  %vm920_vm1 = vcmp.lt.s32.totalorder %v901_v59, %v916_v61  ;;  %v1053_v62 = vsel %vm1052_vm13, %v1019_v54, %v1034_v56 }
 0x22a   :  { %vm921_vm15 = vmand %vm919_vm0, %vm920_vm1  ;;  %v1054_v63 = vsel %vm1052_vm13, %v1020_v55, %v1041_v57  ;;  %v1062_v0 = vrot.slane %v1053_v62, %v1428_v24 }
 0x22b   :  { %vm922_vm2 = vmor %vm918_vm14, %vm921_vm15  ;;  %v1069_v1 = vrot.slane %v1054_v63, %v1428_v24 }
 0x22c   :  { %vm927_vm3 = vmxor %vm922_vm2, %vm1451_vm10  ;;  %vm1071_vm4 = vcmp.gt.s32.totalorder %v1053_v62, %v1062_v0  ;;  %vm1072_vm5 = vcmp.eq.s32.totalorder %v1053_v62, %v1062_v0 }
 0x22d   :  { %v928_v2 = vsel %vm927_vm3, %v900_v58, %v909_v60  ;;  %v929_v3 = vsel %vm927_vm3, %v901_v59, %v916_v61  ;;  %vm1073_vm6 = vcmp.lt.s32.totalorder %v1054_v63, %v1069_v1 }
 0x22e   :  { %931 = vst [vmem:[#allocation10] sm:$0xff] %v928_v2  ;;  %932 = vst [vmem:[#allocation12] sm:$0xff] %v929_v3 }
 0x22f   :  { %vm1074_vm12 = vmand %vm1072_vm5, %vm1073_vm6 }
 0x230   :  { %vm1075_vm7 = vmor %vm1071_vm4, %vm1074_vm12 }
 0x231   :  { %vm1080_vm9 = vmxor %vm1075_vm7, %vm1435_vm8 }
 0x232   :  { %v1081_v5 = vsel %vm1080_vm9, %v1053_v62, %v1062_v0  ;;  %v1082_v6 = vsel %vm1080_vm9, %v1054_v63, %v1069_v1 }
 0x233   :  { %v1090_v7 = vrot.slane %v1081_v5, %v1442_v33  ;;  %v1097_v8 = vrot.slane %v1082_v6, %v1442_v33 }
 0x235   :  { %vm1099_vm11 = vcmp.gt.s32.totalorder %v1081_v5, %v1090_v7  ;;  %vm1100_vm13 = vcmp.eq.s32.totalorder %v1081_v5, %v1090_v7  ;;  %vm1101_vm14 = vcmp.lt.s32.totalorder %v1082_v6, %v1097_v8  ;;  %v1115_v12 = vld [vmem:[#allocation10] sm:$0xff]  ;;  %v1139_v15 = vld [vmem:[#allocation12] sm:$0xff] }
 0x236   :  { %vm1102_vm0 = vmand %vm1100_vm13, %vm1101_vm14  ;;  %vm1116_vm8 = vcmp.lt.s32.totalorder %v1115_v12, 0  ;;  %v1117_v13 = vsub.s32 2147483647, %v1115_v12 }
 0x237   :  { %vm1103_vm1 = vmor %vm1099_vm11, %vm1102_vm0 }
 0x238   :  { %vm1108_vm15 = vmxor %vm1103_vm1, %vm1451_vm10  ;;  %v1118_v14 = vsel %vm1116_vm8, %v1117_v13, %v1115_v12 }
 0x239   :  { %v1109_v9 = vsel %vm1108_vm15, %v1081_v5, %v1090_v7  ;;  %v1110_v10 = vsel %vm1108_vm15, %v1082_v6, %v1097_v8  ;;  %1119 = vst [vmem:[#allocation10] sm:$0xff] %v1118_v14  ;;  %1121 = vxpose.xlu0.b32.start.end [1/1] (short) (narrow) %v1118_v14, 8 }
 0x23a   :  { %1112 = vst [vmem:[#allocation11] sm:$0xff] %v1109_v9  ;;  %1113 = vst [vmem:[#allocation13] sm:$0xff] %v1110_v10 }
 0x23d   :  { %1140 = vxpose.xlu0.b32.start.end [1/1] (short) (narrow) %v1139_v15, 8 }
 0x2b9   :  { %v1122_v4 = vpop.trf.xlu0 }
 0x2ba   :  { %1138 = vst [vmem:[#allocation7] sm:$0xff] %v1122_v4 }
 0x2bb   :  { %1305 = shalt.err (!%p1302_p11)
}
 0x2bc   :  { %s1306_s25 = scalar_lea.hbm %s1503_s1, 128 }
 0x2bd   :  { %p1307_p12 = scmp.ne.s32.totalorder %s1503_s1, %s1306_s25  ;;  %p1310_p13 = scmp.lt.u32.totalorder %s1306_s25, %s1503_s1 }
 0x2bf   :  { %p1312_p0 = pnand %p1310_p13, %p1307_p12 }
 0x2c1   :  { %1315 = shalt.err (!%p1312_p0)
}
 0x2c2   :  { %1165 = dma.vmem_to_hbm [thread:$0]  %s1163_s21, 128, %s1503_s1, [#allocation8]   ;;  %v1141_v16 = vpop.trf.xlu0 }
 0x2c3   :  { %1194 = vst [vmem:[%s1504_s2] sm:$0xff] %v1141_v16 }
 0x2c4   :  { %1320 = dma.done.wait [#allocation8], 128  }
 0x2c5   :  { %1321 = vsyncadd [#allocation8], 4294967168 }
 0x2c6   :  { %1199 = vsyncpa [#allocation8], 1 }

// kernel: model_forward.3
= control target key start
LH: loop header
LB: loop body
LE: loop exit
PB: predicated region body
PF: predicated region fallthrough
CT: control target
= control target key end

     0   :  { %vm39_vm0 = vcmask 785408   ;;  %s358_s1 = inlined_call_operand.vmem [shape: f32[96,128], index: 1, kind: input, shape index: {}]   ;;  %s359_s0 = inlined_call_operand.vmem [shape: f32[48,96], index: 0, kind: input, shape index: {}]   ;;  %s360_s2 = inlined_call_operand.vmem [shape: f32[1,128], index: 2, kind: input, shape index: {}]   ;;  %s361_s3 = inlined_call_operand.vmem [shape: f32[48,128], index: 3, kind: output, shape index: {}]  }
   0x1   :  { %v20_v0 = vld [vmem:[%s358_s1] sm:$0xff]  ;;  %v21_v1 = vld [vmem:[%s358_s1 + $0x8] sm:$0xff]  ;;  %v22_v2 = vld [vmem:[%s358_s1 + $0x10] sm:$0xff] }
   0x2   :  { %v221_v3 = vpack.c.bf16 %v21_v1, %v20_v0  ;;  %v23_v4 = vld [vmem:[%s358_s1 + $0x18] sm:$0xff]  ;;  %v24_v6 = vld [vmem:[%s358_s1 + $0x20] sm:$0xff]  ;;  %v25_v7 = vld [vmem:[%s358_s1 + $0x28] sm:$0xff] }
   0x3   :  { %v225_v5 = vpack.c.bf16 %v23_v4, %v22_v2  ;;  %v16_v8 = vld [vmem:[%s359_s0 + $0x10] sm:$0xff]  ;;  %v14_v9 = vld [vmem:[%s359_s0] sm:$0xff]  ;;  %v229_v10 = vpack.c.bf16 %v25_v7, %v24_v6  ;;  %v27_v12 = vld [vmem:[%s358_s1 + $0x38] sm:$0xff] }
   0x4   :  { %245 = vmatprep.subr.bf16.mxu1 %v221_v3  ;;  %222 = vmatprep.subr.bf16.mxu0 %v221_v3  ;;  %v26_v11 = vld [vmem:[%s358_s1 + $0x30] sm:$0xff]  ;;  %v28_v14 = vld [vmem:[%s358_s1 + $0x40] sm:$0xff]  ;;  %v29_v15 = vld [vmem:[%s358_s1 + $0x48] sm:$0xff] }
   0x5   :  { %251 = vmatpush3.bf16.msra.mxu1 %v221_v3  ;;  %224 = vmatpush3.bf16.msra.mxu0 %v221_v3  ;;  %v233_v13 = vpack.c.bf16 %v27_v12, %v26_v11  ;;  %v237_v16 = vpack.c.bf16 %v29_v15, %v28_v14  ;;  %v30_v17 = vld [vmem:[%s358_s1 + $0x50] sm:$0xff]  ;;  %v31_v18 = vld [vmem:[%s358_s1 + $0x58] sm:$0xff]  ;;  %v15_v21 = vld [vmem:[%s359_s0 + $0x8] sm:$0xff] }
   0x6   :  { %246 = vmatprep.subr.bf16.mxu1 %v225_v5  ;;  %226 = vmatprep.subr.bf16.mxu0 %v225_v5  ;;  %v241_v19 = vpack.c.bf16 %v31_v18, %v30_v17  ;;  %v17_v20 = vld [vmem:[%s359_s0 + $0x18] sm:$0xff]  ;;  %v18_v22 = vld [vmem:[%s359_s0 + $0x20] sm:$0xff]  ;;  %v19_v23 = vld [vmem:[%s359_s0 + $0x28] sm:$0xff] }
   0x7   :  { %215 = vmatprep.mubr.msk.f32.mxu1 %vm39_vm0, %v16_v8  ;;  %212 = vmatprep.mubr.msk.f32.mxu0 %vm39_vm0, %v14_v9  ;;  %v163_v24 = vld [vmem:[%s360_s2] ss:$0 sm:$0xff] }
   0x9   :  { %252 = vmatpush3.bf16.msra.mxu1 %v225_v5  ;;  %228 = vmatpush3.bf16.msra.mxu0 %v225_v5 }
   0xa   :  { %247 = vmatprep.subr.bf16.mxu1 %v229_v10  ;;  %230 = vmatprep.subr.bf16.mxu0 %v229_v10 }
   0xd   :  { %253 = vmatpush3.bf16.msra.mxu1 %v229_v10  ;;  %232 = vmatpush3.bf16.msra.mxu0 %v229_v10 }
   0xe   :  { %248 = vmatprep.subr.bf16.mxu1 %v233_v13  ;;  %234 = vmatprep.subr.bf16.mxu0 %v233_v13 }
  0x11   :  { %254 = vmatpush3.bf16.msra.mxu1 %v233_v13  ;;  %236 = vmatpush3.bf16.msra.mxu0 %v233_v13 }
  0x12   :  { %249 = vmatprep.subr.bf16.mxu1 %v237_v16  ;;  %238 = vmatprep.subr.bf16.mxu0 %v237_v16 }
  0x15   :  { %255 = vmatpush3.bf16.msra.mxu1 %v237_v16  ;;  %240 = vmatpush3.bf16.msra.mxu0 %v237_v16 }
  0x16   :  { %250 = vmatprep.subr.bf16.mxu1 %v241_v19  ;;  %242 = vmatprep.subr.bf16.mxu0 %v241_v19 }
  0x19   :  { %256 = vmatpush3.bf16.msra.mxu1 %v241_v19  ;;  %244 = vmatpush3.bf16.msra.mxu0 %v241_v19 }
  0x1c   :  { %216 = vmatmul.mubr.msk.f32.vlgmr.msra.gmra.mrb[0].mxu1 %vm39_vm0, %v17_v20  ;;  %213 = vmatmul.mubr.msk.f32.vlgmr.msra.gmra.mrb[0].mxu0 %vm39_vm0, %v15_v21 }
  0x1d   :  { %218 = vmatprep.mubr.msk.f32.mxu1 %vm39_vm0, %v18_v22 }
  0x20   :  { %219 = vmatmul.mubr.msk.f32.gmra.mrb[2].mxu1 %vm39_vm0, %v19_v23 }
  0xef   :  { %v217_v25 = vpop.f32.mrb[0].mxu1  ;;  %v214_v26 = vpop.f32.mrb[0].mxu0 }
  0xf0   :  { %v140_v27 = vadd.f32 %v217_v25, %v163_v24  ;;  %v134_v28 = vpop.f32.mrb[1].mxu1  ;;  %v130_v29 = vadd.f32 %v214_v26, %v163_v24  ;;  %v124_v30 = vpop.f32.mrb[1].mxu0 }
  0xf1   :  { %v135_v31 = vadd.f32 %v163_v24, %v134_v28  ;;  %v125_v32 = vadd.f32 %v163_v24, %v124_v30 }
  0xf2   :  { %156 = vst [vmem:[%s361_s3 + $0x18] sm:$0xff] %v140_v27  ;;  %154 = vst [vmem:[%s361_s3 + $0x8] sm:$0xff] %v130_v29 }
  0xf3   :  { %155 = vst [vmem:[%s361_s3 + $0x10] sm:$0xff] %v135_v31  ;;  %153 = vst [vmem:[%s361_s3] sm:$0xff] %v125_v32  ;;  %v220_v33 = vpop.f32.mrb[2].mxu1 }
  0xf4   :  { %v150_v34 = vadd.f32 %v220_v33, %v163_v24  ;;  %v144_v35 = vpop.f32.mrb[3].mxu1 }
  0xf5   :  { %v145_v36 = vadd.f32 %v163_v24, %v144_v35 }
  0xf6   :  { %158 = vst [vmem:[%s361_s3 + $0x28] sm:$0xff] %v150_v34 }
  0xf7   :  { %157 = vst [vmem:[%s361_s3 + $0x20] sm:$0xff] %v145_v36 }

// kernel: model_forward.2
= control target key start
LH: loop header
LB: loop body
LE: loop exit
PB: predicated region body
PF: predicated region fallthrough
CT: control target
= control target key end

     0   :  { %vm27_vm0 = vcmask 261120   ;;  %v2624_v0 = vmov 0.0|0.0   ;;  %vm2625_vm1 = vmmov 0   ;;  %v2626_v4 = vmov 0.0   ;;  %s2627_s30 = smov 64   ;;  %s2629_s14 = smov 32   ;;  %s3216_s2 = inlined_call_operand.vmem [shape: f32[32,96], index: 2, kind: input, shape index: {}]   ;;  %s3217_s3 = inlined_call_operand.vmem [shape: f32[1,96], index: 3, kind: input, shape index: {}]   ;;  %s3218_s0 = inlined_call_operand.vmem [shape: f32[8,8,96], index: 0, kind: input, shape index: {}]   ;;  %s3219_s4 = inlined_call_operand.vmem [shape: f32[64,192], index: 4, kind: input, shape index: {}]   ;;  %s3220_s5 = inlined_call_operand.vmem [shape: f32[1,192], index: 5, kind: input, shape index: {}]   ;;  %s3221_s1 = inlined_call_operand.vmem [shape: s32[8,1], index: 1, kind: input, shape index: {}]   ;;  %s3222_s6 = inlined_call_operand.vmem [shape: f32[8,8,32], index: 6, kind: output, shape index: {}]  }
   0x1   :  { %2290 = vmatprep.subr.bf16.mxu1 %v2624_v0  ;;  %v30_v1 = vld [vmem:[%s3216_s2] sm:$0xff]  ;;  %v31_v2 = vld [vmem:[%s3216_s2 + $0x8] sm:$0xff]  ;;  %v32_v3 = vld [vmem:[%s3216_s2 + $0x10] sm:$0xff]  ;;  %2210 = vmatprep.mubr.msk.f32.mxu1 %vm2625_vm1, %v2626_v4  ;;  %28 = vst.msk [vmem:[#allocation2] sm:$0xff] %vm27_vm0, %v2626_v4  ;;  %vm188_vm2 = vcmask 523264   ;;  %v61_v59 = vlaneseq }
   0x2   :  { %29 = vst.msk [vmem:[#allocation2 + $0x8] sm:$0xff] %vm27_vm0, %v2626_v4  ;;  %v2682_v5 = vpack.c.bf16 %v31_v2, %v30_v1  ;;  %v33_v6 = vld [vmem:[%s3216_s2 + $0x18] sm:$0xff]  ;;  %2312 = vmatprep.subr.bf16.mxu0 %v2624_v0  ;;  %2221 = vmatprep.mubr.msk.f32.mxu0 %vm2625_vm1, %v2626_v4  ;;  %v2703_v9 = vld [vmem:[%s3217_s3] ss:$0 sm:$0xff]  ;;  %v44_v23 = vld [vmem:[%s3219_s4 + $0x8] sm:$0xff]  ;;  %s2628_s2 = smov 96  }
   0x3   :  { %v2691_v7 = vpack.c.bf16 %v33_v6, %v32_v3  ;;  %v146_v13 = vld [vmem:[%s3218_s0] sm:$0xff]  ;;  %v46_v24 = vld [vmem:[%s3219_s4 + $0x18] sm:$0xff]  ;;  %v45_v27 = vld [vmem:[%s3219_s4 + $0x10] sm:$0xff]  ;;  %v62_v60 = vshrl.u32 %v61_v59, 7 }
   0x4   :  { %2292 = vmatpush3.bf16.msra.mxu1 %v2682_v5  ;;  %2314 = vmatpush3.bf16.msra.mxu0 %v2682_v5  ;;  %v43_v25 = vld [vmem:[%s3219_s4] sm:$0xff]  ;;  %v2720_v26 = vpack.c.bf16 %v46_v24, %v44_v23  ;;  %v48_v28 = vld [vmem:[%s3219_s4 + $0x28] sm:$0xff]  ;;  %v50_v29 = vld [vmem:[%s3219_s4 + $0x38] sm:$0xff] }
   0x5   :  { %2293 = vmatprep.subr.bf16.mxu1 %v2624_v0  ;;  %2315 = vmatprep.subr.bf16.mxu0 %v2624_v0  ;;  %v2731_v30 = vpack.c.bf16 %v45_v27, %v43_v25  ;;  %v2733_v31 = vpack.c.bf16 %v50_v29, %v48_v28  ;;  %v47_v32 = vld [vmem:[%s3219_s4 + $0x20] sm:$0xff]  ;;  %v49_v33 = vld [vmem:[%s3219_s4 + $0x30] sm:$0xff]  ;;  %v52_v34 = vld [vmem:[%s3219_s4 + $0x48] sm:$0xff]  ;;  %v63_v61 = vsub.s32 0, %v62_v60  ;;  %v67_v63 = vsub.s32 1, %v62_v60 }
   0x6   :  { %v54_v36 = vld [vmem:[%s3219_s4 + $0x58] sm:$0xff]  ;;  %v2751_v37 = vpack.c.bf16 %v49_v33, %v47_v32  ;;  %v51_v39 = vld [vmem:[%s3219_s4 + $0x40] sm:$0xff]  ;;  %v53_v40 = vld [vmem:[%s3219_s4 + $0x50] sm:$0xff] }
   0x7   :  { %v2754_v38 = vpack.c.bf16 %v54_v36, %v52_v34  ;;  %v56_v41 = vld [vmem:[%s3219_s4 + $0x68] sm:$0xff]  ;;  %v58_v42 = vld [vmem:[%s3219_s4 + $0x78] sm:$0xff]  ;;  %v2770_v43 = vpack.c.bf16 %v53_v40, %v51_v39  ;;  %v55_v46 = vld [vmem:[%s3219_s4 + $0x60] sm:$0xff] }
   0x8   :  { %2295 = vmatpush3.bf16.msra.mxu1 %v2691_v7  ;;  %v71_v8 = vld [vmem:[#allocation2] sm:$0xff]  ;;  %2317 = vmatpush3.bf16.msra.mxu0 %v2691_v7  ;;  %v2773_v45 = vpack.c.bf16 %v58_v42, %v56_v41  ;;  %v57_v47 = vld [vmem:[%s3219_s4 + $0x70] sm:$0xff] }
   0x9   :  { %2297 = vmatprep.subr.bf16.mxu1 %v2720_v26  ;;  %2319 = vmatprep.subr.bf16.mxu0 %v2720_v26  ;;  %v182_v44 = vld [vmem:[#allocation2 + $0x8] sm:$0xff]  ;;  %v2783_v48 = vpack.c.bf16 %v57_v47, %v55_v46  ;;  %v59_v62 = vld [vmem:[%s3220_s5] sm:$0x3] }
   0xa   :  { %v2817_v1 = vrot.slane %v59_v62, %v63_v61  ;;  %v2819_v2 = vrot.slane %v59_v62, %v67_v63 }
   0xb   :  { %2211 = vmatmul.mubr.msk.f32.vlgmr.msra.gmra.mrb[0].mxu1 %vm27_vm0, %v71_v8 }
   0xc   :  { %256 = vmatprep.mubr.f32.mxu1 %v2626_v4  ;;  %2299 = vmatpush1.bf16.msra.mxu1 %v2731_v30 }
   0xd   :  { %2301 = vmatprep.subr.bf16.mxu1 %v2733_v31 }
  0x10   :  { %2303 = vmatpush1.bf16.msra.mxu1 %v2751_v37 }
  0x11   :  { %2305 = vmatprep.subr.bf16.mxu1 %v2754_v38 }
  0x14   :  { %2307 = vmatpush1.bf16.msra.mxu1 %v2770_v43 }
  0x15   :  { %2309 = vmatprep.subr.bf16.mxu1 %v2773_v45 }
  0x18   :  { %2311 = vmatpush1.bf16.msra.mxu1 %v2783_v48 }
  0x19   :  { %2334 = vmatprep.subr.bf16.mxu1 %v2624_v0 }
  0xde   :  { %v142_v10 = vpop.f32.mrb[0].mxu1 }
  0xdf   :  { %v143_v11 = vadd.f32 %v2703_v9, %v142_v10  ;;  %v2212_v12 = vpop.f32.mrb[1].mxu1 }
  0xe1   :  { %155 = vrot.lane.b32.xlu0 %v143_v11, %s2627_s30  ;;  %v147_v14 = vadd.f32 %v146_v13, %v143_v11 }
  0xe3   :  { %v2093_v15 = vmul.f32 -1.442695, %v147_v14  ;;  %v2100_v14 = vld [vmem:[%s3218_s0 + $0x8] sm:$0xff] }
  0xe5   :  { %2495 = vpow2.f32 %v2093_v15 }
  0xef   :  { %v2496_v16 = vpop.eup %2495 }
  0xf0   :  { %v151_v17 = vadd.f32 1.0, %v2496_v16 }
  0xf2   :  { %2497 = vrcp.f32 %v151_v17 }
  0xfc   :  { %v2498_v18 = vpop.eup %2497 }
  0xfd   :  { %v165_v50 = vsub.f32 1.0, %v2498_v18 }
 0x153   :  { %v156_v19 = vpop.permute.xlu0 %155 }
 0x154   :  { %v158_v20 = vmul.f32 %v2498_v18, %v156_v19 }
 0x156   :  { %160 = vrot.lane.b32.xlu0 %v158_v20, %s2627_s30 }
 0x1c8   :  { %v161_v21 = vpop.permute.xlu0 %160 }
 0x1c9   :  { %v163_v22 = vadd.f32 %v161_v21, %v146_v13 }
 0x1cb   :  { %2499 = vtanh.f32 %v163_v22 }
 0x1d5   :  { %v2500_v35 = vpop.eup %2499 }
 0x1d6   :  { %167 = vrot.lane.b32.xlu1 %v2500_v35, %s2628_s2 }
 0x1da   :  { %171 = vrot.lane.b32.xlu1 %v71_v8, %s2629_s14 }
 0x1de   :  { %184 = vrot.lane.b32.xlu1 %v182_v44, %s2629_s14 }
 0x248   :  { %v168_v49 = vpop.permute.xlu1 %167 }
 0x249   :  { %v170_v52 = vmul.f32 %v168_v49, %v165_v50 }
 0x24c   :  { %v172_v51 = vpop.permute.xlu1 %171 }
 0x24d   :  { %v174_v53 = vmul.f32 %v2498_v18, %v172_v51 }
 0x24f   :  { %v175_v54 = vadd.f32 %v174_v53, %v170_v52 }
 0x250   :  { %v2789_v55 = vpop.permute.xlu1 %184 }
 0x251   :  { %177 = vrot.lane.b32.xlu0 %v175_v54, %s2628_s2 }
 0x2c3   :  { %v178_v56 = vpop.permute.xlu0 %177 }
 0x2c4   :  { %180 = vst.msk [vmem:[#allocation2] sm:$0xff] %vm27_vm0, %v178_v56  ;;  %v187_v57 = vsel %vm27_vm0, %v178_v56, %v2789_v55 }
 0x2c5   :  { %2094 = vmatmul.mubr.msk.f32.vlgmr.msra.gmra.mrb[2].mxu1 %vm188_vm2, %v187_v57 }
 0x2c6   :  { %2336 = vmatpush3.bf16.msra.mxu1 %v2682_v5  ;;  %2232 = vmatprep.mubr.msk.f32.mxu1 %vm2625_vm1, %v2626_v4 }
 0x2c7   :  { %2337 = vmatprep.subr.bf16.mxu1 %v2624_v0 }
 0x2ca   :  { %2339 = vmatpush3.bf16.msra.mxu1 %v2691_v7 }
 0x2cb   :  { %v2800_v58 = vld [vmem:[#allocation2] sm:$0xff]  ;;  %2341 = vmatprep.subr.bf16.mxu1 %v2720_v26 }
 0x2cc   :  { %2222 = vmatmul.mubr.msk.f32.vlgmr.msra.gmra.mrb[0].mxu0 %vm27_vm0, %v2800_v58 }
 0x2cd   :  { %2321 = vmatpush1.bf16.msra.mxu0 %v2731_v30  ;;  %506 = vmatprep.mubr.f32.mxu0 %v2626_v4 }
 0x2ce   :  { %2323 = vmatprep.subr.bf16.mxu0 %v2733_v31 }
 0x2d1   :  { %2325 = vmatpush1.bf16.msra.mxu0 %v2751_v37 }
 0x2d2   :  { %2327 = vmatprep.subr.bf16.mxu0 %v2754_v38 }
 0x2d5   :  { %2329 = vmatpush1.bf16.msra.mxu0 %v2770_v43 }
 0x2d6   :  { %2331 = vmatprep.subr.bf16.mxu0 %v2773_v45 }
 0x2d9   :  { %2333 = vmatpush1.bf16.msra.mxu0 %v2783_v48 }
 0x2da   :  { %2356 = vmatprep.subr.bf16.mxu0 %v2624_v0 }
 0x398   :  { %v258_v3 = vpop.f32.mrb[2].mxu1 }
 0x399   :  { %v259_v6 = vadd.f32 %v258_v3, %v2817_v1  ;;  %v260_v8 = vpop.f32.mrb[3].mxu1 }
 0x39a   :  { %v261_v10 = vadd.f32 %v260_v8, %v2819_v2 }
 0x39b   :  { %264 = vrot.lane.b32.xlu0 %v259_v6, %s2629_s14 }
 0x39c   :  { %285 = vrot.lane.b32.xlu1 %v261_v10, %s2628_s2 }
 0x39f   :  { %v393_v11 = vpop.f32.mrb[0].mxu0 }
 0x3a0   :  { %v394_v12 = vadd.f32 %v2703_v9, %v393_v11  ;;  %v2223_v13 = vpop.f32.mrb[1].mxu0 }
 0x3a2   :  { %407 = vrot.lane.b32.xlu1 %v394_v12, %s2627_s30  ;;  %v399_v15 = vadd.f32 %v2100_v14, %v394_v12 }
 0x3a4   :  { %v2101_v16 = vmul.f32 -1.442695, %v399_v15 }
 0x3a6   :  { %2501 = vpow2.f32 %v2101_v16 }
 0x3b0   :  { %v2502_v17 = vpop.eup %2501 }
 0x3b1   :  { %v403_v18 = vadd.f32 1.0, %v2502_v17  ;;  %v2109_v17 = vld [vmem:[%s3218_s0 + $0x10] sm:$0xff] }
 0x3b3   :  { %2503 = vrcp.f32 %v403_v18 }
 0x3bd   :  { %v2504_v23 = vpop.eup %2503 }
 0x3be   :  { %v417_v59 = vsub.f32 1.0, %v2504_v23 }
 0x40d   :  { %v265_v19 = vpop.permute.xlu0 %264 }
 0x40e   :  { %v267_v20 = vadd.f32 %v265_v19, %v259_v6  ;;  %v286_v22 = vpop.permute.xlu1 %285 }
 0x410   :  { %v2095_v21 = vmul.f32 -1.442695, %v267_v20 }
 0x412   :  { %2505 = vpow2.f32 %v2095_v21 }
 0x414   :  { %v408_v24 = vpop.permute.xlu1 %407 }
 0x415   :  { %v410_v25 = vmul.f32 %v2504_v23, %v408_v24 }
 0x417   :  { %412 = vrot.lane.b32.xlu1 %v410_v25, %s2627_s30 }
 0x41c   :  { %v2506_v27 = vpop.eup %2505 }
 0x41d   :  { %v271_v28 = vadd.f32 1.0, %v2506_v27 }
 0x41f   :  { %2507 = vrcp.f32 %v271_v28 }
 0x429   :  { %v2508_v29 = vpop.eup %2507 }
 0x42a   :  { %v288_v32 = vmul.f32 %v2508_v29, %v286_v22 }
 0x42c   :  { %290 = vrot.lane.b32.xlu0 %v288_v32, %s2627_s30 }
 0x430   :  { %275 = vrot.lane.b32.xlu0 %v261_v10, %s2629_s14 }
 0x489   :  { %v413_v33 = vpop.permute.xlu1 %412 }
 0x48a   :  { %v415_v36 = vadd.f32 %v2100_v14, %v413_v33 }
 0x49e   :  { %v291_v34 = vpop.permute.xlu0 %290 }
 0x49f   :  { %v293_v35 = vadd.f32 %v291_v34, %v259_v6 }
 0x4a1   :  { %2509 = vtanh.f32 %v293_v35 }
 0x4a2   :  { %2511 = vtanh.f32 %v415_v36  ;;  %v276_v41 = vpop.permute.xlu0 %275 }
 0x4a3   :  { %v278_v42 = vadd.f32 %v276_v41, %v259_v6 }
 0x4a5   :  { %v2096_v44 = vmul.f32 -1.442695, %v278_v42 }
 0x4a7   :  { %2513 = vpow2.f32 %v2096_v44 }
 0x4ab   :  { %v2510_v39 = vpop.eup %2509 }
 0x4ac   :  { %297 = vrot.lane.b32.xlu0 %v2510_v39, %s2628_s2  ;;  %v2512_v40 = vpop.eup %2511 }
 0x4b0   :  { %419 = vrot.lane.b32.xlu0 %v2512_v40, %s2628_s2 }
 0x4b1   :  { %v2514_v46 = vpop.eup %2513 }
 0x4b2   :  { %v282_v47 = vadd.f32 1.0, %v2514_v46 }
 0x4b4   :  { %2515 = vrcp.f32 %v282_v47 }
 0x4be   :  { %v2516_v49 = vpop.eup %2515 }
 0x4bf   :  { %v295_v50 = vsub.f32 1.0, %v2516_v49  ;;  %v301_v52 = vmul.f32 %v2516_v49, %v2789_v55 }
 0x51e   :  { %v298_v51 = vpop.permute.xlu0 %297 }
 0x51f   :  { %v300_v53 = vmul.f32 %v298_v51, %v295_v50 }
 0x521   :  { %v2836_v54 = vadd.f32 %v301_v52, %v300_v53 }
 0x522   :  { %v420_v57 = vpop.permute.xlu0 %419 }
 0x523   :  { %304 = vrot.lane.b32.xlu1 %v2836_v54, %s2628_s2  ;;  %v422_v61 = vmul.f32 %v420_v57, %v417_v59 }
 0x527   :  { %423 = vrot.lane.b32.xlu1 %v2800_v58, %s2629_s14 }
 0x595   :  { %v305_v56 = vpop.permute.xlu1 %304 }
 0x596   :  { %307 = vst.msk [vmem:[#allocation2 + $0x8] sm:$0xff] %vm27_vm0, %v305_v56 }
 0x599   :  { %v424_v60 = vpop.permute.xlu1 %423 }
 0x59a   :  { %v426_v62 = vmul.f32 %v2504_v23, %v424_v60 }
 0x59c   :  { %v427_v63 = vadd.f32 %v426_v62, %v422_v61 }
 0x59d   :  { %v433_v3 = vld [vmem:[#allocation2 + $0x8] sm:$0xff] }
 0x59e   :  { %435 = vrot.lane.b32.xlu1 %v433_v3, %s2629_s14  ;;  %429 = vrot.lane.b32.xlu0 %v427_v63, %s2628_s2 }
 0x610   :  { %v2845_v55 = vpop.permute.xlu1 %435  ;;  %v430_v6 = vpop.permute.xlu0 %429 }
 0x611   :  { %432 = vst.msk [vmem:[#allocation2] sm:$0xff] %vm27_vm0, %v430_v6  ;;  %v438_v58 = vsel %vm27_vm0, %v430_v6, %v2845_v55 }
 0x612   :  { %2102 = vmatmul.mubr.msk.f32.vlgmr.msra.gmra.mrb[2].mxu0 %vm188_vm2, %v438_v58 }
 0x613   :  { %2358 = vmatpush3.bf16.msra.mxu0 %v2682_v5  ;;  %2243 = vmatprep.mubr.msk.f32.mxu0 %vm2625_vm1, %v2626_v4 }
 0x614   :  { %2359 = vmatprep.subr.bf16.mxu0 %v2624_v0 }
 0x617   :  { %2361 = vmatpush3.bf16.msra.mxu0 %v2691_v7 }
 0x618   :  { %v2856_v8 = vld [vmem:[#allocation2] sm:$0xff]  ;;  %2363 = vmatprep.subr.bf16.mxu0 %v2720_v26 }
 0x619   :  { %2233 = vmatmul.mubr.msk.f32.vlgmr.msra.gmra.mrb[4].mxu1 %vm27_vm0, %v2856_v8 }
 0x61a   :  { %2343 = vmatpush1.bf16.msra.mxu1 %v2731_v30  ;;  %758 = vmatprep.mubr.f32.mxu1 %v2626_v4 }
 0x61b   :  { %2345 = vmatprep.subr.bf16.mxu1 %v2733_v31 }
 0x61e   :  { %2347 = vmatpush1.bf16.msra.mxu1 %v2751_v37 }
 0x61f   :  { %2349 = vmatprep.subr.bf16.mxu1 %v2754_v38 }
 0x622   :  { %2351 = vmatpush1.bf16.msra.mxu1 %v2770_v43 }
 0x623   :  { %2353 = vmatprep.subr.bf16.mxu1 %v2773_v45 }
 0x626   :  { %2355 = vmatpush1.bf16.msra.mxu1 %v2783_v48 }
 0x627   :  { %2378 = vmatprep.subr.bf16.mxu1 %v2624_v0 }
 0x6e5   :  { %v508_v10 = vpop.f32.mrb[2].mxu0 }
 0x6e6   :  { %v509_v11 = vadd.f32 %v508_v10, %v2817_v1  ;;  %v510_v12 = vpop.f32.mrb[3].mxu0 }
 0x6e7   :  { %v511_v13 = vadd.f32 %v510_v12, %v2819_v2 }
 0x6e8   :  { %514 = vrot.lane.b32.xlu0 %v509_v11, %s2629_s14 }
 0x6e9   :  { %535 = vrot.lane.b32.xlu1 %v511_v13, %s2628_s2 }
 0x6ec   :  { %v645_v14 = vpop.f32.mrb[4].mxu1 }
 0x6ed   :  { %v646_v15 = vadd.f32 %v2703_v9, %v645_v14  ;;  %v2234_v16 = vpop.f32.mrb[5].mxu1 }
 0x6ef   :  { %659 = vrot.lane.b32.xlu1 %v646_v15, %s2627_s30  ;;  %v651_v18 = vadd.f32 %v2109_v17, %v646_v15 }
 0x6f1   :  { %v2110_v19 = vmul.f32 -1.442695, %v651_v18 }
 0x6f3   :  { %2517 = vpow2.f32 %v2110_v19 }
 0x6fd   :  { %v2518_v20 = vpop.eup %2517 }
 0x6fe   :  { %v655_v21 = vadd.f32 1.0, %v2518_v20 }
 0x700   :  { %2519 = vrcp.f32 %v655_v21  ;;  %v2118_v21 = vld [vmem:[%s3218_s0 + $0x18] sm:$0xff] }
 0x70a   :  { %v2520_v27 = vpop.eup %2519 }
 0x70b   :  { %v669_v63 = vsub.f32 1.0, %v2520_v27 }
 0x75a   :  { %v515_v22 = vpop.permute.xlu0 %514 }
 0x75b   :  { %v517_v23 = vadd.f32 %v515_v22, %v509_v11  ;;  %v536_v25 = vpop.permute.xlu1 %535 }
 0x75d   :  { %v2103_v24 = vmul.f32 -1.442695, %v517_v23 }
 0x75f   :  { %2521 = vpow2.f32 %v2103_v24 }
 0x761   :  { %v660_v28 = vpop.permute.xlu1 %659 }
 0x762   :  { %v662_v29 = vmul.f32 %v2520_v27, %v660_v28 }
 0x764   :  { %664 = vrot.lane.b32.xlu1 %v662_v29, %s2627_s30 }
 0x769   :  { %v2522_v32 = vpop.eup %2521 }
 0x76a   :  { %v521_v33 = vadd.f32 1.0, %v2522_v32 }
 0x76c   :  { %2523 = vrcp.f32 %v521_v33 }
 0x776   :  { %v2524_v34 = vpop.eup %2523 }
 0x777   :  { %v538_v35 = vmul.f32 %v2524_v34, %v536_v25 }
 0x779   :  { %540 = vrot.lane.b32.xlu0 %v538_v35, %s2627_s30 }
 0x77d   :  { %525 = vrot.lane.b32.xlu0 %v511_v13, %s2629_s14 }
 0x7d6   :  { %v665_v36 = vpop.permute.xlu1 %664 }
 0x7d7   :  { %v667_v41 = vadd.f32 %v2109_v17, %v665_v36 }
 0x7eb   :  { %v541_v39 = vpop.permute.xlu0 %540 }
 0x7ec   :  { %v543_v40 = vadd.f32 %v541_v39, %v509_v11 }
 0x7ee   :  { %2525 = vtanh.f32 %v543_v40 }
 0x7ef   :  { %2527 = vtanh.f32 %v667_v41  ;;  %v526_v46 = vpop.permute.xlu0 %525 }
 0x7f0   :  { %v528_v47 = vadd.f32 %v526_v46, %v509_v11 }
 0x7f2   :  { %v2104_v49 = vmul.f32 -1.442695, %v528_v47 }
 0x7f4   :  { %2529 = vpow2.f32 %v2104_v49 }
 0x7f8   :  { %v2526_v42 = vpop.eup %2525 }
 0x7f9   :  { %547 = vrot.lane.b32.xlu0 %v2526_v42, %s2628_s2  ;;  %v2528_v44 = vpop.eup %2527 }
 0x7fd   :  { %671 = vrot.lane.b32.xlu0 %v2528_v44, %s2628_s2 }
 0x7fe   :  { %v2530_v50 = vpop.eup %2529 }
 0x7ff   :  { %v532_v51 = vadd.f32 1.0, %v2530_v50 }
 0x801   :  { %2531 = vrcp.f32 %v532_v51 }
 0x80b   :  { %v2532_v52 = vpop.eup %2531 }
 0x80c   :  { %v545_v53 = vsub.f32 1.0, %v2532_v52  ;;  %v551_v57 = vmul.f32 %v2532_v52, %v2845_v55 }
 0x86b   :  { %v548_v56 = vpop.permute.xlu0 %547 }
 0x86c   :  { %v550_v59 = vmul.f32 %v548_v56, %v545_v53 }
 0x86e   :  { %v2885_v60 = vadd.f32 %v551_v57, %v550_v59 }
 0x86f   :  { %v672_v62 = vpop.permute.xlu0 %671 }
 0x870   :  { %554 = vrot.lane.b32.xlu1 %v2885_v60, %s2628_s2  ;;  %v674_v6 = vmul.f32 %v672_v62, %v669_v63 }
 0x874   :  { %675 = vrot.lane.b32.xlu1 %v2856_v8, %s2629_s14 }
 0x8e2   :  { %v555_v61 = vpop.permute.xlu1 %554 }
 0x8e3   :  { %557 = vst.msk [vmem:[#allocation2 + $0x8] sm:$0xff] %vm27_vm0, %v555_v61 }
 0x8e6   :  { %v676_v3 = vpop.permute.xlu1 %675 }
 0x8e7   :  { %v678_v58 = vmul.f32 %v2520_v27, %v676_v3 }
 0x8e9   :  { %v679_v10 = vadd.f32 %v678_v58, %v674_v6 }
 0x8ea   :  { %v685_v11 = vld [vmem:[#allocation2 + $0x8] sm:$0xff] }
 0x8eb   :  { %687 = vrot.lane.b32.xlu1 %v685_v11, %s2629_s14  ;;  %681 = vrot.lane.b32.xlu0 %v679_v10, %s2628_s2 }
 0x95d   :  { %v682_v55 = vpop.permute.xlu0 %681  ;;  %v2894_v12 = vpop.permute.xlu1 %687 }
 0x95e   :  { %684 = vst.msk [vmem:[#allocation2] sm:$0xff] %vm27_vm0, %v682_v55  ;;  %v690_v8 = vsel %vm27_vm0, %v682_v55, %v2894_v12 }
 0x95f   :  { %2111 = vmatmul.mubr.msk.f32.vlgmr.msra.gmra.mrb[6].mxu1 %vm188_vm2, %v690_v8 }
 0x960   :  { %2380 = vmatpush3.bf16.msra.mxu1 %v2682_v5  ;;  %2254 = vmatprep.mubr.msk.f32.mxu1 %vm2625_vm1, %v2626_v4 }
 0x961   :  { %2381 = vmatprep.subr.bf16.mxu1 %v2624_v0 }
 0x964   :  { %2383 = vmatpush3.bf16.msra.mxu1 %v2691_v7 }
 0x965   :  { %v2905_v13 = vld [vmem:[#allocation2] sm:$0xff]  ;;  %2385 = vmatprep.subr.bf16.mxu1 %v2720_v26 }
 0x966   :  { %2244 = vmatmul.mubr.msk.f32.vlgmr.msra.gmra.mrb[4].mxu0 %vm27_vm0, %v2905_v13 }
 0x967   :  { %2365 = vmatpush1.bf16.msra.mxu0 %v2731_v30  ;;  %1010 = vmatprep.mubr.f32.mxu0 %v2626_v4 }
 0x968   :  { %2367 = vmatprep.subr.bf16.mxu0 %v2733_v31 }
 0x96b   :  { %2369 = vmatpush1.bf16.msra.mxu0 %v2751_v37 }
 0x96c   :  { %2371 = vmatprep.subr.bf16.mxu0 %v2754_v38 }
 0x96f   :  { %2373 = vmatpush1.bf16.msra.mxu0 %v2770_v43 }
 0x970   :  { %2375 = vmatprep.subr.bf16.mxu0 %v2773_v45 }
 0x973   :  { %2377 = vmatpush1.bf16.msra.mxu0 %v2783_v48 }
 0x974   :  { %2400 = vmatprep.subr.bf16.mxu0 %v2624_v0 }
 0xa32   :  { %v760_v14 = vpop.f32.mrb[6].mxu1 }
 0xa33   :  { %v761_v15 = vadd.f32 %v760_v14, %v2817_v1  ;;  %v762_v16 = vpop.f32.mrb[7].mxu1 }
 0xa34   :  { %v763_v17 = vadd.f32 %v762_v16, %v2819_v2 }
 0xa35   :  { %766 = vrot.lane.b32.xlu0 %v761_v15, %s2629_s14 }
 0xa36   :  { %787 = vrot.lane.b32.xlu1 %v763_v17, %s2628_s2 }
 0xa39   :  { %v897_v18 = vpop.f32.mrb[4].mxu0 }
 0xa3a   :  { %v898_v19 = vadd.f32 %v2703_v9, %v897_v18  ;;  %v2245_v20 = vpop.f32.mrb[5].mxu0 }
 0xa3c   :  { %911 = vrot.lane.b32.xlu1 %v898_v19, %s2627_s30  ;;  %v903_v22 = vadd.f32 %v2118_v21, %v898_v19 }
 0xa3e   :  { %v2119_v23 = vmul.f32 -1.442695, %v903_v22 }
 0xa40   :  { %2533 = vpow2.f32 %v2119_v23 }
 0xa4a   :  { %v2534_v24 = vpop.eup %2533 }
 0xa4b   :  { %v907_v25 = vadd.f32 1.0, %v2534_v24 }
 0xa4d   :  { %2535 = vrcp.f32 %v907_v25 }
 0xa57   :  { %v2536_v33 = vpop.eup %2535 }
 0xa58   :  { %v921_v11 = vsub.f32 1.0, %v2536_v33 }
 0xaa7   :  { %v767_v27 = vpop.permute.xlu0 %766 }
 0xaa8   :  { %v769_v28 = vadd.f32 %v767_v27, %v761_v15  ;;  %v788_v32 = vpop.permute.xlu1 %787  ;;  %v2127_v27 = vld [vmem:[%s3218_s0 + $0x20] sm:$0xff] }
 0xaaa   :  { %v2112_v29 = vmul.f32 -1.442695, %v769_v28 }
 0xaac   :  { %2537 = vpow2.f32 %v2112_v29 }
 0xaae   :  { %v912_v34 = vpop.permute.xlu1 %911 }
 0xaaf   :  { %v914_v35 = vmul.f32 %v2536_v33, %v912_v34 }
 0xab1   :  { %916 = vrot.lane.b32.xlu1 %v914_v35, %s2627_s30 }
 0xab6   :  { %v2538_v36 = vpop.eup %2537 }
 0xab7   :  { %v773_v39 = vadd.f32 1.0, %v2538_v36 }
 0xab9   :  { %2539 = vrcp.f32 %v773_v39 }
 0xac3   :  { %v2540_v40 = vpop.eup %2539 }
 0xac4   :  { %v790_v41 = vmul.f32 %v2540_v40, %v788_v32 }
 0xac6   :  { %792 = vrot.lane.b32.xlu0 %v790_v41, %s2627_s30 }
 0xaca   :  { %777 = vrot.lane.b32.xlu0 %v763_v17, %s2629_s14 }
 0xb23   :  { %v917_v42 = vpop.permute.xlu1 %916 }
 0xb24   :  { %v919_v47 = vadd.f32 %v2118_v21, %v917_v42 }
 0xb38   :  { %v793_v44 = vpop.permute.xlu0 %792 }
 0xb39   :  { %v795_v46 = vadd.f32 %v793_v44, %v761_v15 }
 0xb3b   :  { %2541 = vtanh.f32 %v795_v46 }
 0xb3c   :  { %2543 = vtanh.f32 %v919_v47  ;;  %v778_v51 = vpop.permute.xlu0 %777 }
 0xb3d   :  { %v780_v52 = vadd.f32 %v778_v51, %v761_v15 }
 0xb3f   :  { %v2113_v53 = vmul.f32 -1.442695, %v780_v52 }
 0xb41   :  { %2545 = vpow2.f32 %v2113_v53 }
 0xb45   :  { %v2542_v49 = vpop.eup %2541 }
 0xb46   :  { %799 = vrot.lane.b32.xlu0 %v2542_v49, %s2628_s2  ;;  %v2544_v50 = vpop.eup %2543 }
 0xb4a   :  { %923 = vrot.lane.b32.xlu0 %v2544_v50, %s2628_s2 }
 0xb4b   :  { %v2546_v56 = vpop.eup %2545 }
 0xb4c   :  { %v784_v57 = vadd.f32 1.0, %v2546_v56 }
 0xb4e   :  { %2547 = vrcp.f32 %v784_v57 }
 0xb58   :  { %v2548_v59 = vpop.eup %2547 }
 0xb59   :  { %v797_v61 = vsub.f32 1.0, %v2548_v59  ;;  %v803_v63 = vmul.f32 %v2548_v59, %v2894_v12 }
 0xbb8   :  { %v800_v62 = vpop.permute.xlu0 %799 }
 0xbb9   :  { %v802_v3 = vmul.f32 %v800_v62, %v797_v61 }
 0xbbb   :  { %v2934_v6 = vadd.f32 %v803_v63, %v802_v3 }
 0xbbc   :  { %v924_v10 = vpop.permute.xlu0 %923 }
 0xbbd   :  { %806 = vrot.lane.b32.xlu1 %v2934_v6, %s2628_s2  ;;  %v926_v8 = vmul.f32 %v924_v10, %v921_v11 }
 0xbc1   :  { %927 = vrot.lane.b32.xlu1 %v2905_v13, %s2629_s14 }
 0xc2f   :  { %v807_v58 = vpop.permute.xlu1 %806 }
 0xc30   :  { %809 = vst.msk [vmem:[#allocation2 + $0x8] sm:$0xff] %vm27_vm0, %v807_v58 }
 0xc33   :  { %v928_v55 = vpop.permute.xlu1 %927 }
 0xc34   :  { %v930_v14 = vmul.f32 %v2536_v33, %v928_v55 }
 0xc36   :  { %v931_v15 = vadd.f32 %v930_v14, %v926_v8 }
 0xc37   :  { %v937_v16 = vld [vmem:[#allocation2 + $0x8] sm:$0xff] }
 0xc38   :  { %939 = vrot.lane.b32.xlu1 %v937_v16, %s2629_s14  ;;  %933 = vrot.lane.b32.xlu0 %v931_v15, %s2628_s2 }
 0xcaa   :  { %v2943_v12 = vpop.permute.xlu1 %939  ;;  %v934_v17 = vpop.permute.xlu0 %933 }
 0xcab   :  { %936 = vst.msk [vmem:[#allocation2] sm:$0xff] %vm27_vm0, %v934_v17  ;;  %v942_v13 = vsel %vm27_vm0, %v934_v17, %v2943_v12 }
 0xcac   :  { %2120 = vmatmul.mubr.msk.f32.vlgmr.msra.gmra.mrb[6].mxu0 %vm188_vm2, %v942_v13 }
 0xcad   :  { %2402 = vmatpush3.bf16.msra.mxu0 %v2682_v5  ;;  %2265 = vmatprep.mubr.msk.f32.mxu0 %vm2625_vm1, %v2626_v4 }
 0xcae   :  { %2403 = vmatprep.subr.bf16.mxu0 %v2624_v0 }
 0xcb1   :  { %2405 = vmatpush3.bf16.msra.mxu0 %v2691_v7 }
 0xcb2   :  { %v2954_v18 = vld [vmem:[#allocation2] sm:$0xff]  ;;  %2407 = vmatprep.subr.bf16.mxu0 %v2720_v26 }
 0xcb3   :  { %2255 = vmatmul.mubr.msk.f32.vlgmr.msra.gmra.mrb[8].mxu1 %vm27_vm0, %v2954_v18 }
 0xcb4   :  { %2387 = vmatpush1.bf16.msra.mxu1 %v2731_v30  ;;  %1262 = vmatprep.mubr.f32.mxu1 %v2626_v4 }
 0xcb5   :  { %2389 = vmatprep.subr.bf16.mxu1 %v2733_v31 }
 0xcb8   :  { %2391 = vmatpush1.bf16.msra.mxu1 %v2751_v37 }
 0xcb9   :  { %2393 = vmatprep.subr.bf16.mxu1 %v2754_v38 }
 0xcbc   :  { %2395 = vmatpush1.bf16.msra.mxu1 %v2770_v43 }
 0xcbd   :  { %2397 = vmatprep.subr.bf16.mxu1 %v2773_v45 }
 0xcc0   :  { %2399 = vmatpush1.bf16.msra.mxu1 %v2783_v48 }
 0xcc1   :  { %2422 = vmatprep.subr.bf16.mxu1 %v2624_v0 }
 0xd7f   :  { %v1012_v19 = vpop.f32.mrb[6].mxu0 }
 0xd80   :  { %v1013_v20 = vadd.f32 %v1012_v19, %v2817_v1  ;;  %v1014_v21 = vpop.f32.mrb[7].mxu0 }
 0xd81   :  { %v1015_v22 = vadd.f32 %v1014_v21, %v2819_v2 }
 0xd82   :  { %1018 = vrot.lane.b32.xlu0 %v1013_v20, %s2629_s14 }
 0xd83   :  { %1039 = vrot.lane.b32.xlu1 %v1015_v22, %s2628_s2 }
 0xd86   :  { %v1149_v23 = vpop.f32.mrb[8].mxu1 }
 0xd87   :  { %v1150_v24 = vadd.f32 %v2703_v9, %v1149_v23  ;;  %v2256_v25 = vpop.f32.mrb[9].mxu1 }
 0xd89   :  { %1163 = vrot.lane.b32.xlu1 %v1150_v24, %s2627_s30  ;;  %v1155_v28 = vadd.f32 %v2127_v27, %v1150_v24 }
 0xd8b   :  { %v2128_v29 = vmul.f32 -1.442695, %v1155_v28 }
 0xd8d   :  { %2549 = vpow2.f32 %v2128_v29 }
 0xd97   :  { %v2550_v32 = vpop.eup %2549 }
 0xd98   :  { %v1159_v33 = vadd.f32 1.0, %v2550_v32 }
 0xd9a   :  { %2551 = vrcp.f32 %v1159_v33 }
 0xda4   :  { %v2552_v40 = vpop.eup %2551 }
 0xda5   :  { %v1173_v17 = vsub.f32 1.0, %v2552_v40 }
 0xdf4   :  { %v1019_v34 = vpop.permute.xlu0 %1018 }
 0xdf5   :  { %v1021_v35 = vadd.f32 %v1019_v34, %v1013_v20  ;;  %v1040_v39 = vpop.permute.xlu1 %1039 }
 0xdf7   :  { %v2121_v36 = vmul.f32 -1.442695, %v1021_v35  ;;  %v2136_v35 = vld [vmem:[%s3218_s0 + $0x28] sm:$0xff] }
 0xdf9   :  { %2553 = vpow2.f32 %v2121_v36 }
 0xdfb   :  { %v1164_v41 = vpop.permute.xlu1 %1163 }
 0xdfc   :  { %v1166_v42 = vmul.f32 %v2552_v40, %v1164_v41 }
 0xdfe   :  { %1168 = vrot.lane.b32.xlu1 %v1166_v42, %s2627_s30 }
 0xe03   :  { %v2554_v44 = vpop.eup %2553 }
 0xe04   :  { %v1025_v46 = vadd.f32 1.0, %v2554_v44 }
 0xe06   :  { %2555 = vrcp.f32 %v1025_v46 }
 0xe10   :  { %v2556_v47 = vpop.eup %2555 }
 0xe11   :  { %v1042_v49 = vmul.f32 %v2556_v47, %v1040_v39 }
 0xe13   :  { %1044 = vrot.lane.b32.xlu0 %v1042_v49, %s2627_s30 }
 0xe17   :  { %1029 = vrot.lane.b32.xlu0 %v1015_v22, %s2629_s14 }
 0xe70   :  { %v1169_v50 = vpop.permute.xlu1 %1168 }
 0xe71   :  { %v1171_v53 = vadd.f32 %v2127_v27, %v1169_v50 }
 0xe85   :  { %v1045_v51 = vpop.permute.xlu0 %1044 }
 0xe86   :  { %v1047_v52 = vadd.f32 %v1045_v51, %v1013_v20 }
 0xe88   :  { %2557 = vtanh.f32 %v1047_v52 }
 0xe89   :  { %2559 = vtanh.f32 %v1171_v53  ;;  %v1030_v59 = vpop.permute.xlu0 %1029 }
 0xe8a   :  { %v1032_v61 = vadd.f32 %v1030_v59, %v1013_v20 }
 0xe8c   :  { %v2122_v62 = vmul.f32 -1.442695, %v1032_v61 }
 0xe8e   :  { %2561 = vpow2.f32 %v2122_v62 }
 0xe92   :  { %v2558_v56 = vpop.eup %2557 }
 0xe93   :  { %1051 = vrot.lane.b32.xlu0 %v2558_v56, %s2628_s2  ;;  %v2560_v57 = vpop.eup %2559 }
 0xe97   :  { %1175 = vrot.lane.b32.xlu0 %v2560_v57, %s2628_s2 }
 0xe98   :  { %v2562_v63 = vpop.eup %2561 }
 0xe99   :  { %v1036_v3 = vadd.f32 1.0, %v2562_v63 }
 0xe9b   :  { %2563 = vrcp.f32 %v1036_v3 }
 0xea5   :  { %v2564_v58 = vpop.eup %2563 }
 0xea6   :  { %v1049_v10 = vsub.f32 1.0, %v2564_v58  ;;  %v1055_v55 = vmul.f32 %v2564_v58, %v2943_v12 }
 0xf05   :  { %v1052_v11 = vpop.permute.xlu0 %1051 }
 0xf06   :  { %v1054_v8 = vmul.f32 %v1052_v11, %v1049_v10 }
 0xf08   :  { %v2983_v14 = vadd.f32 %v1055_v55, %v1054_v8 }
 0xf09   :  { %v1176_v16 = vpop.permute.xlu0 %1175 }
 0xf0a   :  { %1058 = vrot.lane.b32.xlu1 %v2983_v14, %s2628_s2  ;;  %v1178_v19 = vmul.f32 %v1176_v16, %v1173_v17 }
 0xf0e   :  { %1179 = vrot.lane.b32.xlu1 %v2954_v18, %s2629_s14 }
 0xf7c   :  { %v1059_v15 = vpop.permute.xlu1 %1058 }
 0xf7d   :  { %1061 = vst.msk [vmem:[#allocation2 + $0x8] sm:$0xff] %vm27_vm0, %v1059_v15 }
 0xf80   :  { %v1180_v13 = vpop.permute.xlu1 %1179 }
 0xf81   :  { %v1182_v20 = vmul.f32 %v2552_v40, %v1180_v13 }
 0xf83   :  { %v1183_v21 = vadd.f32 %v1182_v20, %v1178_v19 }
 0xf84   :  { %v1189_v22 = vld [vmem:[#allocation2 + $0x8] sm:$0xff] }
 0xf85   :  { %1191 = vrot.lane.b32.xlu1 %v1189_v22, %s2629_s14  ;;  %1185 = vrot.lane.b32.xlu0 %v1183_v21, %s2628_s2 }
 0xff7   :  { %v1186_v12 = vpop.permute.xlu0 %1185  ;;  %v2992_v23 = vpop.permute.xlu1 %1191 }
 0xff8   :  { %1188 = vst.msk [vmem:[#allocation2] sm:$0xff] %vm27_vm0, %v1186_v12  ;;  %v1194_v18 = vsel %vm27_vm0, %v1186_v12, %v2992_v23 }
 0xff9   :  { %2129 = vmatmul.mubr.msk.f32.vlgmr.msra.gmra.mrb[10].mxu1 %vm188_vm2, %v1194_v18 }
 0xffa   :  { %2424 = vmatpush3.bf16.msra.mxu1 %v2682_v5  ;;  %2276 = vmatprep.mubr.msk.f32.mxu1 %vm2625_vm1, %v2626_v4 }
 0xffb   :  { %2425 = vmatprep.subr.bf16.mxu1 %v2624_v0 }
 0xffe   :  { %2427 = vmatpush3.bf16.msra.mxu1 %v2691_v7 }
 0xfff   :  { %v3003_v24 = vld [vmem:[#allocation2] sm:$0xff]  ;;  %2429 = vmatprep.subr.bf16.mxu1 %v2720_v26 }
0x1000   :  { %2266 = vmatmul.mubr.msk.f32.vlgmr.msra.gmra.mrb[8].mxu0 %vm27_vm0, %v3003_v24 }
0x1001   :  { %2409 = vmatpush1.bf16.msra.mxu0 %v2731_v30  ;;  %1514 = vmatprep.mubr.f32.mxu0 %v2626_v4 }
0x1002   :  { %2411 = vmatprep.subr.bf16.mxu0 %v2733_v31 }
0x1005   :  { %2413 = vmatpush1.bf16.msra.mxu0 %v2751_v37 }
0x1006   :  { %2415 = vmatprep.subr.bf16.mxu0 %v2754_v38 }
0x1009   :  { %2417 = vmatpush1.bf16.msra.mxu0 %v2770_v43 }
0x100a   :  { %2419 = vmatprep.subr.bf16.mxu0 %v2773_v45 }
0x100d   :  { %2421 = vmatpush1.bf16.msra.mxu0 %v2783_v48 }
0x100e   :  { %2444 = vmatprep.subr.bf16.mxu0 %v2624_v0 }
0x10cc   :  { %v1264_v25 = vpop.f32.mrb[10].mxu1 }
0x10cd   :  { %v1265_v27 = vadd.f32 %v1264_v25, %v2817_v1  ;;  %v1266_v28 = vpop.f32.mrb[11].mxu1 }
0x10ce   :  { %v1267_v29 = vadd.f32 %v1266_v28, %v2819_v2 }
0x10cf   :  { %1270 = vrot.lane.b32.xlu0 %v1265_v27, %s2629_s14 }
0x10d0   :  { %1291 = vrot.lane.b32.xlu1 %v1267_v29, %s2628_s2 }
0x10d3   :  { %v1401_v32 = vpop.f32.mrb[8].mxu0 }
0x10d4   :  { %v1402_v33 = vadd.f32 %v2703_v9, %v1401_v32  ;;  %v2267_v34 = vpop.f32.mrb[9].mxu0 }
0x10d6   :  { %1415 = vrot.lane.b32.xlu1 %v1402_v33, %s2627_s30  ;;  %v1407_v36 = vadd.f32 %v2136_v35, %v1402_v33 }
0x10d8   :  { %v2137_v39 = vmul.f32 -1.442695, %v1407_v36 }
0x10da   :  { %2565 = vpow2.f32 %v2137_v39 }
0x10e4   :  { %v2566_v40 = vpop.eup %2565 }
0x10e5   :  { %v1411_v41 = vadd.f32 1.0, %v2566_v40  ;;  %v2145_v40 = vld [vmem:[%s3218_s0 + $0x30] sm:$0xff] }
0x10e7   :  { %2567 = vrcp.f32 %v1411_v41 }
0x10f1   :  { %v2568_v49 = vpop.eup %2567 }
0x10f2   :  { %v1425_v12 = vsub.f32 1.0, %v2568_v49 }
0x1141   :  { %v1271_v42 = vpop.permute.xlu0 %1270 }
0x1142   :  { %v1273_v44 = vadd.f32 %v1271_v42, %v1265_v27  ;;  %v1292_v47 = vpop.permute.xlu1 %1291 }
0x1144   :  { %v2130_v46 = vmul.f32 -1.442695, %v1273_v44 }
0x1146   :  { %2569 = vpow2.f32 %v2130_v46 }
0x1148   :  { %v1416_v9 = vpop.permute.xlu1 %1415 }
0x1149   :  { %v1418_v50 = vmul.f32 %v2568_v49, %v1416_v9 }
0x114b   :  { %1420 = vrot.lane.b32.xlu1 %v1418_v50, %s2627_s30 }
0x1150   :  { %v2570_v51 = vpop.eup %2569 }
0x1151   :  { %v1277_v52 = vadd.f32 1.0, %v2570_v51 }
0x1153   :  { %2571 = vrcp.f32 %v1277_v52 }
0x115d   :  { %v2572_v53 = vpop.eup %2571 }
0x115e   :  { %v1294_v56 = vmul.f32 %v2572_v53, %v1292_v47 }
0x1160   :  { %1296 = vrot.lane.b32.xlu0 %v1294_v56, %s2627_s30 }
0x1164   :  { %1281 = vrot.lane.b32.xlu0 %v1267_v29, %s2629_s14 }
0x11bd   :  { %v1421_v57 = vpop.permute.xlu1 %1420 }
0x11be   :  { %v1423_v62 = vadd.f32 %v2136_v35, %v1421_v57  ;;  %v3072_v35 = vld [vmem:[%s3217_s3] ss:$0 sm:$0xff] }
0x11d2   :  { %v1297_v59 = vpop.permute.xlu0 %1296 }
0x11d3   :  { %v1299_v61 = vadd.f32 %v1297_v59, %v1265_v27 }
0x11d5   :  { %2573 = vtanh.f32 %v1299_v61 }
0x11d6   :  { %2575 = vtanh.f32 %v1423_v62  ;;  %v1282_v58 = vpop.permute.xlu0 %1281 }
0x11d7   :  { %v1284_v10 = vadd.f32 %v1282_v58, %v1265_v27 }
0x11d9   :  { %v2131_v11 = vmul.f32 -1.442695, %v1284_v10 }
0x11db   :  { %2577 = vpow2.f32 %v2131_v11 }
0x11df   :  { %v2574_v63 = vpop.eup %2573 }
0x11e0   :  { %1303 = vrot.lane.b32.xlu0 %v2574_v63, %s2628_s2  ;;  %v2576_v3 = vpop.eup %2575 }
0x11e4   :  { %1427 = vrot.lane.b32.xlu0 %v2576_v3, %s2628_s2 }
0x11e5   :  { %v2578_v55 = vpop.eup %2577 }
0x11e6   :  { %v1288_v8 = vadd.f32 1.0, %v2578_v55 }
0x11e8   :  { %2579 = vrcp.f32 %v1288_v8 }
0x11f2   :  { %v2580_v15 = vpop.eup %2579 }
0x11f3   :  { %v1301_v16 = vsub.f32 1.0, %v2580_v15  ;;  %v1307_v13 = vmul.f32 %v2580_v15, %v2992_v23 }
0x1252   :  { %v1304_v17 = vpop.permute.xlu0 %1303 }
0x1253   :  { %v1306_v19 = vmul.f32 %v1304_v17, %v1301_v16 }
0x1255   :  { %v3032_v20 = vadd.f32 %v1307_v13, %v1306_v19 }
0x1256   :  { %v1428_v22 = vpop.permute.xlu0 %1427 }
0x1257   :  { %1310 = vrot.lane.b32.xlu1 %v3032_v20, %s2628_s2  ;;  %v1430_v25 = vmul.f32 %v1428_v22, %v1425_v12 }
0x125b   :  { %1431 = vrot.lane.b32.xlu1 %v3003_v24, %s2629_s14 }
0x12c9   :  { %v1311_v21 = vpop.permute.xlu1 %1310 }
0x12ca   :  { %1313 = vst.msk [vmem:[#allocation2 + $0x8] sm:$0xff] %vm27_vm0, %v1311_v21 }
0x12cd   :  { %v1432_v18 = vpop.permute.xlu1 %1431 }
0x12ce   :  { %v1434_v27 = vmul.f32 %v2568_v49, %v1432_v18 }
0x12d0   :  { %v1435_v28 = vadd.f32 %v1434_v27, %v1430_v25 }
0x12d1   :  { %v1441_v29 = vld [vmem:[#allocation2 + $0x8] sm:$0xff] }
0x12d2   :  { %1443 = vrot.lane.b32.xlu1 %v1441_v29, %s2629_s14  ;;  %1437 = vrot.lane.b32.xlu0 %v1435_v28, %s2628_s2 }
0x1344   :  { %v3041_v23 = vpop.permute.xlu1 %1443  ;;  %v1438_v32 = vpop.permute.xlu0 %1437 }
0x1345   :  { %1440 = vst.msk [vmem:[#allocation2] sm:$0xff] %vm27_vm0, %v1438_v32  ;;  %v1446_v24 = vsel %vm27_vm0, %v1438_v32, %v3041_v23 }
0x1346   :  { %2138 = vmatmul.mubr.msk.f32.vlgmr.msra.gmra.mrb[10].mxu0 %vm188_vm2, %v1446_v24 }
0x1347   :  { %2446 = vmatpush3.bf16.msra.mxu0 %v2682_v5  ;;  %2287 = vmatprep.mubr.msk.f32.mxu0 %vm2625_vm1, %v2626_v4 }
0x1348   :  { %2447 = vmatprep.subr.bf16.mxu0 %v2624_v0 }
0x134b   :  { %2449 = vmatpush3.bf16.msra.mxu0 %v2691_v7 }
0x134c   :  { %v3052_v33 = vld [vmem:[#allocation2] sm:$0xff]  ;;  %2451 = vmatprep.subr.bf16.mxu0 %v2720_v26 }
0x134d   :  { %2277 = vmatmul.mubr.msk.f32.vlgmr.msra.gmra.mrb[12].mxu1 %vm27_vm0, %v3052_v33 }
0x134e   :  { %2431 = vmatpush1.bf16.msra.mxu1 %v2731_v30  ;;  %1766 = vmatprep.mubr.f32.mxu1 %v2626_v4 }
0x134f   :  { %2433 = vmatprep.subr.bf16.mxu1 %v2733_v31 }
0x1352   :  { %2435 = vmatpush1.bf16.msra.mxu1 %v2751_v37 }
0x1353   :  { %2437 = vmatprep.subr.bf16.mxu1 %v2754_v38 }
0x1356   :  { %2439 = vmatpush1.bf16.msra.mxu1 %v2770_v43 }
0x1357   :  { %2441 = vmatprep.subr.bf16.mxu1 %v2773_v45 }
0x135a   :  { %2443 = vmatpush1.bf16.msra.mxu1 %v2783_v48 }
0x1419   :  { %v1516_v0 = vpop.f32.mrb[10].mxu0 }
0x141a   :  { %v1517_v5 = vadd.f32 %v1516_v0, %v2817_v1  ;;  %v1518_v7 = vpop.f32.mrb[11].mxu0 }
0x141b   :  { %v1519_v26 = vadd.f32 %v1518_v7, %v2819_v2 }
0x141c   :  { %1522 = vrot.lane.b32.xlu0 %v1517_v5, %s2629_s14 }
0x141d   :  { %1543 = vrot.lane.b32.xlu1 %v1519_v26, %s2628_s2 }
0x1420   :  { %v1653_v34 = vpop.f32.mrb[12].mxu1 }
0x1421   :  { %v1654_v36 = vadd.f32 %v3072_v35, %v1653_v34  ;;  %v2278_v39 = vpop.f32.mrb[13].mxu1 }
0x1423   :  { %1667 = vrot.lane.b32.xlu1 %v1654_v36, %s2627_s30  ;;  %v1659_v41 = vadd.f32 %v2145_v40, %v1654_v36 }
0x1425   :  { %v2146_v42 = vmul.f32 -1.442695, %v1659_v41 }
0x1427   :  { %2581 = vpow2.f32 %v2146_v42 }
0x1431   :  { %v2582_v44 = vpop.eup %2581 }
0x1432   :  { %v1663_v46 = vadd.f32 1.0, %v2582_v44 }
0x1434   :  { %2583 = vrcp.f32 %v1663_v46 }
0x143e   :  { %v2584_v51 = vpop.eup %2583 }
0x143f   :  { %v1677_v28 = vsub.f32 1.0, %v2584_v51 }
0x148e   :  { %v1523_v47 = vpop.permute.xlu0 %1522 }
0x148f   :  { %v1525_v49 = vadd.f32 %v1523_v47, %v1517_v5  ;;  %v1544_v50 = vpop.permute.xlu1 %1543 }
0x1491   :  { %v2139_v9 = vmul.f32 -1.442695, %v1525_v49 }
0x1493   :  { %2585 = vpow2.f32 %v2139_v9 }
0x1495   :  { %v1668_v52 = vpop.permute.xlu1 %1667 }
0x1496   :  { %v1670_v53 = vmul.f32 %v2584_v51, %v1668_v52 }
0x1498   :  { %1672 = vrot.lane.b32.xlu1 %v1670_v53, %s2627_s30 }
0x149d   :  { %v2586_v56 = vpop.eup %2585 }
0x149e   :  { %v1529_v57 = vadd.f32 1.0, %v2586_v56 }
0x14a0   :  { %2587 = vrcp.f32 %v1529_v57 }
0x14aa   :  { %v2588_v59 = vpop.eup %2587 }
0x14ab   :  { %v1546_v61 = vmul.f32 %v2588_v59, %v1544_v50 }
0x14ad   :  { %1548 = vrot.lane.b32.xlu0 %v1546_v61, %s2627_s30 }
0x14b1   :  { %1533 = vrot.lane.b32.xlu0 %v1519_v26, %s2629_s14 }
0x150a   :  { %v1673_v62 = vpop.permute.xlu1 %1672 }
0x150b   :  { %v1675_v58 = vadd.f32 %v2145_v40, %v1673_v62 }
0x151f   :  { %v1549_v63 = vpop.permute.xlu0 %1548 }
0x1520   :  { %v1551_v3 = vadd.f32 %v1549_v63, %v1517_v5 }
0x1522   :  { %2589 = vtanh.f32 %v1551_v3 }
0x1523   :  { %2591 = vtanh.f32 %v1675_v58  ;;  %v1534_v55 = vpop.permute.xlu0 %1533 }
0x1524   :  { %v1536_v8 = vadd.f32 %v1534_v55, %v1517_v5 }
0x1526   :  { %v2140_v15 = vmul.f32 -1.442695, %v1536_v8 }
0x1528   :  { %2593 = vpow2.f32 %v2140_v15 }
0x152c   :  { %v2590_v10 = vpop.eup %2589 }
0x152d   :  { %1555 = vrot.lane.b32.xlu0 %v2590_v10, %s2628_s2  ;;  %v2592_v11 = vpop.eup %2591 }
0x1531   :  { %1679 = vrot.lane.b32.xlu0 %v2592_v11, %s2628_s2 }
0x1532   :  { %v2594_v16 = vpop.eup %2593 }
0x1533   :  { %v1540_v17 = vadd.f32 1.0, %v2594_v16 }
0x1535   :  { %2595 = vrcp.f32 %v1540_v17 }
0x153f   :  { %v2596_v13 = vpop.eup %2595 }
0x1540   :  { %v1553_v19 = vsub.f32 1.0, %v2596_v13  ;;  %v1559_v22 = vmul.f32 %v2596_v13, %v3041_v23 }
0x159f   :  { %v1556_v21 = vpop.permute.xlu0 %1555 }
0x15a0   :  { %v1558_v12 = vmul.f32 %v1556_v21, %v1553_v19 }
0x15a2   :  { %v3085_v18 = vadd.f32 %v1559_v22, %v1558_v12 }
0x15a3   :  { %v1680_v27 = vpop.permute.xlu0 %1679 }
0x15a4   :  { %1562 = vrot.lane.b32.xlu1 %v3085_v18, %s2628_s2  ;;  %v1682_v32 = vmul.f32 %v1680_v27, %v1677_v28 }
0x15a8   :  { %1683 = vrot.lane.b32.xlu1 %v3052_v33, %s2629_s14 }
0x1616   :  { %v1563_v25 = vpop.permute.xlu1 %1562 }
0x1617   :  { %1565 = vst.msk [vmem:[#allocation2 + $0x8] sm:$0xff] %vm27_vm0, %v1563_v25 }
0x161a   :  { %v1684_v29 = vpop.permute.xlu1 %1683 }
0x161b   :  { %v1686_v24 = vmul.f32 %v2584_v51, %v1684_v29 }
0x161d   :  { %v1687_v0 = vadd.f32 %v1686_v24, %v1682_v32 }
0x161e   :  { %v1693_v5 = vld [vmem:[#allocation2 + $0x8] sm:$0xff] }
0x161f   :  { %1695 = vrot.lane.b32.xlu1 %v1693_v5, %s2629_s14  ;;  %1689 = vrot.lane.b32.xlu0 %v1687_v0, %s2628_s2 }
0x1691   :  { %v1690_v23 = vpop.permute.xlu0 %1689  ;;  %v3094_v7 = vpop.permute.xlu1 %1695 }
0x1692   :  { %1692 = vst.msk [vmem:[#allocation2] sm:$0xff] %vm27_vm0, %v1690_v23  ;;  %v1698_v33 = vsel %vm27_vm0, %v1690_v23, %v3094_v7  ;;  %v2630_v23 = vmov 0  }
0x1693   :  { %2147 = vmatmul.mubr.msk.f32.vlgmr.msra.gmra.mrb[14].mxu1 %vm188_vm2, %v1698_v33  ;;  %2479 = vset.pattern.permute.xlu1 %v2630_v23 }
0x1694   :  { %2473 = vset.pattern.permute.xlu0 %v2630_v23 }
0x1699   :  { %v3100_v26 = vld [vmem:[#allocation2] sm:$0xff] }
0x169a   :  { %2288 = vmatmul.mubr.msk.f32.vlgmr.msra.gmra.mrb[12].mxu0 %vm27_vm0, %v3100_v26 }
0x169b   :  { %2453 = vmatpush1.bf16.msra.mxu0 %v2731_v30  ;;  %2018 = vmatprep.mubr.f32.mxu0 %v2626_v4 }
0x169c   :  { %2455 = vmatprep.subr.bf16.mxu0 %v2733_v31 }
0x169f   :  { %2457 = vmatpush1.bf16.msra.mxu0 %v2751_v37 }
0x16a0   :  { %2459 = vmatprep.subr.bf16.mxu0 %v2754_v38 }
0x16a3   :  { %2461 = vmatpush1.bf16.msra.mxu0 %v2770_v43  ;;  %v2154_v43 = vld [vmem:[%s3218_s0 + $0x38] sm:$0xff] }
0x16a4   :  { %2463 = vmatprep.subr.bf16.mxu0 %v2773_v45 }
0x16a7   :  { %2465 = vmatpush1.bf16.msra.mxu0 %v2783_v48 }
0x1766   :  { %v1768_v34 = vpop.f32.mrb[14].mxu1 }
0x1767   :  { %v1769_v36 = vadd.f32 %v1768_v34, %v2817_v1  ;;  %v1770_v39 = vpop.f32.mrb[15].mxu1 }
0x1768   :  { %v1771_v30 = vadd.f32 %v1770_v39, %v2819_v2 }
0x1769   :  { %1774 = vrot.lane.b32.xlu0 %v1769_v36, %s2629_s14 }
0x176a   :  { %1795 = vrot.lane.b32.xlu1 %v1771_v30, %s2628_s2 }
0x176d   :  { %v1905_v31 = vpop.f32.mrb[12].mxu0 }
0x176e   :  { %v1906_v37 = vadd.f32 %v3072_v35, %v1905_v31  ;;  %v2289_v38 = vpop.f32.mrb[13].mxu0 }
0x1770   :  { %1919 = vrot.lane.b32.xlu1 %v1906_v37, %s2627_s30  ;;  %v1911_v45 = vadd.f32 %v2154_v43, %v1906_v37 }
0x1772   :  { %v2155_v48 = vmul.f32 -1.442695, %v1911_v45 }
0x1774   :  { %2597 = vpow2.f32 %v2155_v48 }
0x177e   :  { %v2598_v40 = vpop.eup %2597 }
0x177f   :  { %v1915_v41 = vadd.f32 1.0, %v2598_v40 }
0x1781   :  { %2599 = vrcp.f32 %v1915_v41 }
0x178b   :  { %v2600_v49 = vpop.eup %2599 }
0x178c   :  { %v1929_v12 = vsub.f32 1.0, %v2600_v49 }
0x17db   :  { %v1775_v42 = vpop.permute.xlu0 %1774 }
0x17dc   :  { %v1777_v44 = vadd.f32 %v1775_v42, %v1769_v36  ;;  %v1796_v47 = vpop.permute.xlu1 %1795 }
0x17de   :  { %v2148_v46 = vmul.f32 -1.442695, %v1777_v44 }
0x17e0   :  { %2601 = vpow2.f32 %v2148_v46 }
0x17e2   :  { %v1920_v35 = vpop.permute.xlu1 %1919 }
0x17e3   :  { %v1922_v9 = vmul.f32 %v2600_v49, %v1920_v35 }
0x17e5   :  { %1924 = vrot.lane.b32.xlu1 %v1922_v9, %s2627_s30 }
0x17ea   :  { %v2602_v50 = vpop.eup %2601 }
0x17eb   :  { %v1781_v51 = vadd.f32 1.0, %v2602_v50 }
0x17ed   :  { %2603 = vrcp.f32 %v1781_v51 }
0x17f7   :  { %v2604_v52 = vpop.eup %2603 }
0x17f8   :  { %v1798_v53 = vmul.f32 %v2604_v52, %v1796_v47 }
0x17fa   :  { %1800 = vrot.lane.b32.xlu0 %v1798_v53, %s2627_s30 }
0x17fe   :  { %1785 = vrot.lane.b32.xlu0 %v1771_v30, %s2629_s14 }
0x1857   :  { %v1925_v56 = vpop.permute.xlu1 %1924 }
0x1858   :  { %v1927_v61 = vadd.f32 %v2154_v43, %v1925_v56 }
0x186c   :  { %v1801_v57 = vpop.permute.xlu0 %1800 }
0x186d   :  { %v1803_v59 = vadd.f32 %v1801_v57, %v1769_v36 }
0x186f   :  { %2605 = vtanh.f32 %v1803_v59 }
0x1870   :  { %2607 = vtanh.f32 %v1927_v61  ;;  %v1786_v3 = vpop.permute.xlu0 %1785 }
0x1871   :  { %v1788_v58 = vadd.f32 %v1786_v3, %v1769_v36 }
0x1873   :  { %v2149_v10 = vmul.f32 -1.442695, %v1788_v58 }
0x1875   :  { %2609 = vpow2.f32 %v2149_v10 }
0x1879   :  { %v2606_v62 = vpop.eup %2605 }
0x187a   :  { %1807 = vrot.lane.b32.xlu0 %v2606_v62, %s2628_s2  ;;  %v2608_v63 = vpop.eup %2607 }
0x187e   :  { %1931 = vrot.lane.b32.xlu0 %v2608_v63, %s2628_s2 }
0x187f   :  { %v2610_v11 = vpop.eup %2609 }
0x1880   :  { %v1792_v55 = vadd.f32 1.0, %v2610_v11 }
0x1882   :  { %2611 = vrcp.f32 %v1792_v55 }
0x188c   :  { %v2612_v8 = vpop.eup %2611 }
0x188d   :  { %v1805_v15 = vsub.f32 1.0, %v2612_v8  ;;  %v1811_v17 = vmul.f32 %v2612_v8, %v3094_v7  ;;  %v41_v7 = vld [vmem:[%s3221_s1] sm:$0xff] }
0x188e   :  { %vm2114_vm3 = vcmp.gt.s32.totalorder %v41_v7, 2  ;;  %vm2123_vm4 = vcmp.gt.s32.totalorder %v41_v7, 3  ;;  %vm2132_vm5 = vcmp.gt.s32.totalorder %v41_v7, 4  ;;  %vm2141_vm6 = vcmp.gt.s32.totalorder %v41_v7, 5 }
0x188f   :  { %v2115_v39 = vsel %vm2114_vm3, 1.0, %v2626_v4  ;;  %v2124_v30 = vsel %vm2123_vm4, 1.0, %v2626_v4  ;;  %v2133_v31 = vsel %vm2132_vm5, 1.0, %v2626_v4  ;;  %vm2097_vm7 = vcmp.gt.s32.totalorder %v41_v7, 0 }
0x1890   :  { %vm2105_vm8 = vcmp.gt.s32.totalorder %v41_v7, 1  ;;  %v2098_v44 = vsel %vm2097_vm7, 1.0, %v2626_v4  ;;  %vm2150_vm9 = vcmp.gt.s32.totalorder %v41_v7, 6  ;;  %vm2159_vm10 = vcmp.gt.s32.totalorder %v41_v7, 7 }
0x1891   :  { %v2106_v46 = vsel %vm2105_vm8, 1.0, %v2626_v4  ;;  %v2151_v35 = vsel %vm2150_vm9, 1.0, %v2626_v4  ;;  %v2160_v9 = vsel %vm2159_vm10, 1.0, %v2626_v4 }
0x1892   :  { %v2490_v50 = vpack.i.bf16 %v2160_v9, %v2151_v35 }
0x18ec   :  { %v1808_v16 = vpop.permute.xlu0 %1807 }
0x18ed   :  { %v1810_v13 = vmul.f32 %v1808_v16, %v1805_v15 }
0x18ef   :  { %v3127_v19 = vadd.f32 %v1811_v17, %v1810_v13 }
0x18f0   :  { %v1932_v22 = vpop.permute.xlu0 %1931 }
0x18f1   :  { %1814 = vrot.lane.b32.xlu1 %v3127_v19, %s2628_s2  ;;  %v1934_v27 = vmul.f32 %v1932_v22, %v1929_v12 }
0x18f5   :  { %1935 = vrot.lane.b32.xlu1 %v3100_v26, %s2629_s14 }
0x1963   :  { %v1815_v21 = vpop.permute.xlu1 %1814 }
0x1964   :  { %1817 = vst.msk [vmem:[#allocation2 + $0x8] sm:$0xff] %vm27_vm0, %v1815_v21 }
0x1967   :  { %v1936_v25 = vpop.permute.xlu1 %1935 }
0x1968   :  { %v1938_v28 = vmul.f32 %v2600_v49, %v1936_v25  ;;  %v2474_v49 = vpack.i.bf16 %v2106_v46, %v2098_v44 }
0x196a   :  { %v1939_v29 = vadd.f32 %v1938_v28, %v1934_v27 }
0x196b   :  { %v1945_v32 = vld [vmem:[#allocation2 + $0x8] sm:$0xff] }
0x196c   :  { %1947 = vrot.lane.b32.xlu1 %v1945_v32, %s2629_s14  ;;  %1941 = vrot.lane.b32.xlu0 %v1939_v29, %s2628_s2 }
0x19de   :  { %v3136_v24 = vpop.permute.xlu1 %1947  ;;  %v1942_v0 = vpop.permute.xlu0 %1941 }
0x19df   :  { %1944 = vst.msk [vmem:[#allocation2] sm:$0xff] %vm27_vm0, %v1942_v0  ;;  %v1950_v5 = vsel %vm27_vm0, %v1942_v0, %v3136_v24 }
0x19e0   :  { %2156 = vmatmul.mubr.msk.f32.vlgmr.msra.gmra.mrb[14].mxu0 %vm188_vm2, %v1950_v5 }
0x1ab3   :  { %v2020_v33 = vpop.f32.mrb[14].mxu0 }
0x1ab4   :  { %v3146_v26 = vadd.f32 %v2020_v33, %v2817_v1  ;;  %v2022_v34 = vpop.f32.mrb[15].mxu0  ;;  %v2480_v1 = vpack.i.bf16 %v2124_v30, %v2115_v39 }
0x1ab5   :  { %v2023_v36 = vadd.f32 %v2022_v34, %v2819_v2  ;;  %v2142_v2 = vsel %vm2141_vm6, 1.0, %v2626_v4 }
0x1ab6   :  { %2026 = vrot.lane.b32.xlu0 %v3146_v26, %s2629_s14  ;;  %v2485_v37 = vpack.i.bf16 %v2142_v2, %v2133_v31 }
0x1ab7   :  { %2047 = vrot.lane.b32.xlu1 %v2023_v36, %s2628_s2 }
0x1abb   :  { %2037 = vrot.lane.b32.xlu1 %v2023_v36, %s2629_s14 }
0x1abf   :  { %2481 = vperm.xlu1 %2479, %v2480_v1  }
0x1ac3   :  { %2486 = vperm.xlu1 %2479, %v2485_v37  }
0x1b28   :  { %v2027_v38 = vpop.permute.xlu0 %2026 }
0x1b29   :  { %v2029_v43 = vadd.f32 %v2027_v38, %v3146_v26  ;;  %v2048_v42 = vpop.permute.xlu1 %2047 }
0x1b2b   :  { %v2157_v45 = vmul.f32 -1.442695, %v2029_v43 }
0x1b2d   :  { %2613 = vpow2.f32 %v2157_v45  ;;  %v2038_v53 = vpop.permute.xlu1 %2037 }
0x1b37   :  { %v2614_v48 = vpop.eup %2613 }
0x1b38   :  { %v2033_v40 = vadd.f32 1.0, %v2614_v48 }
0x1b3a   :  { %2615 = vrcp.f32 %v2033_v40 }
0x1b3e   :  { %v2482_v57 = vpop.permute.xlu1 %2481 }
0x1b3f   :  { %v2484_v63 = vunpack.i.h.bf16 %v2482_v57  ;;  %v2483_v3 = vunpack.i.l.bf16 %v2482_v57 }
0x1b41   :  { %v1072_v11 = vmul.f32 %v2484_v63, %v2983_v14  ;;  %v820_v55 = vmul.f32 %v2483_v3, %v2934_v6  ;;  %v2040_v6 = vadd.f32 %v2038_v53, %v3146_v26 }
0x1b42   :  { %v2487_v10 = vpop.permute.xlu1 %2486 }
0x1b43   :  { %v2489_v8 = vunpack.i.h.bf16 %v2487_v10  ;;  %v2488_v15 = vunpack.i.l.bf16 %v2487_v10  ;;  %v2158_v13 = vmul.f32 -1.442695, %v2040_v6 }
0x1b44   :  { %v2616_v41 = vpop.eup %2615 }
0x1b45   :  { %v2050_v47 = vmul.f32 %v2616_v41, %v2048_v42 }
0x1b47   :  { %2052 = vrot.lane.b32.xlu0 %v2050_v47, %s2627_s30 }
0x1b4b   :  { %2475 = vperm.xlu0 %2473, %v2474_v49  }
0x1b4f   :  { %2491 = vperm.xlu0 %2473, %v2490_v50  }
0x1bb9   :  { %v2053_v51 = vpop.permute.xlu0 %2052 }
0x1bba   :  { %v2055_v52 = vadd.f32 %v2053_v51, %v3146_v26 }
0x1bbc   :  { %2617 = vtanh.f32 %v2055_v52 }
0x1bbd   :  { %2619 = vpow2.f32 %v2158_v13 }
0x1bc6   :  { %v2618_v56 = vpop.eup %2617 }
0x1bc7   :  { %2059 = vrot.lane.b32.xlu1 %v2618_v56, %s2628_s2  ;;  %v2620_v21 = vpop.eup %2619 }
0x1bc8   :  { %v2044_v22 = vadd.f32 1.0, %v2620_v21 }
0x1bca   :  { %v2476_v59 = vpop.permute.xlu0 %2475  ;;  %2621 = vrcp.f32 %v2044_v22 }
0x1bcb   :  { %v2478_v61 = vunpack.i.h.bf16 %v2476_v59  ;;  %v2477_v62 = vunpack.i.l.bf16 %v2476_v59 }
0x1bcd   :  { %v568_v58 = vmul.f32 %v2478_v61, %v2885_v60  ;;  %v317_v4 = vmul.f32 %v2477_v62, %v2836_v54  ;;  %v1576_v60 = vmul.f32 %v2489_v8, %v3085_v18  ;;  %v1324_v54 = vmul.f32 %v2488_v15, %v3032_v20 }
0x1bce   :  { %v2492_v16 = vpop.permute.xlu0 %2491 }
0x1bcf   :  { %570 = vrot.lane.b32.xlu1 %v568_v58, %s2628_s2  ;;  %319 = vrot.lane.b32.xlu0 %v317_v4, %s2628_s2  ;;  %v2493_v17 = vunpack.i.l.bf16 %v2492_v16  ;;  %v2494_v28 = vunpack.i.h.bf16 %v2492_v16 }
0x1bd1   :  { %v1828_v14 = vmul.f32 %v2493_v17, %v3127_v19 }
0x1bd3   :  { %1074 = vrot.lane.b32.xlu1 %v1072_v11, %s2628_s2  ;;  %822 = vrot.lane.b32.xlu0 %v820_v55, %s2628_s2 }
0x1bd4   :  { %v2622_v12 = vpop.eup %2621 }
0x1bd5   :  { %v2057_v18 = vsub.f32 1.0, %v2622_v12  ;;  %v2063_v27 = vmul.f32 %v2622_v12, %v3136_v24 }
0x1bd7   :  { %1578 = vrot.lane.b32.xlu1 %v1576_v60, %s2628_s2  ;;  %1326 = vrot.lane.b32.xlu0 %v1324_v54, %s2628_s2 }
0x1bdb   :  { %1830 = vrot.lane.b32.xlu0 %v1828_v14, %s2628_s2 }
0x1c39   :  { %v2060_v25 = vpop.permute.xlu1 %2059 }
0x1c3a   :  { %v2062_v20 = vmul.f32 %v2060_v25, %v2057_v18 }
0x1c3c   :  { %v2064_v29 = vadd.f32 %v2063_v27, %v2062_v20 }
0x1c3e   :  { %v2080_v32 = vmul.f32 %v2494_v28, %v2064_v29  ;;  %2066 = vrot.lane.b32.xlu1 %v2064_v29, %s2628_s2 }
0x1c40   :  { %2082 = vrot.lane.b32.xlu0 %v2080_v32, %s2628_s2 }
0x1c41   :  { %v571_v19 = vpop.permute.xlu1 %570  ;;  %v320_v0 = vpop.permute.xlu0 %319 }
0x1c42   :  { %2107 = vst.msk [vmem:[%s3222_s6 + $0x8] sm:$0xff] %vm27_vm0, %v571_v19  ;;  %322 = vst.msk [vmem:[%s3222_s6] sm:$0xff] %vm27_vm0, %v320_v0 }
0x1c45   :  { %v1075_v24 = vpop.permute.xlu1 %1074  ;;  %v823_v5 = vpop.permute.xlu0 %822 }
0x1c46   :  { %2125 = vst.msk [vmem:[%s3222_s6 + $0x18] sm:$0xff] %vm27_vm0, %v1075_v24  ;;  %2116 = vst.msk [vmem:[%s3222_s6 + $0x10] sm:$0xff] %vm27_vm0, %v823_v5 }
0x1c49   :  { %v1579_v23 = vpop.permute.xlu1 %1578  ;;  %v1327_v7 = vpop.permute.xlu0 %1326 }
0x1c4a   :  { %2143 = vst.msk [vmem:[%s3222_s6 + $0x28] sm:$0xff] %vm27_vm0, %v1579_v23  ;;  %2134 = vst.msk [vmem:[%s3222_s6 + $0x20] sm:$0xff] %vm27_vm0, %v1327_v7 }
0x1c4d   :  { %v1831_v33 = vpop.permute.xlu0 %1830 }
0x1c4e   :  { %2152 = vst.msk [vmem:[%s3222_s6 + $0x30] sm:$0xff] %vm27_vm0, %v1831_v33 }
0x1cb0   :  { %v2067_v26 = vpop.permute.xlu1 %2066 }
0x1cb1   :  { %2069 = vst.msk [vmem:[#allocation2 + $0x8] sm:$0xff] %vm27_vm0, %v2067_v26 }
0x1cb2   :  { %v2083_v34 = vpop.permute.xlu0 %2082 }
0x1cb3   :  { %2161 = vst.msk [vmem:[%s3222_s6 + $0x38] sm:$0xff] %vm27_vm0, %v2083_v34 }

</bundles_post_ra>
